<compile_context>
chip_gen: v7x
topology: tpu7x:2x2x1
jax: 0.10.0
libtpu: 0.0.40
codegen_flags: <defaults>
</compile_context>

<pallas_src>
import math
import numpy as np
import jax
import jax.numpy as jnp
from jax import lax
from jax.experimental import pallas as pl
from jax.experimental.pallas import tpu as pltpu


# ---------------------------------------------------------------------------
def _interp_matrix(n_in):
    """PyTorch bilinear, scale=2, align_corners=True interpolation matrix (2n, n)."""
    n_out = 2 * n_in
    m = np.zeros((n_out, n_in), np.float32)
    if n_in == 1:                       # degenerate axis: plain repeat
        m[:, 0] = 1.0
        return jnp.asarray(m)
    for i in range(n_out):
        src = i * (n_in - 1) / (n_out - 1)
        lo = min(int(math.floor(src)), n_in - 2)
        f = src - lo
        m[i, lo] += 1.0 - f
        m[i, lo + 1] += f
    return jnp.asarray(m)


# ---------------------------------------------------------------------------
def _feature_up_kernel(x1_ref, x2p_ref, lh_ref, lw_ref,
                       wup_ref, bup_ref, w1a_ref, w1b_ref, b1_ref,
                       w2t_ref, b2_ref, o_ref, pad_up, pad_mid):
    f32, bf16 = jnp.float32, jnp.bfloat16
    H2, H = lh_ref.shape
    W2, W = lw_ref.shape
    Cin = x1_ref.shape[3]
    Cout = wup_ref.shape[1]

    # Zero only the 1-pixel borders of the padded scratch buffers; the
    # interiors are fully overwritten below, so every grid step is self
    # contained (safe with "parallel" batch semantics / per-core scratch).
    def zero_border(pad):
        Hp, Wp, C = pad.shape
        pad[0:1, :, :] = jnp.zeros((1, Wp, C), pad.dtype)
        pad[Hp - 1:Hp, :, :] = jnp.zeros((1, Wp, C), pad.dtype)
        pad[:, 0:1, :] = jnp.zeros((Hp, 1, C), pad.dtype)
        pad[:, Wp - 1:Wp, :] = jnp.zeros((Hp, 1, C), pad.dtype)

    zero_border(pad_up)
    zero_border(pad_mid)

    # ---- bilinear 2x upsample (align_corners=True) --------------------------
    # W-interp as one batched matmul over H, H-interp as a single lane-dense
    # (H2, H) @ (H, W2*Cin) matmul; one bulk store into the padded scratch.
    x1m = x1_ref[0]                                               # (H, W, Cin) bf16
    lw_b = jnp.broadcast_to(lw_ref[...], (H, W2, W))
    s = jnp.einsum("hjw,hwc->hjc", lw_b, x1m,
                   preferred_element_type=f32)                    # (H, W2, Cin)
    s2 = s.reshape(H, W2 * Cin).astype(bf16)
    u = jnp.dot(lh_ref[...], s2, preferred_element_type=f32)      # (H2, W2*Cin)
    pad_up[1:1 + H2, 1:1 + W2, :] = u.reshape(H2, W2, Cin).astype(bf16)

    # ---- im2col: 6 shifted slices + 2 concats -> one (h*w, 9c) slab ---------
    # Lane ordering (dy*3 + dx)*c + ci matches row-major HWIO weight flattening.
    def im2col(a):
        h, w, c = a.shape[0] - 2, a.shape[1] - 2, a.shape[2]
        cols = jnp.concatenate(
            [a[:, 0:w, :], a[:, 1:w + 1, :], a[:, 2:w + 2, :]], axis=-1)
        rows = jnp.concatenate(
            [cols[0:h, :, :], cols[1:h + 1, :, :], cols[2:h + 2, :, :]], axis=-1)
        return rows.reshape(h * w, 9 * c)

    # upsample_conv + folded-BN + ReLU   (one dot, K = 9*Cin)
    p_up = im2col(pad_up[...])                                    # (H2*W2, 9*Cin) bf16
    x1a = jnp.maximum(
        jnp.dot(p_up, wup_ref[...], preferred_element_type=f32) + bup_ref[...], 0.0)
    pad_mid[1:1 + H2, 1:1 + W2, :] = x1a.reshape(H2, W2, Cout).astype(bf16)

    # conv1 of CBR_2 on concat([x2, x1a]) WITHOUT materializing the concat:
    # split the weight along input channels and sum the two partial dots.
    p_x2 = im2col(x2p_ref[0])                                     # (H2*W2, 9*Cx)
    p_mid = im2col(pad_mid[...])                                  # (H2*W2, 9*Cout)
    h1 = jnp.maximum(
        jnp.dot(p_x2, w1a_ref[...], preferred_element_type=f32)
        + jnp.dot(p_mid, w1b_ref[...], preferred_element_type=f32)
        + b1_ref[...], 0.0)
    pad_mid[1:1 + H2, 1:1 + W2, :] = h1.reshape(H2, W2, Cout).astype(bf16)

    # conv2 of CBR_2, computed transposed (w2^T @ patches^T, q.k^T-style dot)
    # so the output block is a dense (Cout, H2*W2) store — no 4/128-lane vst.
    p2 = im2col(pad_mid[...])                                     # (H2*W2, 9*Cout)
    acc_t = lax.dot_general(w2t_ref[...], p2,
                            dimension_numbers=(((1,), (1,)), ((), ())),
                            preferred_element_type=f32)           # (Cout, H2*W2)
    o_ref[0] = jnp.maximum(acc_t + b2_ref[...], 0.0).astype(o_ref.dtype)


# ---------------------------------------------------------------------------
def feature_up_pallas(x1_nchw, x2_nchw, params):
    f32, bf16 = jnp.float32, jnp.bfloat16
    N, Cin, H, W = x1_nchw.shape
    _, Cx, H2, W2 = x2_nchw.shape
    Cout = params["w_up"].shape[-1]
    assert Cx + Cout == Cin, "Feature_Up expects x2 channels == inchannel - outchannel"
    assert (H2, W2) == (2 * H, 2 * W), "x2 must be the 2x-resolution skip input"

    # NHWC bf16 activations; x2 pre-padded by 1 px in HBM (no in-kernel re-pad).
    x1 = jnp.transpose(x1_nchw, (0, 2, 3, 1)).astype(bf16)          # (N, H, W, Cin)
    x2 = jnp.transpose(x2_nchw, (0, 2, 3, 1)).astype(bf16)          # (N, H2, W2, Cx)
    x2p = jnp.pad(x2, ((0, 0), (1, 1), (1, 1), (0, 0)))             # (N, H2+2, W2+2, Cx)

    lh = _interp_matrix(H).astype(bf16)                             # (H2, H)
    lw = _interp_matrix(W).astype(bf16)                             # (W2, W)

    def fold(w, s):   # fold BN scale (per output channel) into HWIO conv weights
        return w.astype(f32) * s.astype(f32)[None, None, None, :]

    # HWIO -> (9*ci, co) im2col weight slabs (tap-major order = im2col order)
    wup = fold(params["w_up"], params["s_up"]).reshape(9 * Cin, Cout).astype(bf16)
    w1 = fold(params["w1"], params["s1"])
    w1a = w1[:, :, :Cx, :].reshape(9 * Cx, Cout).astype(bf16)      # taps on x2 (skip)
    w1b = w1[:, :, Cx:, :].reshape(9 * Cout, Cout).astype(bf16)    # taps on upsample branch
    w2t = jnp.transpose(
        fold(params["w2"], params["s2"]).reshape(9 * Cout, Cout)).astype(bf16)  # (Cout, 9*Cout)

    bup = params["b_up"].reshape(1, Cout).astype(f32)
    b1 = params["b1"].reshape(1, Cout).astype(f32)
    b2 = params["b2"].reshape(Cout, 1).astype(f32)

    # Size the scoped-VMEM limit from the real footprint (double-buffered
    # blocks + scratch + live im2col slabs), with headroom, capped at 64 MiB.
    def nbytes(shape, dt):
        n = 1
        for d in shape:
            n *= int(d)
        return n * jnp.dtype(dt).itemsize

    footprint = (
        2 * nbytes((1, H, W, Cin), bf16)
        + 2 * nbytes((1, H2 + 2, W2 + 2, Cx), bf16)
        + 2 * nbytes((1, Cout, H2 * W2), f32)
        + nbytes((H2 + 2, W2 + 2, Cin), bf16)
        + nbytes((H2 + 2, W2 + 2, Cout), bf16)
        + 3 * nbytes((H2 * W2, 9 * Cin), bf16)        # live im2col slabs
        + 4 * nbytes((H2 * W2, Cout), f32)            # f32 conv accumulators
        + nbytes((9 * Cin, Cout), bf16) + nbytes((9 * Cx, Cout), bf16)
        + 2 * nbytes((9 * Cout, Cout), bf16) + 3 * nbytes((1, Cout), f32))
    vmem_limit = int(min(64 * 2**20, max(8 * 2**20, 4 * footprint)))

    # TODO(synk): for large images, tile H2 into row blocks with a 1-row halo
    # (grid=(N, H2//TH)) so blocks + scratch also fit v7x's 64 MiB VMEM and each
    # TensorCore gets several pipelined steps; whole-image blocks are kept here.
    out = pl.pallas_call(
        _feature_up_kernel,
        out_shape=jax.ShapeDtypeStruct((N, Cout, H2 * W2), f32),
        grid_spec=pltpu.PrefetchScalarGridSpec(
            num_scalar_prefetch=0, grid=(N,),
            in_specs=[
                pl.BlockSpec((1, H, W, Cin), lambda n: (n, 0, 0, 0)),
                pl.BlockSpec((1, H2 + 2, W2 + 2, Cx), lambda n: (n, 0, 0, 0)),
                pl.BlockSpec((H2, H), lambda n: (0, 0)),
                pl.BlockSpec((W2, W), lambda n: (0, 0)),
                pl.BlockSpec((9 * Cin, Cout), lambda n: (0, 0)),
                pl.BlockSpec((1, Cout), lambda n: (0, 0)),
                pl.BlockSpec((9 * Cx, Cout), lambda n: (0, 0)),
                pl.BlockSpec((9 * Cout, Cout), lambda n: (0, 0)),
                pl.BlockSpec((1, Cout), lambda n: (0, 0)),
                pl.BlockSpec((Cout, 9 * Cout), lambda n: (0, 0)),
                pl.BlockSpec((Cout, 1), lambda n: (0, 0)),
            ],
            out_specs=pl.BlockSpec((1, Cout, H2 * W2), lambda n: (n, 0, 0)),
            scratch_shapes=[
                pltpu.VMEM((H2 + 2, W2 + 2, Cin), bf16),    # padded upsampled x1
                pltpu.VMEM((H2 + 2, W2 + 2, Cout), bf16),   # padded intermediate act
            ],
        ),
        compiler_params=pltpu.CompilerParams(
            dimension_semantics=("parallel",),
            vmem_limit_bytes=vmem_limit),
    )(x1, x2p, lh, lw, wup, bup, w1a, w1b, b1, w2t, b2)

    # (N, Cout, H2*W2) -> NCHW; row-major contiguous, so this reshape is free.
    return out.reshape(N, Cout, H2, W2)


# ---------------------------------------------------------------------------
# Pure-JAX reference (same folded-BN semantics) for a correctness check.
def feature_up_reference(x1_nchw, x2_nchw, params):
    f32 = jnp.float32
    _, _, H, W = x1_nchw.shape
    lh = _interp_matrix(H)
    lw = _interp_matrix(W)
    u = jnp.einsum("ih,nchw->nciw", lh, x1_nchw.astype(f32))
    u = jnp.einsum("jw,nciw->ncij", lw, u)

    def conv(x, w_hwio):
        w = jnp.transpose(w_hwio, (3, 2, 0, 1))                # OIHW
        return lax.conv_general_dilated(
            x, w, (1, 1), "SAME", dimension_numbers=("NCHW", "OIHW", "NCHW"))

    def bn_relu(x, s, b):
        return jnp.maximum(x * s[None, :, None, None] + b[None, :, None, None], 0.0)

    x1a = bn_relu(conv(u, params["w_up"]), params["s_up"], params["b_up"])
    cat = jnp.concatenate([x2_nchw.astype(f32), x1a], axis=1)
    h = bn_relu(conv(cat, params["w1"]), params["s1"], params["b1"])
    return bn_relu(conv(h, params["w2"]), params["s2"], params["b2"])


if __name__ == "__main__":
    # Feature_Up(inchannel=8, outchannel=4): x1 has 8 ch at (H, W),
    # skip input x2 has inchannel - outchannel = 4 ch at (2H, 2W).
    N, Cin, Cout, H, W = 2, 8, 4, 8, 8
    Cx = Cin - Cout
    key = jax.random.PRNGKey(0)
    ks = jax.random.split(key, 8)

    x1 = jax.random.normal(ks[0], (N, Cin, H, W), jnp.float32)
    x2 = jax.random.normal(ks[1], (N, Cx, 2 * H, 2 * W), jnp.float32)

    def conv_w(k, kh, kw, ci, co):
        return jax.random.normal(k, (kh, kw, ci, co), jnp.float32) / math.sqrt(kh * kw * ci)

    def bn_fold(k, c):
        k1, k2, k3, k4 = jax.random.split(k, 4)
        gamma = 0.5 + jax.random.uniform(k1, (c,), dtype=jnp.float32)
        beta = 0.1 * jax.random.normal(k2, (c,), jnp.float32)
        mean = 0.1 * jax.random.normal(k3, (c,), jnp.float32)
        var = 0.5 + jax.random.uniform(k4, (c,), dtype=jnp.float32)
        scale = gamma * lax.rsqrt(var + 1e-5)
        return scale, beta - mean * scale

    s_up, b_up = bn_fold(ks[5], Cout)
    s1, b1 = bn_fold(ks[6], Cout)
    s2, b2 = bn_fold(ks[7], Cout)
    params = dict(
        w_up=conv_w(ks[2], 3, 3, Cin, Cout), s_up=s_up, b_up=b_up,
        w1=conv_w(ks[3], 3, 3, Cin, Cout), s1=s1, b1=b1,
        w2=conv_w(ks[4], 3, 3, Cout, Cout), s2=s2, b2=b2,
    )

    out = jax.block_until_ready(feature_up_pallas(x1, x2, params))
    ref = jax.block_until_ready(feature_up_reference(x1, x2, params))
    assert out.shape == (N, Cout, 2 * H, 2 * W), out.shape
    np.testing.assert_allclose(np.asarray(out), np.asarray(ref), atol=5e-2, rtol=5e-2)
    print("KERNEL_OK")
</pallas_src>

<mosaic_0001>
module attributes {stable_mosaic.version = 11 : i64} {
  func.func @_feature_up_kernel(%arg0: i32, %arg1: memref<1x8x8x8xbf16, #tpu.memory_space<vmem>>, %arg2: memref<1x18x18x4xbf16, #tpu.memory_space<vmem>>, %arg3: memref<16x8xbf16, #tpu.memory_space<vmem>>, %arg4: memref<16x8xbf16, #tpu.memory_space<vmem>>, %arg5: memref<72x4xbf16, #tpu.memory_space<vmem>>, %arg6: memref<1x4xf32, #tpu.memory_space<vmem>>, %arg7: memref<36x4xbf16, #tpu.memory_space<vmem>>, %arg8: memref<36x4xbf16, #tpu.memory_space<vmem>>, %arg9: memref<1x4xf32, #tpu.memory_space<vmem>>, %arg10: memref<4x36xbf16, #tpu.memory_space<vmem>>, %arg11: memref<4x1xf32, #tpu.memory_space<vmem>>, %arg12: memref<1x4x256xf32, #tpu.memory_space<vmem>>, %arg13: memref<18x18x8xbf16, #tpu.memory_space<vmem>>, %arg14: memref<18x18x4xbf16, #tpu.memory_space<vmem>>) attributes {dimension_semantics = [#tpu.dimension_semantics<parallel>], iteration_bounds = array<i64: 2>, scalar_prefetch = 0 : i64, scratch_operands = 2 : i64, tpu.core_type = #tpu.core_type<tc>, window_params = [{transform_indices = @transform_0, window_bounds = array<i64: 1, 8, 8, 8>}, {transform_indices = @transform_1, window_bounds = array<i64: 1, 18, 18, 4>}, {pipeline_mode = #tpu.pipeline_mode<synchronous>, transform_indices = @transform_2, window_bounds = array<i64: 16, 8>}, {pipeline_mode = #tpu.pipeline_mode<synchronous>, transform_indices = @transform_3, window_bounds = array<i64: 16, 8>}, {pipeline_mode = #tpu.pipeline_mode<synchronous>, transform_indices = @transform_4, window_bounds = array<i64: 72, 4>}, {pipeline_mode = #tpu.pipeline_mode<synchronous>, transform_indices = @transform_5, window_bounds = array<i64: 1, 4>}, {pipeline_mode = #tpu.pipeline_mode<synchronous>, transform_indices = @transform_6, window_bounds = array<i64: 36, 4>}, {pipeline_mode = #tpu.pipeline_mode<synchronous>, transform_indices = @transform_7, window_bounds = array<i64: 36, 4>}, {pipeline_mode = #tpu.pipeline_mode<synchronous>, transform_indices = @transform_8, window_bounds = array<i64: 1, 4>}, {pipeline_mode = #tpu.pipeline_mode<synchronous>, transform_indices = @transform_9, window_bounds = array<i64: 4, 36>}, {pipeline_mode = #tpu.pipeline_mode<synchronous>, transform_indices = @transform_10, window_bounds = array<i64: 4, 1>}, {transform_indices = @transform_11, window_bounds = array<i64: 1, 4, 256>}]} {
    %cst = arith.constant 0.000000e+00 : bf16
    %0 = vector.broadcast %cst : bf16 to vector<1x18x8xbf16>
    %c0 = arith.constant 0 : index
    %c0_0 = arith.constant 0 : index
    %c0_1 = arith.constant 0 : index
    %1 = vector.load %arg13[%c0, %c0_0, %c0_1] : memref<18x18x8xbf16, #tpu.memory_space<vmem>>, vector<1x18x8xbf16>
    tpu.vector_store %arg13[%c0, %c0_0, %c0_1], %0 {strides = array<i32>} : memref<18x18x8xbf16, #tpu.memory_space<vmem>>, vector<1x18x8xbf16>,
    %cst_2 = arith.constant 0.000000e+00 : bf16
    %2 = vector.broadcast %cst_2 : bf16 to vector<1x18x8xbf16>
    %c17 = arith.constant 17 : index
    %c0_3 = arith.constant 0 : index
    %c0_4 = arith.constant 0 : index
    %3 = vector.load %arg13[%c17, %c0_3, %c0_4] : memref<18x18x8xbf16, #tpu.memory_space<vmem>>, vector<1x18x8xbf16>
    tpu.vector_store %arg13[%c17, %c0_3, %c0_4], %2 {strides = array<i32>} : memref<18x18x8xbf16, #tpu.memory_space<vmem>>, vector<1x18x8xbf16>,
    %cst_5 = arith.constant 0.000000e+00 : bf16
    %4 = vector.broadcast %cst_5 : bf16 to vector<18x1x8xbf16>
    %c0_6 = arith.constant 0 : index
    %c0_7 = arith.constant 0 : index
    %c0_8 = arith.constant 0 : index
    %5 = vector.load %arg13[%c0_6, %c0_7, %c0_8] : memref<18x18x8xbf16, #tpu.memory_space<vmem>>, vector<18x1x8xbf16>
    tpu.vector_store %arg13[%c0_6, %c0_7, %c0_8], %4 {strides = array<i32>} : memref<18x18x8xbf16, #tpu.memory_space<vmem>>, vector<18x1x8xbf16>,
    %cst_9 = arith.constant 0.000000e+00 : bf16
    %6 = vector.broadcast %cst_9 : bf16 to vector<18x1x8xbf16>
    %c0_10 = arith.constant 0 : index
    %c17_11 = arith.constant 17 : index
    %c0_12 = arith.constant 0 : index
    %7 = vector.load %arg13[%c0_10, %c17_11, %c0_12] : memref<18x18x8xbf16, #tpu.memory_space<vmem>>, vector<18x1x8xbf16>
    tpu.vector_store %arg13[%c0_10, %c17_11, %c0_12], %6 {strides = array<i32>} : memref<18x18x8xbf16, #tpu.memory_space<vmem>>, vector<18x1x8xbf16>,
    %cst_13 = arith.constant 0.000000e+00 : bf16
    %8 = vector.broadcast %cst_13 : bf16 to vector<1x18x4xbf16>
    %c0_14 = arith.constant 0 : index
    %c0_15 = arith.constant 0 : index
    %c0_16 = arith.constant 0 : index
    %9 = vector.load %arg14[%c0_14, %c0_15, %c0_16] : memref<18x18x4xbf16, #tpu.memory_space<vmem>>, vector<1x18x4xbf16>
    tpu.vector_store %arg14[%c0_14, %c0_15, %c0_16], %8 {strides = array<i32>} : memref<18x18x4xbf16, #tpu.memory_space<vmem>>, vector<1x18x4xbf16>,
    %cst_17 = arith.constant 0.000000e+00 : bf16
    %10 = vector.broadcast %cst_17 : bf16 to vector<1x18x4xbf16>
    %c17_18 = arith.constant 17 : index
    %c0_19 = arith.constant 0 : index
    %c0_20 = arith.constant 0 : index
    %11 = vector.load %arg14[%c17_18, %c0_19, %c0_20] : memref<18x18x4xbf16, #tpu.memory_space<vmem>>, vector<1x18x4xbf16>
    tpu.vector_store %arg14[%c17_18, %c0_19, %c0_20], %10 {strides = array<i32>} : memref<18x18x4xbf16, #tpu.memory_space<vmem>>, vector<1x18x4xbf16>,
    %cst_21 = arith.constant 0.000000e+00 : bf16
    %12 = vector.broadcast %cst_21 : bf16 to vector<18x1x4xbf16>
    %c0_22 = arith.constant 0 : index
    %c0_23 = arith.constant 0 : index
    %c0_24 = arith.constant 0 : index
    %13 = vector.load %arg14[%c0_22, %c0_23, %c0_24] : memref<18x18x4xbf16, #tpu.memory_space<vmem>>, vector<18x1x4xbf16>
    tpu.vector_store %arg14[%c0_22, %c0_23, %c0_24], %12 {strides = array<i32>} : memref<18x18x4xbf16, #tpu.memory_space<vmem>>, vector<18x1x4xbf16>,
    %cst_25 = arith.constant 0.000000e+00 : bf16
    %14 = vector.broadcast %cst_25 : bf16 to vector<18x1x4xbf16>
    %c0_26 = arith.constant 0 : index
    %c17_27 = arith.constant 17 : index
    %c0_28 = arith.constant 0 : index
    %15 = vector.load %arg14[%c0_26, %c17_27, %c0_28] : memref<18x18x4xbf16, #tpu.memory_space<vmem>>, vector<18x1x4xbf16>
    tpu.vector_store %arg14[%c0_26, %c17_27, %c0_28], %14 {strides = array<i32>} : memref<18x18x4xbf16, #tpu.memory_space<vmem>>, vector<18x1x4xbf16>,
    %c0_29 = arith.constant 0 : index
    %c0_30 = arith.constant 0 : index
    %c0_31 = arith.constant 0 : index
    %c0_32 = arith.constant 0 : index
    %16 = vector.load %arg1[%c0_29, %c0_30, %c0_31, %c0_32] : memref<1x8x8x8xbf16, #tpu.memory_space<vmem>>, vector<1x8x8x8xbf16>
    %17 = vector.shape_cast %16 : vector<1x8x8x8xbf16> to vector<8x8x8xbf16>
    %c0_33 = arith.constant 0 : index
    %c0_34 = arith.constant 0 : index
    %18 = vector.load %arg4[%c0_33, %c0_34] : memref<16x8xbf16, #tpu.memory_space<vmem>>, vector<16x8xbf16>
    %19 = vector.shape_cast %18 : vector<16x8xbf16> to vector<1x16x8xbf16>
    %20 = vector.broadcast %19 : vector<1x16x8xbf16> to vector<8x16x8xbf16>
    "tpu.trace_start"() <{level = 10 : i32, message = "hjw,hwc->hjc"}> : () -> ()
    %cst_35 = arith.constant dense<0.000000e+00> : vector<8x16x8xf32>
    %21 = tpu.matmul %20, %17, %cst_35 {dimension_numbers = #tpu.dot_dimension_numbers<[2], [1], [1], [2], [0, 0, 0, 1, 1, 2], [0], [0]>} : vector<8x16x8xbf16>, vector<8x8x8xbf16>, vector<8x16x8xf32> -> vector<8x16x8xf32>
    "tpu.trace_stop"() : () -> ()
    %22 = vector.shape_cast %21 : vector<8x16x8xf32> to vector<8x128xf32>
    %23 = arith.truncf %22 : vector<8x128xf32> to vector<8x128xbf16>
    %c0_36 = arith.constant 0 : index
    %c0_37 = arith.constant 0 : index
    %24 = vector.load %arg3[%c0_36, %c0_37] : memref<16x8xbf16, #tpu.memory_space<vmem>>, vector<16x8xbf16>
    %cst_38 = arith.constant dense<0.000000e+00> : vector<16x128xf32>
    %25 = tpu.matmul %24, %23, %cst_38 {dimension_numbers = #tpu.dot_dimension_numbers<[1], [0], [0], [1], [0, 0, 1, 1], [], []>} : vector<16x8xbf16>, vector<8x128xbf16>, vector<16x128xf32> -> vector<16x128xf32>
    %26 = vector.shape_cast %25 : vector<16x128xf32> to vector<16x16x8xf32>
    %27 = arith.truncf %26 : vector<16x16x8xf32> to vector<16x16x8xbf16>
    %c1 = arith.constant 1 : index
    %c1_39 = arith.constant 1 : index
    %c0_40 = arith.constant 0 : index
    %28 = vector.load %arg13[%c1, %c1_39, %c0_40] : memref<18x18x8xbf16, #tpu.memory_space<vmem>>, vector<16x16x8xbf16>
    tpu.vector_store %arg13[%c1, %c1_39, %c0_40], %27 {strides = array<i32>} : memref<18x18x8xbf16, #tpu.memory_space<vmem>>, vector<16x16x8xbf16>,
    %c0_41 = arith.constant 0 : index
    %c0_42 = arith.constant 0 : index
    %c0_43 = arith.constant 0 : index
    %29 = vector.load %arg13[%c0_41, %c0_42, %c0_43] : memref<18x18x8xbf16, #tpu.memory_space<vmem>>, vector<18x18x8xbf16>
    %30 = vector.extract_strided_slice %29 {offsets = [0, 0, 0], sizes = [18, 16, 8], strides = [1, 1, 1]} : vector<18x18x8xbf16> to vector<18x16x8xbf16>
    %31 = vector.extract_strided_slice %29 {offsets = [0, 1, 0], sizes = [18, 16, 8], strides = [1, 1, 1]} : vector<18x18x8xbf16> to vector<18x16x8xbf16>
    %32 = vector.extract_strided_slice %29 {offsets = [0, 2, 0], sizes = [18, 16, 8], strides = [1, 1, 1]} : vector<18x18x8xbf16> to vector<18x16x8xbf16>
    %33 = tpu.concatenate %30, %31, %32 in 2 : vector<18x16x8xbf16>, vector<18x16x8xbf16>, vector<18x16x8xbf16> -> vector<18x16x24xbf16>
    %34 = vector.extract_strided_slice %33 {offsets = [0, 0, 0], sizes = [16, 16, 24], strides = [1, 1, 1]} : vector<18x16x24xbf16> to vector<16x16x24xbf16>
    %35 = vector.extract_strided_slice %33 {offsets = [1, 0, 0], sizes = [16, 16, 24], strides = [1, 1, 1]} : vector<18x16x24xbf16> to vector<16x16x24xbf16>
    %36 = vector.extract_strided_slice %33 {offsets = [2, 0, 0], sizes = [16, 16, 24], strides = [1, 1, 1]} : vector<18x16x24xbf16> to vector<16x16x24xbf16>
    %37 = tpu.concatenate %34, %35, %36 in 2 : vector<16x16x24xbf16>, vector<16x16x24xbf16>, vector<16x16x24xbf16> -> vector<16x16x72xbf16>
    %38 = vector.shape_cast %37 : vector<16x16x72xbf16> to vector<256x72xbf16>
    %c0_44 = arith.constant 0 : index
    %c0_45 = arith.constant 0 : index
    %39 = vector.load %arg5[%c0_44, %c0_45] : memref<72x4xbf16, #tpu.memory_space<vmem>>, vector<72x4xbf16>
    %cst_46 = arith.constant dense<0.000000e+00> : vector<256x4xf32>
    %40 = tpu.matmul %38, %39, %cst_46 {dimension_numbers = #tpu.dot_dimension_numbers<[1], [0], [0], [1], [0, 0, 1, 1], [], []>} : vector<256x72xbf16>, vector<72x4xbf16>, vector<256x4xf32> -> vector<256x4xf32>
    %c0_47 = arith.constant 0 : index
    %c0_48 = arith.constant 0 : index
    %41 = vector.load %arg6[%c0_47, %c0_48] : memref<1x4xf32, #tpu.memory_space<vmem>>, vector<1x4xf32>
    %42 = vector.broadcast %41 : vector<1x4xf32> to vector<256x4xf32>
    %43 = arith.addf %40, %42 : vector<256x4xf32>
    %cst_49 = arith.constant 0.000000e+00 : f32
    %44 = vector.broadcast %cst_49 : f32 to vector<256x4xf32>
    %45 = arith.maximumf %43, %44 : vector<256x4xf32>
    %46 = vector.shape_cast %45 : vector<256x4xf32> to vector<16x16x4xf32>
    %47 = arith.truncf %46 : vector<16x16x4xf32> to vector<16x16x4xbf16>
    %c1_50 = arith.constant 1 : index
    %c1_51 = arith.constant 1 : index
    %c0_52 = arith.constant 0 : index
    %48 = vector.load %arg14[%c1_50, %c1_51, %c0_52] : memref<18x18x4xbf16, #tpu.memory_space<vmem>>, vector<16x16x4xbf16>
    tpu.vector_store %arg14[%c1_50, %c1_51, %c0_52], %47 {strides = array<i32>} : memref<18x18x4xbf16, #tpu.memory_space<vmem>>, vector<16x16x4xbf16>,
    %c0_53 = arith.constant 0 : index
    %c0_54 = arith.constant 0 : index
    %c0_55 = arith.constant 0 : index
    %c0_56 = arith.constant 0 : index
    %49 = vector.load %arg2[%c0_53, %c0_54, %c0_55, %c0_56] : memref<1x18x18x4xbf16, #tpu.memory_space<vmem>>, vector<1x18x18x4xbf16>
    %50 = vector.shape_cast %49 : vector<1x18x18x4xbf16> to vector<18x18x4xbf16>
    %51 = vector.extract_strided_slice %50 {offsets = [0, 0, 0], sizes = [18, 16, 4], strides = [1, 1, 1]} : vector<18x18x4xbf16> to vector<18x16x4xbf16>
    %52 = vector.extract_strided_slice %50 {offsets = [0, 1, 0], sizes = [18, 16, 4], strides = [1, 1, 1]} : vector<18x18x4xbf16> to vector<18x16x4xbf16>
    %53 = vector.extract_strided_slice %50 {offsets = [0, 2, 0], sizes = [18, 16, 4], strides = [1, 1, 1]} : vector<18x18x4xbf16> to vector<18x16x4xbf16>
    %54 = tpu.concatenate %51, %52, %53 in 2 : vector<18x16x4xbf16>, vector<18x16x4xbf16>, vector<18x16x4xbf16> -> vector<18x16x12xbf16>
    %55 = vector.extract_strided_slice %54 {offsets = [0, 0, 0], sizes = [16, 16, 12], strides = [1, 1, 1]} : vector<18x16x12xbf16> to vector<16x16x12xbf16>
    %56 = vector.extract_strided_slice %54 {offsets = [1, 0, 0], sizes = [16, 16, 12], strides = [1, 1, 1]} : vector<18x16x12xbf16> to vector<16x16x12xbf16>
    %57 = vector.extract_strided_slice %54 {offsets = [2, 0, 0], sizes = [16, 16, 12], strides = [1, 1, 1]} : vector<18x16x12xbf16> to vector<16x16x12xbf16>
    %58 = tpu.concatenate %55, %56, %57 in 2 : vector<16x16x12xbf16>, vector<16x16x12xbf16>, vector<16x16x12xbf16> -> vector<16x16x36xbf16>
    %59 = vector.shape_cast %58 : vector<16x16x36xbf16> to vector<256x36xbf16>
    %c0_57 = arith.constant 0 : index
    %c0_58 = arith.constant 0 : index
    %c0_59 = arith.constant 0 : index
    %60 = vector.load %arg14[%c0_57, %c0_58, %c0_59] : memref<18x18x4xbf16, #tpu.memory_space<vmem>>, vector<18x18x4xbf16>
    %61 = vector.extract_strided_slice %60 {offsets = [0, 0, 0], sizes = [18, 16, 4], strides = [1, 1, 1]} : vector<18x18x4xbf16> to vector<18x16x4xbf16>
    %62 = vector.extract_strided_slice %60 {offsets = [0, 1, 0], sizes = [18, 16, 4], strides = [1, 1, 1]} : vector<18x18x4xbf16> to vector<18x16x4xbf16>
    %63 = vector.extract_strided_slice %60 {offsets = [0, 2, 0], sizes = [18, 16, 4], strides = [1, 1, 1]} : vector<18x18x4xbf16> to vector<18x16x4xbf16>
    %64 = tpu.concatenate %61, %62, %63 in 2 : vector<18x16x4xbf16>, vector<18x16x4xbf16>, vector<18x16x4xbf16> -> vector<18x16x12xbf16>
    %65 = vector.extract_strided_slice %64 {offsets = [0, 0, 0], sizes = [16, 16, 12], strides = [1, 1, 1]} : vector<18x16x12xbf16> to vector<16x16x12xbf16>
    %66 = vector.extract_strided_slice %64 {offsets = [1, 0, 0], sizes = [16, 16, 12], strides = [1, 1, 1]} : vector<18x16x12xbf16> to vector<16x16x12xbf16>
    %67 = vector.extract_strided_slice %64 {offsets = [2, 0, 0], sizes = [16, 16, 12], strides = [1, 1, 1]} : vector<18x16x12xbf16> to vector<16x16x12xbf16>
    %68 = tpu.concatenate %65, %66, %67 in 2 : vector<16x16x12xbf16>, vector<16x16x12xbf16>, vector<16x16x12xbf16> -> vector<16x16x36xbf16>
    %69 = vector.shape_cast %68 : vector<16x16x36xbf16> to vector<256x36xbf16>
    %c0_60 = arith.constant 0 : index
    %c0_61 = arith.constant 0 : index
    %70 = vector.load %arg7[%c0_60, %c0_61] : memref<36x4xbf16, #tpu.memory_space<vmem>>, vector<36x4xbf16>
    %cst_62 = arith.constant dense<0.000000e+00> : vector<256x4xf32>
    %71 = tpu.matmul %59, %70, %cst_62 {dimension_numbers = #tpu.dot_dimension_numbers<[1], [0], [0], [1], [0, 0, 1, 1], [], []>} : vector<256x36xbf16>, vector<36x4xbf16>, vector<256x4xf32> -> vector<256x4xf32>
    %c0_63 = arith.constant 0 : index
    %c0_64 = arith.constant 0 : index
    %72 = vector.load %arg8[%c0_63, %c0_64] : memref<36x4xbf16, #tpu.memory_space<vmem>>, vector<36x4xbf16>
    %cst_65 = arith.constant dense<0.000000e+00> : vector<256x4xf32>
    %73 = tpu.matmul %69, %72, %cst_65 {dimension_numbers = #tpu.dot_dimension_numbers<[1], [0], [0], [1], [0, 0, 1, 1], [], []>} : vector<256x36xbf16>, vector<36x4xbf16>, vector<256x4xf32> -> vector<256x4xf32>
    %74 = arith.addf %71, %73 : vector<256x4xf32>
    %c0_66 = arith.constant 0 : index
    %c0_67 = arith.constant 0 : index
    %75 = vector.load %arg9[%c0_66, %c0_67] : memref<1x4xf32, #tpu.memory_space<vmem>>, vector<1x4xf32>
    %76 = vector.broadcast %75 : vector<1x4xf32> to vector<256x4xf32>
    %77 = arith.addf %74, %76 : vector<256x4xf32>
    %cst_68 = arith.constant 0.000000e+00 : f32
    %78 = vector.broadcast %cst_68 : f32 to vector<256x4xf32>
    %79 = arith.maximumf %77, %78 : vector<256x4xf32>
    %80 = vector.shape_cast %79 : vector<256x4xf32> to vector<16x16x4xf32>
    %81 = arith.truncf %80 : vector<16x16x4xf32> to vector<16x16x4xbf16>
    %c1_69 = arith.constant 1 : index
    %c1_70 = arith.constant 1 : index
    %c0_71 = arith.constant 0 : index
    %82 = vector.load %arg14[%c1_69, %c1_70, %c0_71] : memref<18x18x4xbf16, #tpu.memory_space<vmem>>, vector<16x16x4xbf16>
    tpu.vector_store %arg14[%c1_69, %c1_70, %c0_71], %81 {strides = array<i32>} : memref<18x18x4xbf16, #tpu.memory_space<vmem>>, vector<16x16x4xbf16>,
    %c0_72 = arith.constant 0 : index
    %c0_73 = arith.constant 0 : index
    %c0_74 = arith.constant 0 : index
    %83 = vector.load %arg14[%c0_72, %c0_73, %c0_74] : memref<18x18x4xbf16, #tpu.memory_space<vmem>>, vector<18x18x4xbf16>
    %84 = vector.extract_strided_slice %83 {offsets = [0, 0, 0], sizes = [18, 16, 4], strides = [1, 1, 1]} : vector<18x18x4xbf16> to vector<18x16x4xbf16>
    %85 = vector.extract_strided_slice %83 {offsets = [0, 1, 0], sizes = [18, 16, 4], strides = [1, 1, 1]} : vector<18x18x4xbf16> to vector<18x16x4xbf16>
    %86 = vector.extract_strided_slice %83 {offsets = [0, 2, 0], sizes = [18, 16, 4], strides = [1, 1, 1]} : vector<18x18x4xbf16> to vector<18x16x4xbf16>
    %87 = tpu.concatenate %84, %85, %86 in 2 : vector<18x16x4xbf16>, vector<18x16x4xbf16>, vector<18x16x4xbf16> -> vector<18x16x12xbf16>
    %88 = vector.extract_strided_slice %87 {offsets = [0, 0, 0], sizes = [16, 16, 12], strides = [1, 1, 1]} : vector<18x16x12xbf16> to vector<16x16x12xbf16>
    %89 = vector.extract_strided_slice %87 {offsets = [1, 0, 0], sizes = [16, 16, 12], strides = [1, 1, 1]} : vector<18x16x12xbf16> to vector<16x16x12xbf16>
    %90 = vector.extract_strided_slice %87 {offsets = [2, 0, 0], sizes = [16, 16, 12], strides = [1, 1, 1]} : vector<18x16x12xbf16> to vector<16x16x12xbf16>
    %91 = tpu.concatenate %88, %89, %90 in 2 : vector<16x16x12xbf16>, vector<16x16x12xbf16>, vector<16x16x12xbf16> -> vector<16x16x36xbf16>
    %92 = vector.shape_cast %91 : vector<16x16x36xbf16> to vector<256x36xbf16>
    %c0_75 = arith.constant 0 : index
    %c0_76 = arith.constant 0 : index
    %93 = vector.load %arg10[%c0_75, %c0_76] : memref<4x36xbf16, #tpu.memory_space<vmem>>, vector<4x36xbf16>
    %cst_77 = arith.constant dense<0.000000e+00> : vector<4x256xf32>
    %94 = tpu.matmul %93, %92, %cst_77 {dimension_numbers = #tpu.dot_dimension_numbers<[1], [1], [0], [0], [0, 0, 1, 0], [], []>} : vector<4x36xbf16>, vector<256x36xbf16>, vector<4x256xf32> -> vector<4x256xf32>
    %c0_78 = arith.constant 0 : index
    %c0_79 = arith.constant 0 : index
    %95 = vector.load %arg11[%c0_78, %c0_79] : memref<4x1xf32, #tpu.memory_space<vmem>>, vector<4x1xf32>
    %96 = vector.broadcast %95 : vector<4x1xf32> to vector<4x256xf32>
    %97 = arith.addf %94, %96 : vector<4x256xf32>
    %cst_80 = arith.constant 0.000000e+00 : f32
    %98 = vector.broadcast %cst_80 : f32 to vector<4x256xf32>
    %99 = arith.maximumf %97, %98 : vector<4x256xf32>
    %c0_81 = arith.constant 0 : index
    %c0_82 = arith.constant 0 : index
    %c0_83 = arith.constant 0 : index
    %100 = vector.load %arg12[%c0_81, %c0_82, %c0_83] : memref<1x4x256xf32, #tpu.memory_space<vmem>>, vector<1x4x256xf32>
    %101 = vector.shape_cast %100 : vector<1x4x256xf32> to vector<4x256xf32>
    %102 = vector.shape_cast %99 : vector<4x256xf32> to vector<1x4x256xf32>
    tpu.vector_store %arg12[%c0_81, %c0_82, %c0_83], %102 {strides = array<i32>} : memref<1x4x256xf32, #tpu.memory_space<vmem>>, vector<1x4x256xf32>,
    return
  }
  func.func @transform_0(%arg0: i32) -> (i32, i32, i32, i32) {
    %c0_i32 = arith.constant 0 : i32
    %c0_i32_0 = arith.constant 0 : i32
    %c0_i32_1 = arith.constant 0 : i32
    %c0_i32_2 = arith.constant 0 : i32
    return %arg0, %c0_i32, %c0_i32_0, %c0_i32_1 : i32, i32, i32, i32
  }
  func.func @transform_1(%arg0: i32) -> (i32, i32, i32, i32) {
    %c0_i32 = arith.constant 0 : i32
    %c0_i32_0 = arith.constant 0 : i32
    %c0_i32_1 = arith.constant 0 : i32
    %c0_i32_2 = arith.constant 0 : i32
    return %arg0, %c0_i32, %c0_i32_0, %c0_i32_1 : i32, i32, i32, i32
  }
  func.func @transform_2(%arg0: i32) -> (i32, i32) {
    %c0_i32 = arith.constant 0 : i32
    %c0_i32_0 = arith.constant 0 : i32
    %c0_i32_1 = arith.constant 0 : i32
    return %c0_i32, %c0_i32_0 : i32, i32
  }
  func.func @transform_3(%arg0: i32) -> (i32, i32) {
    %c0_i32 = arith.constant 0 : i32
    %c0_i32_0 = arith.constant 0 : i32
    %c0_i32_1 = arith.constant 0 : i32
    return %c0_i32, %c0_i32_0 : i32, i32
  }
  func.func @transform_4(%arg0: i32) -> (i32, i32) {
    %c0_i32 = arith.constant 0 : i32
    %c0_i32_0 = arith.constant 0 : i32
    %c0_i32_1 = arith.constant 0 : i32
    return %c0_i32, %c0_i32_0 : i32, i32
  }
  func.func @transform_5(%arg0: i32) -> (i32, i32) {
    %c0_i32 = arith.constant 0 : i32
    %c0_i32_0 = arith.constant 0 : i32
    %c0_i32_1 = arith.constant 0 : i32
    return %c0_i32, %c0_i32_0 : i32, i32
  }
  func.func @transform_6(%arg0: i32) -> (i32, i32) {
    %c0_i32 = arith.constant 0 : i32
    %c0_i32_0 = arith.constant 0 : i32
    %c0_i32_1 = arith.constant 0 : i32
    return %c0_i32, %c0_i32_0 : i32, i32
  }
  func.func @transform_7(%arg0: i32) -> (i32, i32) {
    %c0_i32 = arith.constant 0 : i32
    %c0_i32_0 = arith.constant 0 : i32
    %c0_i32_1 = arith.constant 0 : i32
    return %c0_i32, %c0_i32_0 : i32, i32
  }
  func.func @transform_8(%arg0: i32) -> (i32, i32) {
    %c0_i32 = arith.constant 0 : i32
    %c0_i32_0 = arith.constant 0 : i32
    %c0_i32_1 = arith.constant 0 : i32
    return %c0_i32, %c0_i32_0 : i32, i32
  }
  func.func @transform_9(%arg0: i32) -> (i32, i32) {
    %c0_i32 = arith.constant 0 : i32
    %c0_i32_0 = arith.constant 0 : i32
    %c0_i32_1 = arith.constant 0 : i32
    return %c0_i32, %c0_i32_0 : i32, i32
  }
  func.func @transform_10(%arg0: i32) -> (i32, i32) {
    %c0_i32 = arith.constant 0 : i32
    %c0_i32_0 = arith.constant 0 : i32
    %c0_i32_1 = arith.constant 0 : i32
    return %c0_i32, %c0_i32_0 : i32, i32
  }
  func.func @transform_11(%arg0: i32) -> (i32, i32, i32) {
    %c0_i32 = arith.constant 0 : i32
    %c0_i32_0 = arith.constant 0 : i32
    %c0_i32_1 = arith.constant 0 : i32
    return %arg0, %c0_i32, %c0_i32_0 : i32, i32, i32
  }
}

</mosaic_0001>

<bundles_post_ra>
// kernel: tpu_custom_call.1
= control target key start
LH: loop header
LB: loop body
LE: loop exit
PB: predicated region body
PF: predicated region fallthrough
CT: control target
= control target key end

     0   :  { %s11887_s0 = inlined_call_operand.vmem [shape: bf16[2,8,8,8], index: 0, kind: input, shape index: {}]   ;;  %s11888_s1 = inlined_call_operand.vmem [shape: bf16[2,18,18,4], index: 1, kind: input, shape index: {}]   ;;  %s11889_s2 = inlined_call_operand.vmem [shape: bf16[16,8], index: 2, kind: input, shape index: {}]   ;;  %s11890_s3 = inlined_call_operand.vmem [shape: bf16[16,8], index: 3, kind: input, shape index: {}]   ;;  %s11891_s4 = inlined_call_operand.vmem [shape: bf16[72,4], index: 4, kind: input, shape index: {}]   ;;  %s11892_s5 = inlined_call_operand.vmem [shape: f32[1,4], index: 5, kind: input, shape index: {}]   ;;  %s11893_s6 = inlined_call_operand.vmem [shape: bf16[36,4], index: 6, kind: input, shape index: {}]   ;;  %s11894_s7 = inlined_call_operand.vmem [shape: bf16[36,4], index: 7, kind: input, shape index: {}]   ;;  %s11895_s8 = inlined_call_operand.vmem [shape: f32[1,4], index: 8, kind: input, shape index: {}]   ;;  %s11896_s9 = inlined_call_operand.vmem [shape: bf16[4,36], index: 9, kind: input, shape index: {}]   ;;  %s11897_s10 = inlined_call_operand.vmem [shape: f32[4,1], index: 10, kind: input, shape index: {}]   ;;  %s11898_s11 = inlined_call_operand.hbm [shape: f32[2,4,256], index: 11, kind: output, shape index: {}]  }
   0x1   :  { %11929 = sst [smem:[#allocation13_spill]] %s11887_s0 }
   0x2   :  { %11930 = sst [smem:[#allocation14_spill]] %s11888_s1 }
   0x3   :  { %11931 = sst [smem:[#allocation15_spill]] %s11889_s2 }
   0x4   :  { %11932 = sst [smem:[#allocation16_spill]] %s11890_s3 }
   0x5   :  { %16 = vsyncpa [#allocation5], 0 }
   0x6   :  { %18 = vsyncpa [#allocation5 + $0x1], 0  ;;  %s8772_s17 = smov 0   ;;  %s8774_s18 = smov 0  }
   0x7   :  { %s8776_s19 = smov 0   ;;  %s8778_s20 = smov 0  }
   0x8 LB: > { %s8793_s21 = sadd.s32 4294967295, %s8687_s20   ;;  %s7648_s22 = sadd.s32 4294967294, %s8687_s20   ;;  %s8687_s20 = sphi %s8778_s20, %s11984_s20   ;;  %s8683_s19 = sphi %s8776_s19, %s11983_s19   ;;  %s8679_s18 = sphi %s8774_s18, %s11982_s18   ;;  %s8675_s17 = sphi %s8772_s17, %s11981_s17  }
   0x9   : > { %s8797_s23 = sadd.s32 1, %s8687_s20   ;;  %s272_s24 = sadd.s32 1, %s8683_s19 }
   0xa   : > { %s269_s25 = ssub.s32 %s8687_s20, %s8797_s23  ;;  %p282_p0 = scmp.ne.s32.totalorder %s8683_s19, %s8679_s18 }
   0xb   : > { %p270_p1 = scmp.eq.s32.totalorder %s269_s25, 0  ;;  %p283_p2 = scmp.eq.s32.totalorder %s8793_s21, 1 }
   0xc   : > { %p288_p3 = scmp.ne.s32.totalorder %s8679_s18, %s8675_s17  ;;  %p289_p4 = scmp.eq.s32.totalorder %s7648_s22, 1 }
   0xd   : > { %s8808_s26 = scalar_select %p270_p1, %s8683_s19, %s272_s24  }
   0xe   : > { %p8810_p5 = por %p283_p2, %p282_p0  ;;  %p8814_p6 = por %p289_p4, %p288_p3 }
   0xf   : > { %11933 = sst [smem:[#allocation7_spill]] %s8808_s26  ;;  %p7651_p7 = scmp.ge.s32.totalorder %s8687_s20, 1 }
  0x10   : > { %p350_p8 = scmp.lt.s32.totalorder %s8687_s20, 3 }
  0x12   : > { %p351_p9 = pnand %p7651_p7, %p350_p8 }
  0x14   : > { %354 = sbr.rel (%p351_p9) target bundleno = 2610 (0xa32), region = 64 }
  0x1b   : > { %p395_p10 = scmp.lt.s32.totalorder %s8793_s21, 1  ;;  %v8689_v0 = vmov 0.0   ;;  %vm8690_vm0 = vmmov 0   ;;  %vm667_vm1 = vcmask 1043456   ;;  %s11936_s0 = sld [smem:[#allocation13_spill]]  ;;  %vm663_vm2 = vcmask 64512  }
  0x1c   : > { %8167 = vmatprep.subr.bf16.mxu1 %v8689_v0  ;;  %8169 = vmatprep.mubr.msk.bf16.mxu1 %vm8690_vm0, %v8689_v0  ;;  %s11937_s3 = sld [smem:[#allocation16_spill]]  ;;  %s11938_s1 = sld [smem:[#allocation14_spill]]  ;;  %v8691_v30 = vmov 1983009808   ;;  %v1025_v32 = vlaneseq  ;;  %vm1353_vm3 = vcmask 130048   ;;  %vm1355_vm4 = vcmask 195584  }
  0x1d   : > { %s396_s29 = scalar_select %p395_p10, %s8793_s21, 1  ;;  %8203 = vmatprep.subr.bf16.mxu0 %v8689_v0  ;;  %8205 = vmatprep.mubr.msk.bf16.mxu0 %vm8690_vm0, %v8689_v0  ;;  %v1023_v31 = vunpack.c.l.s4 %v8691_v30  ;;  %vm1357_vm5 = vcmask 261120   ;;  %vm1359_vm6 = vcmask 326656   ;;  %vm1361_vm7 = vcmask 392192  }
  0x1e   : > { %v1026_v38 = vshrl.u32 %v1025_v32, 7  ;;  %s11905_s13 = smov 32   ;;  %s11903_s14 = smov 16   ;;  %vm1363_vm8 = vcmask 457728   ;;  %vm1365_vm9 = vcmask 523264   ;;  %vm1367_vm10 = vcmask 588800  }
  0x1f   : > { %s7974_s30 = sshll.u32 %s396_s29, 5  ;;  %s8382_s12 = smul.u32 216, %s396_s29  ;;  %v1024_v37 = vunpack.c.0.s8 %v1023_v31  ;;  %vm1369_vm11 = vcmask 654336   ;;  %vm1371_vm12 = vcmask 719872   ;;  %vm1373_vm13 = vcmask 785408  }
  0x20   : > { %s11907_s16 = smov 40   ;;  %s11909_s22 = smov 56   ;;  %vm1375_vm14 = vcmask 850944   ;;  %vm1377_vm15 = vcmask 916480  }
  0x21   : > { %s8827_s15 = scalar_lea.vmem %s11936_s0, %s7974_s30  ;;  %v8872_v43 = vsub.s32 %v1024_v37, %v1026_v38  ;;  %s11901_s30 = smov 24  }
  0x22   : > { %v648_v1 = vld [vmem:[%s8827_s15] sm:$0xf]  ;;  %v649_v2 = vld [vmem:[%s8827_s15 + $0x4] sm:$0xf]  ;;  %v650_v5 = vld [vmem:[%s8827_s15 + $0x8] sm:$0xf]  ;;  %s8841_s29 = scalar_lea.vmem %s11938_s1, %s8382_s12 }
  0x23   : > { %v669_v3 = vsel %vm667_vm1, %v648_v1, 0  ;;  %v8446_v4 = vld [vmem:[%s11937_s3] sm:$0xff]   ;;  %v651_v6 = vld [vmem:[%s8827_s15 + $0xc] sm:$0xf]  ;;  %v654_v7 = vld [vmem:[%s8827_s15 + $0x18] sm:$0xf] }
  0x24   : > { %8168 = vmatpush3.bf16.msra.mxu1 %v669_v3  ;;  %v713_v8 = vsel %vm667_vm1, %v649_v2, 0  ;;  %v933_v9 = vsel %vm667_vm1, %v654_v7, 0  ;;  %v757_v10 = vsel %vm667_vm1, %v650_v5, 0  ;;  %v801_v11 = vsel %vm667_vm1, %v651_v6, 0  ;;  %v652_v12 = vld [vmem:[%s8827_s15 + $0x10] sm:$0xf] }
  0x25   : > { %8173 = vmatprep.subr.bf16.mxu1 %v8689_v0  ;;  %8204 = vmatpush3.bf16.msra.mxu0 %v933_v9  ;;  %v845_v13 = vsel %vm667_vm1, %v652_v12, 0  ;;  %v653_v14 = vld [vmem:[%s8827_s15 + $0x14] sm:$0xf]  ;;  %v655_v16 = vld [vmem:[%s8827_s15 + $0x1c] sm:$0xf]  ;;  %s11899_s12 = smov 8  }
  0x26   : > { %8215 = vmatprep.subr.bf16.mxu0 %v8689_v0  ;;  %v889_v15 = vsel %vm667_vm1, %v653_v14, 0  ;;  %v977_v17 = vsel %vm667_vm1, %v655_v16, 0  ;;  %v8692_v12 = vmov 1934713408   ;;  %s11911_s15 = smov 48   ;;  %s11920_s24 = smov 64  }
  0x27   : > { %8170 = vmatmul.mubr.msk.bf16.vlgmr.msra.gmra.mrb[0].mxu1 %vm663_vm2, %v8446_v4  ;;  %s11913_s25 = smov 72   ;;  %s11939_s2 = sld [smem:[#allocation15_spill]] }
  0x28   : > { %8174 = vmatpush3.bf16.msra.mxu1 %v713_v8  ;;  %8175 = vmatprep.mubr.msk.bf16.mxu1 %vm8690_vm0, %v8689_v0  ;;  %s11953_s0 = smov 104   ;;  %s11954_s1 = smov 96  }
  0x29   : > { %8179 = vmatprep.subr.bf16.mxu1 %v8689_v0  ;;  %8206 = vmatmul.mubr.msk.bf16.vlgmr.msra.gmra.mrb[0].mxu0 %vm663_vm2, %v8446_v4  ;;  %s11956_s3 = smov 80   ;;  %s11957_s26 = smov 64  }
  0x2a   : > { %8217 = vmatprep.mubr.msk.bf16.mxu0 %vm8690_vm0, %v8689_v0 }
  0x2f   : > { %8176 = vmatmul.mubr.msk.bf16.vlgmr.msra.gmra.mrb[4].mxu1 %vm663_vm2, %v8446_v4 }
  0x30   : > { %8180 = vmatpush3.bf16.msra.mxu1 %v757_v10  ;;  %8181 = vmatprep.mubr.msk.bf16.mxu1 %vm8690_vm0, %v8689_v0 }
  0x31   : > { %8185 = vmatprep.subr.bf16.mxu1 %v8689_v0 }
  0x37   : > { %8182 = vmatmul.mubr.msk.bf16.vlgmr.msra.gmra.mrb[8].mxu1 %vm663_vm2, %v8446_v4 }
  0x38   : > { %8186 = vmatpush3.bf16.msra.mxu1 %v801_v11  ;;  %8187 = vmatprep.mubr.msk.bf16.mxu1 %vm8690_vm0, %v8689_v0 }
  0x39   : > { %8191 = vmatprep.subr.bf16.mxu1 %v8689_v0 }
  0x3f   : > { %8188 = vmatmul.mubr.msk.bf16.vlgmr.msra.gmra.mrb[12].mxu1 %vm663_vm2, %v8446_v4 }
  0x40   : > { %8192 = vmatpush3.bf16.msra.mxu1 %v845_v13  ;;  %8193 = vmatprep.mubr.msk.bf16.mxu1 %vm8690_vm0, %v8689_v0  ;;  %v1087_v13 = vunpack.c.l.s4 %v8692_v12 }
  0x41   : > { %8197 = vmatprep.subr.bf16.mxu1 %v8689_v0 }
  0x42   : > { %v1088_v16 = vunpack.c.0.s8 %v1087_v13 }
  0x47   : > { %8194 = vmatmul.mubr.msk.bf16.vlgmr.msra.gmra.mrb[16].mxu1 %vm663_vm2, %v8446_v4 }
  0x48   : > { %8198 = vmatpush3.bf16.msra.mxu1 %v889_v15  ;;  %8199 = vmatprep.mubr.msk.bf16.mxu1 %vm8690_vm0, %v8689_v0 }
  0x49   : > { %8209 = vmatprep.subr.bf16.mxu1 %v8689_v0 }
  0x4f   : > { %8200 = vmatmul.mubr.msk.bf16.vlgmr.msra.gmra.mrb[20].mxu1 %vm663_vm2, %v8446_v4 }
  0x50   : > { %8210 = vmatpush3.bf16.msra.mxu1 %v977_v17  ;;  %8211 = vmatprep.mubr.msk.bf16.mxu1 %vm8690_vm0, %v8689_v0  ;;  %vm1379_vm0 = vcmask 982016  }
  0x57   : > { %8212 = vmatmul.mubr.msk.bf16.vlgmr.msra.gmra.mrb[24].mxu1 %vm663_vm2, %v8446_v4 }
  0xfa   : > { %v705_v18 = vpop.f32.mrb[0].mxu1 }
  0xfb   : > { %v8171_v19 = vpop.f32.mrb[1].mxu1 }
  0xfc   : > { %v708_v20 = vpop.f32.mrb[2].mxu1  ;;  %v8868_v21 = vpop.f32.mrb[0].mxu0  ;;  %v8886_v19 = vsub.s32 %v1088_v16, %v1026_v38 }
  0xfd   : > { %v8172_v22 = vpop.f32.mrb[3].mxu1  ;;  %v8207_v23 = vpop.f32.mrb[1].mxu0 }
  0xfe   : > { %v8870_v24 = vpop.f32.mrb[2].mxu0 }
  0xff   : > { %v8208_v25 = vpop.f32.mrb[3].mxu0 }
 0x102   : > { %v749_v26 = vpop.f32.mrb[4].mxu1 }
 0x103   : > { %v8177_v27 = vpop.f32.mrb[5].mxu1 }
 0x104   : > { %v752_v28 = vpop.f32.mrb[6].mxu1 }
 0x105   : > { %v8178_v29 = vpop.f32.mrb[7].mxu1 }
 0x10a   : > { %v793_v33 = vpop.f32.mrb[8].mxu1 }
 0x10b   : > { %v1020_v34 = vcombine.low %v705_v18, %v793_v33  ;;  %v1021_v35 = vcombine.high %v705_v18, %v793_v33  ;;  %v8183_v36 = vpop.f32.mrb[9].mxu1 }
 0x10c   : > { %v796_v39 = vpop.f32.mrb[10].mxu1 }
 0x10d   : > { %v1156_v40 = vcombine.low %v708_v20, %v796_v39  ;;  %v1157_v41 = vcombine.high %v708_v20, %v796_v39  ;;  %v8184_v42 = vpop.f32.mrb[11].mxu1  ;;  %v1035_v48 = vrot.slane %v1021_v35, %v8872_v43  ;;  %v1028_v55 = vrot.slane %v1020_v34, %v8872_v43 }
 0x10f   : > { %v1164_v56 = vrot.slane %v1156_v40, %v8872_v43  ;;  %v1171_v57 = vrot.slane %v1157_v41, %v8872_v43 }
 0x112   : > { %v837_v44 = vpop.f32.mrb[12].mxu1 }
 0x113   : > { %v1036_v45 = vcombine.low %v749_v26, %v837_v44  ;;  %v1037_v46 = vcombine.high %v749_v26, %v837_v44  ;;  %v8189_v47 = vpop.f32.mrb[13].mxu1 }
 0x114   : > { %v840_v49 = vpop.f32.mrb[14].mxu1 }
 0x115   : > { %v1044_v50 = vrot.slane %v1036_v45, %v8872_v43  ;;  %v1051_v51 = vrot.slane %v1037_v46, %v8872_v43  ;;  %v1172_v52 = vcombine.low %v752_v28, %v840_v49  ;;  %v1173_v53 = vcombine.high %v752_v28, %v840_v49  ;;  %v8190_v54 = vpop.f32.mrb[15].mxu1 }
 0x117   : > { %v1100_v58 = vcombine.low %v1035_v48, %v1051_v51  ;;  %v1101_v59 = vcombine.high %v1035_v48, %v1051_v51  ;;  %v1180_v60 = vrot.slane %v1172_v52, %v8872_v43  ;;  %v1187_v61 = vrot.slane %v1173_v53, %v8872_v43 }
 0x118   : > { %v1085_v62 = vcombine.high %v1028_v55, %v1044_v50  ;;  %v1084_v63 = vcombine.low %v1028_v55, %v1044_v50 }
 0x119   : > { %v1220_v0 = vcombine.low %v1164_v56, %v1180_v60  ;;  %v1221_v1 = vcombine.high %v1164_v56, %v1180_v60  ;;  %v1236_v2 = vcombine.low %v1171_v57, %v1187_v61  ;;  %v1237_v3 = vcombine.high %v1171_v57, %v1187_v61 }
 0x11a   : > { %v881_v4 = vpop.f32.mrb[16].mxu1  ;;  %v1099_v25 = vrot.slane %v1085_v62, %v8886_v19  ;;  %v8890_v26 = vrot.slane %v1084_v63, %v8886_v19  ;;  %v1108_v28 = vrot.slane %v1100_v58, %v8886_v19  ;;  %v1115_v29 = vrot.slane %v1101_v59, %v8886_v19 }
 0x11b   : > { %v1052_v5 = vcombine.low %v881_v4, %v8868_v21  ;;  %v1053_v6 = vcombine.high %v881_v4, %v8868_v21  ;;  %v8195_v7 = vpop.f32.mrb[17].mxu1  ;;  %v8896_v30 = vrot.slane %v1220_v0, %v8886_v19  ;;  %v1235_v39 = vrot.slane %v1221_v1, %v8886_v19 }
 0x11c   : > { %v884_v8 = vpop.f32.mrb[18].mxu1  ;;  %v1244_v47 = vrot.slane %v1236_v2, %v8886_v19  ;;  %v1251_v48 = vrot.slane %v1237_v3, %v8886_v19 }
 0x11d   : > { %v1188_v9 = vcombine.low %v884_v8, %v8870_v24  ;;  %v1189_v10 = vcombine.high %v884_v8, %v8870_v24  ;;  %v8196_v11 = vpop.f32.mrb[19].mxu1  ;;  %v1067_v24 = vrot.slane %v1053_v6, %v8872_v43  ;;  %v1060_v36 = vrot.slane %v1052_v5, %v8872_v43 }
 0x11f   : > { %v1196_v37 = vrot.slane %v1188_v9, %v8872_v43  ;;  %v1203_v38 = vrot.slane %v1189_v10, %v8872_v43 }
 0x122   : > { %v925_v14 = vpop.f32.mrb[20].mxu1 }
 0x123   : > { %v8201_v15 = vpop.f32.mrb[21].mxu1 }
 0x124   : > { %v928_v17 = vpop.f32.mrb[22].mxu1 }
 0x125   : > { %v8202_v18 = vpop.f32.mrb[23].mxu1 }
 0x12a   : > { %v1013_v20 = vpop.f32.mrb[24].mxu1 }
 0x12b   : > { %v1068_v22 = vcombine.low %v925_v14, %v1013_v20  ;;  %v1069_v23 = vcombine.high %v925_v14, %v1013_v20  ;;  %v8213_v21 = vpop.f32.mrb[25].mxu1 }
 0x12c   : > { %v1016_v27 = vpop.f32.mrb[26].mxu1 }
 0x12d   : > { %v1076_v31 = vrot.slane %v1068_v22, %v8872_v43  ;;  %v1083_v32 = vrot.slane %v1069_v23, %v8872_v43  ;;  %v1204_v33 = vcombine.low %v928_v17, %v1016_v27  ;;  %v1205_v34 = vcombine.high %v928_v17, %v1016_v27  ;;  %v8214_v35 = vpop.f32.mrb[27].mxu1 }
 0x12f   : > { %v1132_v40 = vcombine.low %v1067_v24, %v1083_v32  ;;  %v1133_v41 = vcombine.high %v1067_v24, %v1083_v32  ;;  %v1212_v42 = vrot.slane %v1204_v33, %v8872_v43  ;;  %v1219_v44 = vrot.slane %v1205_v34, %v8872_v43 }
 0x130   : > { %v1117_v45 = vcombine.high %v1060_v36, %v1076_v31  ;;  %v1116_v46 = vcombine.low %v1060_v36, %v1076_v31 }
 0x131   : > { %v1252_v49 = vcombine.low %v1196_v37, %v1212_v42  ;;  %v1253_v50 = vcombine.high %v1196_v37, %v1212_v42  ;;  %v1268_v51 = vcombine.low %v1203_v38, %v1219_v44  ;;  %v1269_v52 = vcombine.high %v1203_v38, %v1219_v44 }
 0x132   : > { %v1131_v53 = vrot.slane %v1117_v45, %v8886_v19  ;;  %v1124_v54 = vrot.slane %v1116_v46, %v8886_v19  ;;  %v1140_v55 = vrot.slane %v1132_v40, %v8886_v19  ;;  %v1147_v56 = vrot.slane %v1133_v41, %v8886_v19 }
 0x133   : > { %v1260_v57 = vrot.slane %v1252_v49, %v8886_v19  ;;  %v1267_v58 = vrot.slane %v1253_v50, %v8886_v19  ;;  %v1276_v59 = vrot.slane %v1268_v51, %v8886_v19  ;;  %v1283_v60 = vrot.slane %v1269_v52, %v8886_v19  ;;  %v424_v51 = vld [vmem:[#allocation2 + $0x18] sm:$0x1]  ;;  %v427_v52 = vld [vmem:[#allocation2 + $0x24] sm:$0x1] }
 0x134   : > { %v1151_v61 = vcombine.high %v1099_v25, %v1131_v53  ;;  %v1149_v62 = vcombine.high %v8890_v26, %v1124_v54  ;;  %v1148_v63 = vcombine.low %v8890_v26, %v1124_v54  ;;  %v1152_v0 = vcombine.low %v1108_v28, %v1140_v55 }
 0x135   : > { %v1150_v1 = vcombine.low %v1099_v25, %v1131_v53  ;;  %v1154_v2 = vcombine.low %v1115_v29, %v1147_v56  ;;  %v1153_v3 = vcombine.high %v1108_v28, %v1140_v55  ;;  %v1155_v4 = vcombine.high %v1115_v29, %v1147_v56 }
 0x136   : > { %1301 = vrot.lane.b32.xlu1 %v1151_v61, %s11901_s30  ;;  %1293 = vrot.lane.b32.xlu0 %v1149_v62, %s11899_s12  ;;  %v1284_v5 = vcombine.low %v8896_v30, %v1260_v57  ;;  %v1285_v6 = vcombine.high %v8896_v30, %v1260_v57  ;;  %v1286_v7 = vcombine.low %v1235_v39, %v1267_v58  ;;  %s11918_s12 = smov 80   ;;  %s11919_s30 = smov 88   ;;  %v430_v57 = vld [vmem:[#allocation2 + $0x30] sm:$0x1]  ;;  %v436_v61 = vld [vmem:[#allocation2 + $0x48] sm:$0x1] }
 0x137   : > { %v1287_v8 = vcombine.high %v1235_v39, %v1267_v58  ;;  %v1288_v9 = vcombine.low %v1244_v47, %v1276_v59  ;;  %v1289_v10 = vcombine.high %v1244_v47, %v1276_v59  ;;  %v1290_v11 = vcombine.low %v1251_v48, %v1283_v60  ;;  %v8447_v47 = vld [vmem:[%s11939_s2] sm:$0xff]   ;;  %s11955_s2 = smov 88  }
 0x138   : > { %v1291_v12 = vcombine.high %v1251_v48, %v1283_v60  ;;  %v421_v48 = vld [vmem:[#allocation2 + $0xc] sm:$0x1]  ;;  %v433_v60 = vld [vmem:[#allocation2 + $0x3c] sm:$0x1] }
 0x13a   : > { %1305 = vrot.lane.b32.xlu1 %v1152_v0, %s11905_s13  ;;  %1297 = vrot.lane.b32.xlu0 %v1150_v1, %s11903_s14  ;;  %s11915_s14 = smov 96   ;;  %s11916_s13 = smov 104   ;;  %v439_v1 = vld [vmem:[#allocation2 + $0x54] sm:$0x1] }
 0x13e   : > { %1313 = vrot.lane.b32.xlu1 %v1154_v2, %s11911_s15  ;;  %1309 = vrot.lane.b32.xlu0 %v1153_v3, %s11907_s16  ;;  %s11917_s16 = smov 112   ;;  %v442_v3 = vld [vmem:[#allocation2 + $0x60] sm:$0x1]  ;;  %s11942_s15 = smov 72  }
 0x142   : > { %1317 = vrot.lane.b32.xlu0 %v1155_v4, %s11909_s22  ;;  %1321 = vrot.lane.b32.xlu1 %v1284_v5, %s11920_s24  ;;  %s8707_s22 = smov 120  }
 0x146   : > { %1325 = vrot.lane.b32.xlu0 %v1285_v6, %s11913_s25  ;;  %1329 = vrot.lane.b32.xlu1 %v1286_v7, %s11918_s12  ;;  %s11943_s25 = smov 48   ;;  %v477_v6 = vld [vmem:[#allocation2 + $0x14] sm:$0x1]  ;;  %v480_v7 = vld [vmem:[#allocation2 + $0x20] sm:$0x1] }
 0x14a   : > { %1333 = vrot.lane.b32.xlu0 %v1287_v8, %s11919_s30  ;;  %1337 = vrot.lane.b32.xlu1 %v1288_v9, %s11915_s14  ;;  %v483_v8 = vld [vmem:[#allocation2 + $0x2c] sm:$0x1] }
 0x14e   : > { %1341 = vrot.lane.b32.xlu0 %v1289_v10, %s11916_s13  ;;  %1345 = vrot.lane.b32.xlu1 %v1290_v11, %s11917_s16 }
 0x152   : > { %1349 = vrot.lane.b32.xlu0 %v1291_v12, %s8707_s22  ;;  %v486_v12 = vld [vmem:[#allocation2 + $0x38] sm:$0x1] }
 0x1a8   : > { %v1302_v13 = vpop.permute.xlu1 %1301  ;;  %v1294_v14 = vpop.permute.xlu0 %1293 }
 0x1a9   : > { %v1352_v15 = vsel %vm663_vm2, %v1148_v63, %v1294_v14  ;;  %v489_v14 = vld [vmem:[#allocation2 + $0x44] sm:$0x1] }
 0x1ac   : > { %v1306_v16 = vpop.permute.xlu1 %1305  ;;  %v1298_v17 = vpop.permute.xlu0 %1297 }
 0x1ad   : > { %v1354_v18 = vsel %vm1353_vm3, %v1352_v15, %v1298_v17  ;;  %v492_v15 = vld [vmem:[#allocation2 + $0x50] sm:$0x1] }
 0x1ae   : > { %v1356_v20 = vsel %vm1355_vm4, %v1354_v18, %v1302_v13  ;;  %v495_v18 = vld [vmem:[#allocation2 + $0x5c] sm:$0x1] }
 0x1af   : > { %v1358_v22 = vsel %vm1357_vm5, %v1356_v20, %v1306_v16  ;;  %vm409_vm5 = vcmask 57344   ;;  %v498_v20 = vld [vmem:[#allocation2 + $0x68] sm:$0x1] }
 0x1b0   : > { %v1314_v23 = vpop.permute.xlu1 %1313  ;;  %v1310_v21 = vpop.permute.xlu0 %1309 }
 0x1b1   : > { %v1360_v25 = vsel %vm1359_vm6, %v1358_v22, %v1310_v21  ;;  %vm416_vm6 = vsmask.f32 256  ;;  %v445_v21 = vld [vmem:[#allocation2 + $0x6c] sm:$0x1] }
 0x1b2   : > { %v1362_v24 = vsel %vm1361_vm7, %v1360_v25, %v1314_v23  ;;  %v448_v25 = vld [vmem:[#allocation2 + $0x78] sm:$0x1] }
 0x1b4   : > { %v1318_v26 = vpop.permute.xlu0 %1317  ;;  %v1322_v27 = vpop.permute.xlu1 %1321 }
 0x1b5   : > { %v1364_v28 = vsel %vm1363_vm8, %v1362_v24, %v1318_v26  ;;  %vm8949_vm8 = vmand %vm409_vm5, %vm416_vm6  ;;  %v451_v26 = vld [vmem:[#allocation2 + $0x84] sm:$0x1] }
 0x1b6   : > { %v1366_v29 = vsel %vm1365_vm9, %v1364_v28, %v1322_v27  ;;  %v422_v54 = vsel %vm8949_vm8, 0, %v421_v48  ;;  %v425_v55 = vsel %vm8949_vm8, 0, %v424_v51  ;;  %v428_v56 = vsel %vm8949_vm8, 0, %v427_v52  ;;  %v513_v48 = vld [vmem:[#allocation2 + $0xa4] sm:$0x1] }
 0x1b7   : > { %423 = vst [vmem:[#allocation2 + $0xc] sm:$0x1] %v422_v54  ;;  %426 = vst [vmem:[#allocation2 + $0x18] sm:$0x1] %v425_v55  ;;  %v431_v59 = vsel %vm8949_vm8, 0, %v430_v57  ;;  %v434_v63 = vsel %vm8949_vm8, 0, %v433_v60 }
 0x1b8   : > { %v1326_v30 = vpop.permute.xlu0 %1325  ;;  %v1330_v31 = vpop.permute.xlu1 %1329  ;;  %429 = vst [vmem:[#allocation2 + $0x24] sm:$0x1] %v428_v56  ;;  %432 = vst [vmem:[#allocation2 + $0x30] sm:$0x1] %v431_v59  ;;  %v437_v0 = vsel %vm8949_vm8, 0, %v436_v61  ;;  %v440_v2 = vsel %vm8949_vm8, 0, %v439_v1 }
 0x1b9   : > { %v1368_v32 = vsel %vm1367_vm10, %v1366_v29, %v1326_v30  ;;  %435 = vst [vmem:[#allocation2 + $0x3c] sm:$0x1] %v434_v63  ;;  %438 = vst [vmem:[#allocation2 + $0x48] sm:$0x1] %v437_v0  ;;  %v443_v4 = vsel %vm8949_vm8, 0, %v442_v3  ;;  %v446_v24 = vsel %vm8949_vm8, 0, %v445_v21 }
 0x1ba   : > { %v1370_v33 = vsel %vm1369_vm11, %v1368_v32, %v1330_v31  ;;  %441 = vst [vmem:[#allocation2 + $0x54] sm:$0x1] %v440_v2  ;;  %444 = vst [vmem:[#allocation2 + $0x60] sm:$0x1] %v443_v4  ;;  %vm472_vm9 = vsmask.f32 7938 }
 0x1bb   : > { %vm9001_vm11 = vmand %vm409_vm5, %vm472_vm9  ;;  %v449_v27 = vsel %vm8949_vm8, 0, %v448_v25  ;;  %v452_v28 = vsel %vm8949_vm8, 0, %v451_v26  ;;  %v454_v29 = vld [vmem:[#allocation2 + $0x90] sm:$0x1]  ;;  %447 = vst [vmem:[#allocation2 + $0x6c] sm:$0x1] %v446_v24 }
 0x1bc   : > { %v1334_v34 = vpop.permute.xlu0 %1333  ;;  %v1338_v35 = vpop.permute.xlu1 %1337  ;;  %v478_v9 = vsel %vm9001_vm11, 0, %v477_v6  ;;  %v481_v10 = vsel %vm9001_vm11, 0, %v480_v7  ;;  %v484_v11 = vsel %vm9001_vm11, 0, %v483_v8  ;;  %v487_v13 = vsel %vm9001_vm11, 0, %v486_v12  ;;  %450 = vst [vmem:[#allocation2 + $0x78] sm:$0x1] %v449_v27 }
 0x1bd   : > { %v1372_v36 = vsel %vm1371_vm12, %v1370_v33, %v1334_v34  ;;  %479 = vst [vmem:[#allocation2 + $0x14] sm:$0x1] %v478_v9  ;;  %482 = vst [vmem:[#allocation2 + $0x20] sm:$0x1] %v481_v10  ;;  %v490_v16 = vsel %vm9001_vm11, 0, %v489_v14  ;;  %v493_v17 = vsel %vm9001_vm11, 0, %v492_v15 }
 0x1be   : > { %v1374_v37 = vsel %vm1373_vm13, %v1372_v36, %v1338_v35  ;;  %485 = vst [vmem:[#allocation2 + $0x2c] sm:$0x1] %v484_v11  ;;  %488 = vst [vmem:[#allocation2 + $0x38] sm:$0x1] %v487_v13  ;;  %v496_v22 = vsel %vm9001_vm11, 0, %v495_v18  ;;  %v499_v23 = vsel %vm9001_vm11, 0, %v498_v20 }
 0x1bf   : > { %491 = vst [vmem:[#allocation2 + $0x44] sm:$0x1] %v490_v16  ;;  %494 = vst [vmem:[#allocation2 + $0x50] sm:$0x1] %v493_v17  ;;  %v455_v30 = vsel %vm8949_vm8, 0, %v454_v29  ;;  %v514_v52 = vsel %vm9001_vm11, 0, %v513_v48 }
 0x1c0   : > { %v1342_v38 = vpop.permute.xlu0 %1341  ;;  %v1346_v40 = vpop.permute.xlu1 %1345  ;;  %497 = vst [vmem:[#allocation2 + $0x5c] sm:$0x1] %v496_v22  ;;  %500 = vst [vmem:[#allocation2 + $0x68] sm:$0x1] %v499_v23  ;;  %v457_v31 = vld [vmem:[#allocation2 + $0x9c] sm:$0x1] }
 0x1c1   : > { %v1376_v39 = vsel %vm1375_vm14, %v1374_v37, %v1342_v38  ;;  %453 = vst [vmem:[#allocation2 + $0x84] sm:$0x1] %v452_v28  ;;  %v460_v32 = vld [vmem:[#allocation2 + $0xa8] sm:$0x1]  ;;  %456 = vst [vmem:[#allocation2 + $0x90] sm:$0x1] %v455_v30 }
 0x1c2   : > { %v1378_v41 = vsel %vm1377_vm15, %v1376_v39, %v1346_v40  ;;  %v458_v33 = vsel %vm8949_vm8, 0, %v457_v31  ;;  %v461_v34 = vsel %vm8949_vm8, 0, %v460_v32  ;;  %v463_v35 = vld [vmem:[#allocation2 + $0xb4] sm:$0x1]  ;;  %v466_v36 = vld [vmem:[#allocation2 + $0xc0] sm:$0x1] }
 0x1c3   : > { %459 = vst [vmem:[#allocation2 + $0x9c] sm:$0x1] %v458_v33  ;;  %462 = vst [vmem:[#allocation2 + $0xa8] sm:$0x1] %v461_v34  ;;  %v464_v37 = vsel %vm8949_vm8, 0, %v463_v35  ;;  %v467_v38 = vsel %vm8949_vm8, 0, %v466_v36 }
 0x1c4   : > { %v1350_v42 = vpop.permute.xlu0 %1349  ;;  %465 = vst [vmem:[#allocation2 + $0xb4] sm:$0x1] %v464_v37  ;;  %468 = vst [vmem:[#allocation2 + $0xc0] sm:$0x1] %v467_v38  ;;  %v501_v39 = vld [vmem:[#allocation2 + $0x74] sm:$0x1] }
 0x1c5   : > { %v1380_v44 = vsel %vm1379_vm0, %v1378_v41, %v1350_v42  ;;  %v504_v40 = vld [vmem:[#allocation2 + $0x80] sm:$0x1]  ;;  %v507_v41 = vld [vmem:[#allocation2 + $0x8c] sm:$0x1]  ;;  %v502_v42 = vsel %vm9001_vm11, 0, %v501_v39  ;;  %vm406_vm12 = vcmask 60416  }
 0x1c6   : > { %v1381_v45 = vpack.c.bf16 %v1380_v44, %v1380_v44  ;;  %v505_v44 = vsel %vm9001_vm11, 0, %v504_v40  ;;  %503 = vst [vmem:[#allocation2 + $0x74] sm:$0x1] %v502_v42  ;;  %v516_v51 = vld [vmem:[#allocation2 + $0xb0] sm:$0x1]  ;;  %vm9135_vm13 = vmand %vm406_vm12, %vm472_vm9  ;;  %vm3056_vm0 = vcmask 1046528  }
 0x1c7   : > { %506 = vst [vmem:[#allocation2 + $0x80] sm:$0x1] %v505_v44  ;;  %v519_v54 = vld [vmem:[#allocation2 + $0xbc] sm:$0x1]  ;;  %v522_v55 = vld [vmem:[#allocation2 + $0xc8] sm:$0x1] }
 0x1c8   : > { %v1393_v46 = vsel %vm667_vm1, %v1381_v45, 0  ;;  %v508_v45 = vsel %vm9001_vm11, 0, %v507_v41  ;;  %515 = vst [vmem:[#allocation2 + $0xa4] sm:$0x1] %v514_v52  ;;  %v520_v56 = vsel %vm9001_vm11, 0, %v519_v54  ;;  %v523_v57 = vsel %vm9001_vm11, 0, %v522_v55 }
 0x1c9   : > { %8216 = vmatpush3.bf16.msra.mxu0 %v1393_v46  ;;  %v510_v46 = vld [vmem:[#allocation2 + $0x98] sm:$0x1]  ;;  %509 = vst [vmem:[#allocation2 + $0x8c] sm:$0x1] %v508_v45  ;;  %521 = vst [vmem:[#allocation2 + $0xbc] sm:$0x1] %v520_v56 }
 0x1ca   : > { %524 = vst [vmem:[#allocation2 + $0xc8] sm:$0x1] %v523_v57  ;;  %vm2168_vm14 = vsmask.f32 4368 }
 0x1cb   : > { %vm9245_vm15 = vmor %vm416_vm6, %vm2168_vm14  ;;  %vm528_vm14 = vcmask 27648  }
 0x1cc   : > { %8218 = vmatmul.mubr.msk.bf16.vlgmr.msra.gmra.mrb[4].mxu0 %vm663_vm2, %v8447_v47  ;;  %v511_v47 = vsel %vm9001_vm11, 0, %v510_v46 }
 0x1cd   : > { %512 = vst [vmem:[#allocation2 + $0x98] sm:$0x1] %v511_v47 }
 0x29f   : > { %v8945_v49 = vpop.f32.mrb[4].mxu0 }
 0x2a0   : > { %1444 = vrot.lane.b32.xlu0 %v8945_v49, %s11917_s16  ;;  %1438 = vrot.lane.b32.xlu1 %v8945_v49, %s8707_s22  ;;  %v8219_v53 = vpop.f32.mrb[5].mxu0  ;;  %s11946_s16 = smov 40  }
 0x2a1   : > { %v8963_v58 = vpop.f32.mrb[6].mxu0  ;;  %v517_v53 = vsel %vm9001_vm11, 0, %v516_v51 }
 0x2a2   : > { %v8220_v62 = vpop.f32.mrb[7].mxu0  ;;  %518 = vst [vmem:[#allocation2 + $0xb0] sm:$0x1] %v517_v53 }
 0x2a4   : > { %1456 = vrot.lane.b32.xlu0 %v8945_v49, %s11915_s14  ;;  %1450 = vrot.lane.b32.xlu1 %v8945_v49, %s11916_s13  ;;  %s11944_s14 = smov 56   ;;  %s11945_s13 = smov 32  }
 0x2a8   : > { %1468 = vrot.lane.b32.xlu0 %v8945_v49, %s11918_s12  ;;  %1462 = vrot.lane.b32.xlu1 %v8945_v49, %s11919_s30  ;;  %s11947_s12 = smov 16   ;;  %s11948_s30 = smov 24  }
 0x2ac   : > { %1480 = vrot.lane.b32.xlu0 %v8945_v49, %s11920_s24  ;;  %1474 = vrot.lane.b32.xlu1 %v8945_v49, %s11942_s15  ;;  %s11951_s24 = smov 8  }
 0x2b0   : > { %1492 = vrot.lane.b32.xlu0 %v8945_v49, %s11943_s25  ;;  %1486 = vrot.lane.b32.xlu1 %v8945_v49, %s11944_s14 }
 0x2b4   : > { %1504 = vrot.lane.b32.xlu0 %v8945_v49, %s11945_s13  ;;  %1498 = vrot.lane.b32.xlu1 %v8945_v49, %s11946_s16 }
 0x2b8   : > { %1516 = vrot.lane.b32.xlu0 %v8945_v49, %s11947_s12  ;;  %1510 = vrot.lane.b32.xlu1 %v8945_v49, %s11948_s30 }
 0x2bc   : > { %1522 = vrot.lane.b32.xlu1 %v8945_v49, %s11951_s24  ;;  %1440 = vrot.lane.b32.xlu0 %v8963_v58, %s8707_s22  ;;  %s11952_s22 = smov 112  }
 0x2c0   : > { %1446 = vrot.lane.b32.xlu1 %v8963_v58, %s11952_s22  ;;  %1452 = vrot.lane.b32.xlu0 %v8963_v58, %s11953_s0 }
 0x2c4   : > { %1458 = vrot.lane.b32.xlu1 %v8963_v58, %s11954_s1  ;;  %1464 = vrot.lane.b32.xlu0 %v8963_v58, %s11955_s2  ;;  %s8071_s1 = sshll.u32 %s8793_s21, 7  ;;  %s8711_s21 = smov [#allocation4]  }
 0x2c8   : > { %1470 = vrot.lane.b32.xlu1 %v8963_v58, %s11956_s3  ;;  %1476 = vrot.lane.b32.xlu0 %v8963_v58, %s11942_s15  ;;  %s8629_s15 = sshll.u32 %s8711_s21, 4  ;;  %s8630_s15 = int_to_ptr.vmem [resolvable:$false] %s8629_s15 }
 0x2cc   : > { %1482 = vrot.lane.b32.xlu1 %v8963_v58, %s11957_s26  ;;  %1488 = vrot.lane.b32.xlu0 %v8963_v58, %s11944_s14 }
 0x2d0   : > { %1494 = vrot.lane.b32.xlu1 %v8963_v58, %s11943_s25  ;;  %1500 = vrot.lane.b32.xlu0 %v8963_v58, %s11946_s16 }
 0x2d4   : > { %1506 = vrot.lane.b32.xlu1 %v8963_v58, %s11945_s13  ;;  %1512 = vrot.lane.b32.xlu0 %v8963_v58, %s11948_s30 }
 0x2d8   : > { %1518 = vrot.lane.b32.xlu1 %v8963_v58, %s11947_s12  ;;  %1524 = vrot.lane.b32.xlu0 %v8963_v58, %s11951_s24 }
 0x312   : > { %v1445_v59 = vpop.permute.xlu0 %1444  ;;  %v1439_v60 = vpop.permute.xlu1 %1438 }
 0x313   : > { %v1528_v0 = vcombine.low %v8945_v49, %v1445_v59  ;;  %v1529_v4 = vcombine.high %v8945_v49, %v1445_v59 }
 0x315   : > { %v1536_v9 = vrot.slane %v1528_v0, %v8872_v43  ;;  %v1543_v15 = vrot.slane %v1529_v4, %v8872_v43 }
 0x316   : > { %v1457_v61 = vpop.permute.xlu0 %1456  ;;  %v1451_v62 = vpop.permute.xlu1 %1450 }
 0x317   : > { %v1544_v63 = vcombine.low %v1439_v60, %v1451_v62  ;;  %v1545_v1 = vcombine.high %v1439_v60, %v1451_v62 }
 0x319   : > { %v1552_v6 = vrot.slane %v1544_v63, %v8872_v43  ;;  %v1559_v10 = vrot.slane %v1545_v1, %v8872_v43 }
 0x31a   : > { %v1469_v2 = vpop.permute.xlu0 %1468  ;;  %v1463_v3 = vpop.permute.xlu1 %1462 }
 0x31b   : > { %v1560_v7 = vcombine.low %v1457_v61, %v1469_v2  ;;  %v1561_v8 = vcombine.high %v1457_v61, %v1469_v2  ;;  %v1592_v16 = vcombine.low %v1536_v9, %v1552_v6  ;;  %v1593_v17 = vcombine.high %v1536_v9, %v1552_v6 }
 0x31c   : > { %v1608_v23 = vcombine.low %v1543_v15, %v1559_v10  ;;  %v1609_v21 = vcombine.high %v1543_v15, %v1559_v10 }
 0x31d   : > { %v1568_v18 = vrot.slane %v1560_v7, %v8872_v43  ;;  %v1575_v49 = vrot.slane %v1561_v8, %v8872_v43  ;;  %v1600_v30 = vrot.slane %v1592_v16, %v8886_v19  ;;  %v1607_v31 = vrot.slane %v1593_v17, %v8886_v19 }
 0x31e   : > { %v1481_v11 = vpop.permute.xlu0 %1480  ;;  %v1475_v12 = vpop.permute.xlu1 %1474  ;;  %v1616_v38 = vrot.slane %v1608_v23, %v8886_v19  ;;  %v1623_v39 = vrot.slane %v1609_v21, %v8886_v19  ;;  %v2500_v23 = vld [vmem:[#allocation2 + $0x18] sm:$0xf] }
 0x31f   : > { %v1576_v13 = vcombine.low %v1463_v3, %v1475_v12  ;;  %v1577_v14 = vcombine.high %v1463_v3, %v1475_v12 }
 0x321   : > { %v1584_v20 = vrot.slane %v1576_v13, %v8872_v43  ;;  %v1591_v22 = vrot.slane %v1577_v14, %v8872_v43 }
 0x322   : > { %v1493_v25 = vpop.permute.xlu0 %1492  ;;  %v9095_v26 = vpop.permute.xlu1 %1486 }
 0x323   : > { %v1624_v24 = vcombine.low %v1568_v18, %v1584_v20  ;;  %v1625_v27 = vcombine.high %v1568_v18, %v1584_v20  ;;  %v1640_v28 = vcombine.low %v1575_v49, %v1591_v22  ;;  %v1641_v29 = vcombine.high %v1575_v49, %v1591_v22  ;;  %v2493_v22 = vld [vmem:[#allocation2 + $0xc] sm:$0xf] }
 0x324   : > { %v1664_v32 = vcombine.low %v1481_v11, %v1493_v25  ;;  %v1665_v33 = vcombine.high %v1481_v11, %v1493_v25 }
 0x325   : > { %v1632_v34 = vrot.slane %v1624_v24, %v8886_v19  ;;  %v1639_v35 = vrot.slane %v1625_v27, %v8886_v19  ;;  %v1648_v36 = vrot.slane %v1640_v28, %v8886_v19  ;;  %v1655_v37 = vrot.slane %v1641_v29, %v8886_v19  ;;  %v2507_v28 = vld [vmem:[#allocation2 + $0x24] sm:$0xf] }
 0x326   : > { %v9106_v40 = vrot.slane %v1664_v32, %v8872_v43  ;;  %v9109_v41 = vrot.slane %v1665_v33, %v8872_v43  ;;  %v9111_v42 = vpop.permute.xlu1 %1498  ;;  %v9113_v54 = vpop.permute.xlu0 %1504  ;;  %v2514_v33 = vld [vmem:[#allocation2 + $0x30] sm:$0xf] }
 0x327   : > { %v1656_v44 = vcombine.low %v1600_v30, %v1632_v34  ;;  %v1657_v45 = vcombine.high %v1600_v30, %v1632_v34  ;;  %v1658_v46 = vcombine.low %v1607_v31, %v1639_v35  ;;  %v1659_v47 = vcombine.high %v1607_v31, %v1639_v35 }
 0x328   : > { %v1660_v48 = vcombine.low %v1616_v38, %v1648_v36  ;;  %v1661_v51 = vcombine.high %v1616_v38, %v1648_v36  ;;  %v1662_v52 = vcombine.low %v1623_v39, %v1655_v37  ;;  %v1663_v53 = vcombine.high %v1623_v39, %v1655_v37  ;;  %v2521_v38 = vld [vmem:[#allocation2 + $0x3c] sm:$0xf]  ;;  %v2528_v39 = vld [vmem:[#allocation2 + $0x48] sm:$0xf] }
 0x329   : > { %v7975_v55 = vpack.c.bf16 %v1656_v44, %v1656_v44  ;;  %v7977_v56 = vpack.c.bf16 %v1657_v45, %v1657_v45  ;;  %v7979_v57 = vpack.c.bf16 %v1658_v46, %v1658_v46  ;;  %v7981_v59 = vpack.c.bf16 %v1659_v47, %v1659_v47 }
 0x32a   : > { %v7983_v60 = vpack.c.bf16 %v1660_v48, %v1660_v48  ;;  %v7985_v61 = vpack.c.bf16 %v1661_v51, %v1661_v51  ;;  %v9115_v62 = vpack.c.bf16 %v1662_v52, %v1662_v52  ;;  %v9117_v63 = vpack.c.bf16 %v1663_v53, %v1663_v53  ;;  %v9119_v0 = vpop.permute.xlu1 %1510  ;;  %v9129_v18 = vpop.permute.xlu0 %1516 }
 0x32b   : > { %v2171_v1 = vshrl.u32 %v7975_v55, 16  ;;  %v2174_v2 = vshll.u32 %v7975_v55, 16  ;;  %v2188_v3 = vshrl.u32 %v7977_v56, 16  ;;  %v2191_v4 = vshll.u32 %v7977_v56, 16 }
 0x32c   : > { %v2205_v6 = vshrl.u32 %v7979_v57, 16  ;;  %v2208_v7 = vshll.u32 %v7979_v57, 16  ;;  %v2222_v8 = vshrl.u32 %v7981_v59, 16  ;;  %v2225_v9 = vshll.u32 %v7981_v59, 16 }
 0x32d   : > { %v9121_v10 = vrot.slane %v2171_v1, 7  ;;  %v9123_v11 = vrot.slane %v2188_v3, 7  ;;  %v2239_v12 = vshrl.u32 %v7983_v60, 16  ;;  %v2242_v13 = vshll.u32 %v7983_v60, 16 }
 0x32e   : > { %v9125_v14 = vrot.slane %v2205_v6, 7  ;;  %v9127_v15 = vrot.slane %v2222_v8, 7  ;;  %v2256_v16 = vshrl.u32 %v7985_v61, 16  ;;  %v2259_v17 = vshll.u32 %v7985_v61, 16  ;;  %v9131_v49 = vpop.permute.xlu1 %1522  ;;  %v1441_v61 = vpop.permute.xlu0 %1440 }
 0x32f   : > { %v2176_v21 = vor.u32 %v2174_v2, %v9121_v10  ;;  %v2177_v25 = vrot.slane %v9121_v10, 4  ;;  %v2193_v24 = vor.u32 %v2191_v4, %v9123_v11  ;;  %v2194_v27 = vrot.slane %v9123_v11, 4 }
 0x330   : > { %v2210_v29 = vor.u32 %v2208_v7, %v9125_v14  ;;  %v2211_v30 = vrot.slane %v9125_v14, 4  ;;  %v2227_v31 = vor.u32 %v2225_v9, %v9127_v15  ;;  %v2228_v32 = vrot.slane %v9127_v15, 4  ;;  %v2532_v15 = vld [vmem:[#allocation2 + $0x50] sm:$0x1] }
 0x331   : > { %v9147_v34 = vrot.slane %v2239_v12, 7  ;;  %v9149_v35 = vrot.slane %v2256_v16, 7  ;;  %v2273_v36 = vshrl.u32 %v9115_v62, 16  ;;  %v2276_v37 = vshll.u32 %v9115_v62, 16  ;;  %v2535_v62 = vld [vmem:[#allocation2 + $0x54] sm:$0xf] }
 0x332   : > { %v2290_v44 = vshrl.u32 %v9117_v63, 16  ;;  %v2293_v45 = vshll.u32 %v9117_v63, 16  ;;  %v2494_v46 = vsel %vm9135_vm13, %v2176_v21, %v2493_v22  ;;  %v2501_v47 = vsel %vm9135_vm13, %v2193_v24, %v2500_v23  ;;  %v9159_v48 = vpop.permute.xlu1 %1446  ;;  %v2542_v63 = vld [vmem:[#allocation2 + $0x60] sm:$0xf] }
 0x333   : > { %v2244_v51 = vor.u32 %v2242_v13, %v9147_v34  ;;  %v2245_v52 = vrot.slane %v9147_v34, 4  ;;  %v2261_v53 = vor.u32 %v2259_v17, %v9149_v35  ;;  %v2262_v55 = vrot.slane %v9149_v35, 4  ;;  %2495 = vst [vmem:[#allocation2 + $0xc] sm:$0xf] %v2494_v46  ;;  %2502 = vst [vmem:[#allocation2 + $0x18] sm:$0xf] %v2501_v47 }
 0x334   : > { %v9165_v56 = vrot.slane %v2273_v36, 7  ;;  %v9167_v57 = vrot.slane %v2290_v44, 7  ;;  %v2508_v59 = vsel %vm9135_vm13, %v2210_v29, %v2507_v28  ;;  %v2515_v60 = vsel %vm9135_vm13, %v2227_v31, %v2514_v33  ;;  %v2546_v35 = vld [vmem:[#allocation2 + $0x68] sm:$0x1] }
 0x335   : > { %2509 = vst [vmem:[#allocation2 + $0x24] sm:$0xf] %v2508_v59  ;;  %2516 = vst [vmem:[#allocation2 + $0x30] sm:$0xf] %v2515_v60  ;;  %v2522_v1 = vsel %vm9135_vm13, %v2244_v51, %v2521_v38  ;;  %v2529_v2 = vsel %vm9135_vm13, %v2261_v53, %v2528_v39  ;;  %v1680_v3 = vcombine.low %v9095_v26, %v9111_v42 }
 0x336   : > { %v1681_v4 = vcombine.high %v9095_v26, %v9111_v42  ;;  %v2278_v6 = vor.u32 %v2276_v37, %v9165_v56  ;;  %v2279_v7 = vrot.slane %v9165_v56, 4  ;;  %v2295_v8 = vor.u32 %v2293_v45, %v9167_v57  ;;  %2523 = vst [vmem:[#allocation2 + $0x3c] sm:$0xf] %v2522_v1  ;;  %2530 = vst [vmem:[#allocation2 + $0x48] sm:$0xf] %v2529_v2  ;;  %v9185_v12 = vpop.permute.xlu1 %1458  ;;  %v1453_v37 = vpop.permute.xlu0 %1452 }
 0x337   : > { %v2296_v9 = vrot.slane %v9167_v57, 4  ;;  %v1688_v13 = vrot.slane %v1680_v3, %v8872_v43  ;;  %v1696_v17 = vcombine.low %v9113_v54, %v9129_v18  ;;  %v1697_v26 = vcombine.high %v9113_v54, %v9129_v18 }
 0x338   : > { %v1695_v16 = vrot.slane %v1681_v4, %v8872_v43  ;;  %v2536_v42 = vsel %vm9135_vm13, %v2278_v6, %v2535_v62  ;;  %v2543_v22 = vsel %vm9135_vm13, %v2295_v8, %v2542_v63  ;;  %v1712_v23 = vcombine.low %v9119_v0, %v9131_v49 }
 0x339   : > { %v1713_v21 = vcombine.high %v9119_v0, %v9131_v49  ;;  %2537 = vst [vmem:[#allocation2 + $0x54] sm:$0xf] %v2536_v42  ;;  %2544 = vst [vmem:[#allocation2 + $0x60] sm:$0xf] %v2543_v22  ;;  %v1728_v24 = vcombine.low %v9106_v40, %v1688_v13  ;;  %v1729_v28 = vcombine.high %v9106_v40, %v1688_v13 }
 0x33a   : > { %v1744_v54 = vcombine.low %v9109_v41, %v1695_v16  ;;  %v1745_v18 = vcombine.high %v9109_v41, %v1695_v16  ;;  %v1704_v29 = vrot.slane %v1696_v17, %v8872_v43  ;;  %v1711_v31 = vrot.slane %v1697_v26, %v8872_v43  ;;  %v9213_v46 = vpop.permute.xlu1 %1470  ;;  %v9235_v42 = vpop.permute.xlu0 %1464 }
 0x33b   : > { %v1720_v33 = vrot.slane %v1712_v23, %v8872_v43  ;;  %v1727_v36 = vrot.slane %v1713_v21, %v8872_v43  ;;  %v1736_v0 = vrot.slane %v1728_v24, %v8886_v19  ;;  %v1743_v49 = vrot.slane %v1729_v28, %v8886_v19 }
 0x33c   : > { %v1752_v38 = vrot.slane %v1744_v54, %v8886_v19  ;;  %v1759_v40 = vrot.slane %v1745_v18, %v8886_v19  ;;  %v1800_v47 = vcombine.low %v8963_v58, %v9159_v48  ;;  %v1801_v51 = vcombine.high %v8963_v58, %v9159_v48 }
 0x33d   : > { %v1760_v39 = vcombine.low %v1704_v29, %v1720_v33  ;;  %v1761_v41 = vcombine.high %v1704_v29, %v1720_v33  ;;  %v1776_v44 = vcombine.low %v1711_v31, %v1727_v36  ;;  %v1777_v45 = vcombine.high %v1711_v31, %v1727_v36 }
 0x33e   : > { %v1816_v53 = vcombine.low %v1441_v61, %v1453_v37  ;;  %v1817_v59 = vcombine.high %v1441_v61, %v1453_v37  ;;  %v9224_v2 = vrot.slane %v1800_v47, %v8872_v43  ;;  %v9227_v3 = vrot.slane %v1801_v51, %v8872_v43  ;;  %v9237_v28 = vpop.permute.xlu1 %1482 }
 0x33f   : > { %v1768_v60 = vrot.slane %v1760_v39, %v8886_v19  ;;  %v1775_v62 = vrot.slane %v1761_v41, %v8886_v19  ;;  %v1784_v63 = vrot.slane %v1776_v44, %v8886_v19  ;;  %v1791_v1 = vrot.slane %v1777_v45, %v8886_v19 }
 0x340   : > { %v9230_v4 = vrot.slane %v1816_v53, %v8872_v43  ;;  %v9233_v58 = vrot.slane %v1817_v59, %v8872_v43  ;;  %v11960_v51 = vmov 0 }
 0x341   : > { %v1792_v48 = vcombine.low %v1736_v0, %v1768_v60  ;;  %v1793_v61 = vcombine.high %v1736_v0, %v1768_v60  ;;  %v1794_v6 = vcombine.low %v1743_v49, %v1775_v62  ;;  %v1795_v8 = vcombine.high %v1743_v49, %v1775_v62 }
 0x342   : > { %v1796_v13 = vcombine.low %v1752_v38, %v1784_v63  ;;  %v1797_v16 = vcombine.high %v1752_v38, %v1784_v63  ;;  %v1798_v17 = vcombine.low %v1759_v40, %v1791_v1  ;;  %v1799_v26 = vcombine.high %v1759_v40, %v1791_v1  ;;  %v9249_v63 = vpop.permute.xlu0 %1476 }
 0x343   : > { %v7976_v22 = vpack.c.bf16 %v1792_v48, %v1792_v48  ;;  %v7978_v23 = vpack.c.bf16 %v1793_v61, %v1793_v61  ;;  %v7980_v21 = vpack.c.bf16 %v1794_v6, %v1794_v6  ;;  %v7982_v24 = vpack.c.bf16 %v1795_v8, %v1795_v8  ;;  %v9251_v8 = vpop.permute.xlu1 %1494 }
 0x344   : > { %v7984_v54 = vpack.c.bf16 %v1796_v13, %v1796_v13  ;;  %v7986_v18 = vpack.c.bf16 %v1797_v16, %v1797_v16  ;;  %v9239_v29 = vpack.c.bf16 %v1798_v17, %v1798_v17  ;;  %v9241_v31 = vpack.c.bf16 %v1799_v26, %v1799_v26 }
 0x345   : > { %v2179_v33 = vshrl.u32 %v7976_v22, 16  ;;  %v2182_v36 = vshll.u32 %v7976_v22, 16  ;;  %v2196_v37 = vshrl.u32 %v7978_v23, 16  ;;  %v2199_v0 = vshll.u32 %v7978_v23, 16  ;;  %v2497_v22 = vld [vmem:[#allocation2 + $0x14] sm:$0x1] }
 0x346   : > { %v2213_v49 = vshrl.u32 %v7980_v21, 16  ;;  %v2216_v38 = vshll.u32 %v7980_v21, 16  ;;  %v2230_v40 = vshrl.u32 %v7982_v24, 16  ;;  %v2233_v39 = vshll.u32 %v7982_v24, 16 }
 0x347   : > { %v2181_v41 = vrot.slane %v2179_v33, 7  ;;  %v2198_v44 = vrot.slane %v2196_v37, 7  ;;  %v2247_v45 = vshrl.u32 %v7984_v54, 16  ;;  %v2250_v47 = vshll.u32 %v7984_v54, 16  ;;  %v2511_v33 = vld [vmem:[#allocation2 + $0x2c] sm:$0x1] }
 0x348   : > { %v11961_v51 = vsel %vm9245_vm15, 4294967295, %v11960_v51  ;;  %v2215_v53 = vrot.slane %v2213_v49, 7  ;;  %v2232_v59 = vrot.slane %v2230_v40, 7  ;;  %v2264_v60 = vshrl.u32 %v7986_v18, 16  ;;  %v2525_v37 = vld [vmem:[#allocation2 + $0x44] sm:$0x1] }
 0x349   : > { %11962 = vst [vmem:[#allocation8_spill] sm:$0xff] %v11961_v51  ;;  %v2267_v62 = vshll.u32 %v7986_v18, 16  ;;  %v2184_v1 = vor.u32 %v2182_v36, %v2181_v41  ;;  %v2186_v48 = vrot.slane %v2181_v41, 4  ;;  %v2201_v61 = vor.u32 %v2199_v0, %v2198_v44  ;;  %v2504_v18 = vld [vmem:[#allocation2 + $0x20] sm:$0x1] }
 0x34a   : > { %v2203_v6 = vrot.slane %v2198_v44, 4  ;;  %v2218_v13 = vor.u32 %v2216_v38, %v2215_v53  ;;  %v2220_v16 = vrot.slane %v2215_v53, 4  ;;  %v2235_v17 = vor.u32 %v2233_v39, %v2232_v59  ;;  %v9279_v39 = vpop.permute.xlu0 %1488  ;;  %v2539_v41 = vld [vmem:[#allocation2 + $0x5c] sm:$0x1]  ;;  %v1507_v53 = vpop.permute.xlu1 %1506 }
 0x34b   : > { %v2237_v26 = vrot.slane %v2232_v59, 4  ;;  %v2185_v23 = vsel %vm9245_vm15, %v2177_v25, %v2184_v1  ;;  %v2202_v21 = vsel %vm9245_vm15, %v2194_v27, %v2201_v61  ;;  %v2249_v24 = vrot.slane %v2247_v45, 7  ;;  %v2518_v27 = vld [vmem:[#allocation2 + $0x38] sm:$0x1] }
 0x34c   : > { %v2266_v54 = vrot.slane %v2264_v60, 7  ;;  %v2219_v36 = vsel %vm9245_vm15, %v2211_v30, %v2218_v13  ;;  %v2236_v10 = vsel %vm9245_vm15, %v2228_v32, %v2235_v17  ;;  %v2281_v25 = vshrl.u32 %v9239_v29, 16  ;;  %2496 = vst.msk [vmem:[#allocation2 + $0x10] sm:$0xf] %vm406_vm12, %v2185_v23  ;;  %2503 = vst.msk [vmem:[#allocation2 + $0x1c] sm:$0xf] %vm406_vm12, %v2202_v21 }
 0x34d   : > { %v2284_v11 = vshll.u32 %v9239_v29, 16  ;;  %v2252_v0 = vor.u32 %v2250_v47, %v2249_v24  ;;  %v2254_v14 = vrot.slane %v2249_v24, 4  ;;  %2510 = vst.msk [vmem:[#allocation2 + $0x28] sm:$0xf] %vm406_vm12, %v2219_v36  ;;  %2517 = vst.msk [vmem:[#allocation2 + $0x34] sm:$0xf] %vm406_vm12, %v2236_v10  ;;  %v2498_v40 = vsel %vm8949_vm8, %v2186_v48, %v2497_v22 }
 0x34e   : > { %v2269_v49 = vor.u32 %v2267_v62, %v2266_v54  ;;  %v2271_v38 = vrot.slane %v2266_v54, 4  ;;  %v2283_v30 = vrot.slane %v2281_v25, 7  ;;  %v2298_v32 = vshrl.u32 %v9241_v31, 16  ;;  %2499 = vst [vmem:[#allocation2 + $0x14] sm:$0x1] %v2498_v40  ;;  %v1501_v21 = vpop.permute.xlu0 %1500  ;;  %v1519_v24 = vpop.permute.xlu1 %1518 }
 0x34f   : > { %v2301_v29 = vshll.u32 %v9241_v31, 16  ;;  %v2253_v44 = vsel %vm9245_vm15, %v2245_v52, %v2252_v0  ;;  %v2505_v31 = vsel %vm8949_vm8, %v2203_v6, %v2504_v18  ;;  %v2512_v47 = vsel %vm8949_vm8, %v2220_v16, %v2511_v33 }
 0x350   : > { %v2270_v45 = vsel %vm9245_vm15, %v2262_v55, %v2269_v49  ;;  %v2286_v59 = vor.u32 %v2284_v11, %v2283_v30  ;;  %v2288_v60 = vrot.slane %v2283_v30, 4  ;;  %v2300_v62 = vrot.slane %v2298_v32, 7  ;;  %2506 = vst [vmem:[#allocation2 + $0x20] sm:$0x1] %v2505_v31  ;;  %2513 = vst [vmem:[#allocation2 + $0x2c] sm:$0x1] %v2512_v47 }
 0x351   : > { %v2519_v34 = vsel %vm8949_vm8, %v2237_v26, %v2518_v27  ;;  %2524 = vst.msk [vmem:[#allocation2 + $0x40] sm:$0xf] %vm406_vm12, %v2253_v44  ;;  %2531 = vst.msk [vmem:[#allocation2 + $0x4c] sm:$0xf] %vm406_vm12, %v2270_v45  ;;  %v2526_v52 = vsel %vm8949_vm8, %v2254_v14, %v2525_v37  ;;  %v2533_v55 = vsel %vm8949_vm8, %v2271_v38, %v2532_v15 }
 0x352   : > { %2520 = vst [vmem:[#allocation2 + $0x38] sm:$0x1] %v2519_v34  ;;  %v1864_v1 = vcombine.low %v9224_v2, %v9230_v4  ;;  %v1865_v48 = vcombine.high %v9224_v2, %v9230_v4  ;;  %v2287_v61 = vsel %vm9245_vm15, %v2279_v7, %v2286_v59  ;;  %v2303_v6 = vor.u32 %v2301_v29, %v2300_v62 }
 0x353   : > { %v2305_v13 = vrot.slane %v2300_v62, 4  ;;  %2527 = vst [vmem:[#allocation2 + $0x44] sm:$0x1] %v2526_v52  ;;  %2534 = vst [vmem:[#allocation2 + $0x50] sm:$0x1] %v2533_v55  ;;  %v2540_v16 = vsel %vm8949_vm8, %v2288_v60, %v2539_v41  ;;  %v1880_v56 = vcombine.low %v9227_v3, %v9233_v58  ;;  %v1881_v7 = vcombine.high %v9227_v3, %v9233_v58 }
 0x354   : > { %2538 = vst.msk [vmem:[#allocation2 + $0x58] sm:$0xf] %vm406_vm12, %v2287_v61  ;;  %2541 = vst [vmem:[#allocation2 + $0x5c] sm:$0x1] %v2540_v16  ;;  %v1872_v17 = vrot.slane %v1864_v1, %v8886_v19  ;;  %v1879_v26 = vrot.slane %v1865_v48, %v8886_v19  ;;  %v2304_v2 = vsel %vm9245_vm15, %v2296_v9, %v2303_v6 }
 0x355   : > { %v2547_v4 = vsel %vm8949_vm8, %v2305_v13, %v2546_v35  ;;  %v1832_v22 = vcombine.low %v9185_v12, %v9213_v46  ;;  %v1833_v23 = vcombine.high %v9185_v12, %v9213_v46  ;;  %2545 = vst.msk [vmem:[#allocation2 + $0x64] sm:$0xf] %vm406_vm12, %v2304_v2  ;;  %v1888_v3 = vrot.slane %v1880_v56, %v8886_v19 }
 0x356   : > { %2548 = vst [vmem:[#allocation2 + $0x68] sm:$0x1] %v2547_v4  ;;  %v1895_v57 = vrot.slane %v1881_v7, %v8886_v19  ;;  %v1848_v9 = vcombine.low %v9235_v42, %v9249_v63  ;;  %v1849_v58 = vcombine.high %v9235_v42, %v9249_v63  ;;  %v1936_v12 = vcombine.low %v9237_v28, %v9251_v8 }
 0x357   : > { %v1840_v54 = vrot.slane %v1832_v22, %v8872_v43  ;;  %v1847_v18 = vrot.slane %v1833_v23, %v8872_v43  ;;  %v1937_v46 = vcombine.high %v9237_v28, %v9251_v8  ;;  %v1952_v10 = vcombine.low %v9279_v39, %v1501_v21 }
 0x358   : > { %v1856_v33 = vrot.slane %v1848_v9, %v8872_v43  ;;  %v1863_v36 = vrot.slane %v1849_v58, %v8872_v43  ;;  %v1953_v25 = vcombine.high %v9279_v39, %v1501_v21  ;;  %v9346_v42 = vrot.slane %v1936_v12, %v8872_v43  ;;  %v9387_v12 = vpop.permute.xlu0 %1512 }
 0x359   : > { %v9349_v63 = vrot.slane %v1937_v46, %v8872_v43  ;;  %v1968_v11 = vcombine.low %v1507_v53, %v1519_v24  ;;  %v1969_v27 = vcombine.high %v1507_v53, %v1519_v24  ;;  %v9352_v8 = vrot.slane %v1952_v10, %v8872_v43  ;;  %v2549_v46 = vld [vmem:[#allocation2 + $0x6c] sm:$0xf] }
 0x35a   : > { %v1896_v37 = vcombine.low %v1840_v54, %v1856_v33  ;;  %v1897_v0 = vcombine.high %v1840_v54, %v1856_v33  ;;  %v1912_v14 = vcombine.low %v1847_v18, %v1863_v36  ;;  %v1913_v28 = vcombine.high %v1847_v18, %v1863_v36  ;;  %v2556_v33 = vld [vmem:[#allocation2 + $0x78] sm:$0xf] }
 0x35b   : > { %v9355_v49 = vrot.slane %v1953_v25, %v8872_v43  ;;  %v9358_v38 = vrot.slane %v1968_v11, %v8872_v43  ;;  %v9361_v15 = vrot.slane %v1969_v27, %v8872_v43  ;;  %v2000_v39 = vcombine.low %v9346_v42, %v9352_v8  ;;  %v2563_v27 = vld [vmem:[#allocation2 + $0x84] sm:$0xf]  ;;  %v9477_v20 = vld [vmem:[#allocation2 + $0x5c] ss:$0 sps:$4 sm:$0x11]  }
 0x35c   : > { %v1904_v30 = vrot.slane %v1896_v37, %v8886_v19  ;;  %v1911_v32 = vrot.slane %v1897_v0, %v8886_v19  ;;  %v1920_v29 = vrot.slane %v1912_v14, %v8886_v19  ;;  %v1927_v40 = vrot.slane %v1913_v28, %v8886_v19 }
 0x35d   : > { %v2001_v41 = vcombine.high %v9346_v42, %v9352_v8  ;;  %v2016_v44 = vcombine.low %v9349_v63, %v9355_v49  ;;  %v2017_v45 = vcombine.high %v9349_v63, %v9355_v49  ;;  %v9449_v42 = vld [vmem:[#allocation2 + $0x3c] sm:$0xff]   ;;  %v9471_v63 = vld [vmem:[#allocation2 + $0x38] ss:$0 sps:$4 sm:$0x11]  }
 0x35e   : > { %v1928_v31 = vcombine.low %v1872_v17, %v1904_v30  ;;  %v1929_v47 = vcombine.high %v1872_v17, %v1904_v30  ;;  %v1930_v53 = vcombine.low %v1879_v26, %v1911_v32  ;;  %v1931_v59 = vcombine.high %v1879_v26, %v1911_v32  ;;  %v2570_v30 = vld [vmem:[#allocation2 + $0x90] sm:$0xf] }
 0x35f   : > { %v1932_v60 = vcombine.low %v1888_v3, %v1920_v29  ;;  %v1933_v62 = vcombine.high %v1888_v3, %v1920_v29  ;;  %v1934_v34 = vcombine.low %v1895_v57, %v1927_v40  ;;  %v1935_v35 = vcombine.high %v1895_v57, %v1927_v40 }
 0x360   : > { %v7991_v52 = vpack.c.bf16 %v1928_v31, %v1928_v31  ;;  %v7993_v55 = vpack.c.bf16 %v1929_v47, %v1929_v47  ;;  %v7995_v1 = vpack.c.bf16 %v1930_v53, %v1930_v53  ;;  %v7997_v48 = vpack.c.bf16 %v1931_v59, %v1931_v59  ;;  %v2577_v47 = vld [vmem:[#allocation2 + $0x9c] sm:$0xf]  ;;  %v2584_v53 = vld [vmem:[#allocation2 + $0xa8] sm:$0xf] }
 0x361   : > { %v7999_v61 = vpack.c.bf16 %v1932_v60, %v1932_v60  ;;  %v8001_v6 = vpack.c.bf16 %v1933_v62, %v1933_v62  ;;  %v9375_v13 = vpack.c.bf16 %v1934_v34, %v1934_v34  ;;  %v9377_v16 = vpack.c.bf16 %v1935_v35, %v1935_v35  ;;  %v2591_v35 = vld [vmem:[#allocation2 + $0xb4] sm:$0xf] }
 0x362   : > { %v2307_v56 = vshrl.u32 %v7991_v52, 16  ;;  %v2310_v7 = vshll.u32 %v7991_v52, 16  ;;  %v2324_v2 = vshrl.u32 %v7993_v55, 16  ;;  %v2327_v17 = vshll.u32 %v7993_v55, 16  ;;  %v2598_v52 = vld [vmem:[#allocation2 + $0xc0] sm:$0xf] }
 0x363   : > { %v2341_v4 = vshrl.u32 %v7995_v1, 16  ;;  %v2344_v26 = vshll.u32 %v7995_v1, 16  ;;  %v2358_v22 = vshrl.u32 %v7997_v48, 16  ;;  %v2361_v23 = vshll.u32 %v7997_v48, 16 }
 0x364   : > { %v9379_v21 = vrot.slane %v2307_v56, 7  ;;  %v9381_v3 = vrot.slane %v2324_v2, 7  ;;  %v2375_v57 = vshrl.u32 %v7999_v61, 16  ;;  %v2378_v9 = vshll.u32 %v7999_v61, 16  ;;  %v9421_v2 = vld [vmem:[#allocation2 + $0xc] sm:$0xff]  }
 0x365   : > { %v9383_v58 = vrot.slane %v2341_v4, 7  ;;  %v9385_v24 = vrot.slane %v2358_v22, 7  ;;  %v2392_v54 = vshrl.u32 %v8001_v6, 16  ;;  %v2395_v18 = vshll.u32 %v8001_v6, 16 }
 0x366   : > { %v2312_v36 = vor.u32 %v2310_v7, %v9379_v21  ;;  %v2313_v10 = vrot.slane %v9379_v21, 4  ;;  %v2329_v25 = vor.u32 %v2327_v17, %v9381_v3  ;;  %v2330_v11 = vrot.slane %v9381_v3, 4  ;;  %v1525_v7 = vpop.permute.xlu0 %1524  ;;  %v9423_v17 = vld [vmem:[#allocation2 + $0x14] ss:$0 sps:$4 sm:$0x11]  }
 0x367   : > { %v2346_v37 = vor.u32 %v2344_v26, %v9383_v58  ;;  %v2347_v0 = vrot.slane %v9383_v58, 4  ;;  %v2363_v14 = vor.u32 %v2361_v23, %v9385_v24  ;;  %v2364_v28 = vrot.slane %v9385_v24, 4  ;;  %v2574_v3 = vld [vmem:[#allocation2 + $0x98] sm:$0x1]  ;;  %v2588_v24 = vld [vmem:[#allocation2 + $0xb0] sm:$0x1] }
 0x368   : > { %v9397_v32 = vrot.slane %v2375_v57, 7  ;;  %v9399_v29 = vrot.slane %v2392_v54, 7  ;;  %v2409_v40 = vshrl.u32 %v9375_v13, 16  ;;  %v2412_v31 = vshll.u32 %v9375_v13, 16  ;;  %v9437_v57 = vld [vmem:[#allocation2 + $0x24] sm:$0xff]   ;;  %v9441_v54 = vld [vmem:[#allocation2 + $0x18] sm:$0xff]  }
 0x369   : > { %v2426_v59 = vshrl.u32 %v9377_v16, 16  ;;  %v2429_v60 = vshll.u32 %v9377_v16, 16  ;;  %v2550_v62 = vsel %vm9135_vm13, %v2312_v36, %v2549_v46  ;;  %v2557_v34 = vsel %vm9135_vm13, %v2329_v25, %v2556_v33  ;;  %v2553_v46 = vld [vmem:[#allocation2 + $0x74] sm:$0x1] }
 0x36a   : > { %v2380_v55 = vor.u32 %v2378_v9, %v9397_v32  ;;  %v2381_v1 = vrot.slane %v9397_v32, 4  ;;  %v2397_v48 = vor.u32 %v2395_v18, %v9399_v29  ;;  %v2398_v61 = vrot.slane %v9399_v29, 4  ;;  %2551 = vst [vmem:[#allocation2 + $0x6c] sm:$0xf] %v2550_v62  ;;  %2558 = vst [vmem:[#allocation2 + $0x78] sm:$0xf] %v2557_v34 }
 0x36b   : > { %v9413_v6 = vrot.slane %v2409_v40, 7  ;;  %v9415_v13 = vrot.slane %v2426_v59, 7  ;;  %v2564_v16 = vsel %vm9135_vm13, %v2346_v37, %v2563_v27  ;;  %v2571_v56 = vsel %vm9135_vm13, %v2363_v14, %v2570_v30  ;;  %v9439_v9 = vld [vmem:[#allocation2 + $0x2c] ss:$0 sps:$4 sm:$0x11]   ;;  %v9483_v34 = vld [vmem:[#allocation2 + $0x54] sm:$0xff]  }
 0x36c   : > { %2565 = vst [vmem:[#allocation2 + $0x84] sm:$0xf] %v2564_v16  ;;  %2572 = vst [vmem:[#allocation2 + $0x90] sm:$0xf] %v2571_v56  ;;  %v2578_v4 = vsel %vm9135_vm13, %v2380_v55, %v2577_v47  ;;  %v2585_v26 = vsel %vm9135_vm13, %v2397_v48, %v2584_v53  ;;  %v2008_v22 = vrot.slane %v2000_v39, %v8886_v19  ;;  %v3060_v40 = vrot.slane %v9421_v2, 1 }
 0x36d   : > { %v2015_v23 = vrot.slane %v2001_v41, %v8886_v19  ;;  %v2414_v18 = vor.u32 %v2412_v31, %v9413_v6  ;;  %v2431_v33 = vor.u32 %v2429_v60, %v9415_v13  ;;  %2579 = vst [vmem:[#allocation2 + $0x9c] sm:$0xf] %v2578_v4  ;;  %2586 = vst [vmem:[#allocation2 + $0xa8] sm:$0xf] %v2585_v26  ;;  %v9469_v31 = vld [vmem:[#allocation2 + $0x30] sm:$0xff]   ;;  %v3067_v47 = vrot.slane %v9439_v9, 1 }
 0x36e   : > { %v9447_v39 = vld [vmem:[#allocation2 + $0x20] ss:$0 sps:$4 sm:$0x11]   ;;  %v2024_v8 = vrot.slane %v2016_v44, %v8886_v19  ;;  %v2031_v41 = vrot.slane %v2017_v45, %v8886_v19  ;;  %v1984_v25 = vcombine.low %v9387_v12, %v1525_v7  ;;  %v1985_v27 = vcombine.high %v9387_v12, %v1525_v7  ;;  %v9461_v37 = vld [vmem:[#allocation2 + $0x44] ss:$0 sps:$4 sm:$0x11]  }
 0x36f   : > { %v2592_v14 = vsel %vm9135_vm13, %v2414_v18, %v2591_v35  ;;  %v2599_v30 = vsel %vm9135_vm13, %v2431_v33, %v2598_v52  ;;  %v3061_v44 = vrot.slane %v9423_v17, 1  ;;  %v3066_v12 = vrot.slane %v9437_v57, 1  ;;  %v2602_v29 = vld [vmem:[#allocation2 + $0xc8] sm:$0x1] }
 0x370   : > { %2593 = vst [vmem:[#allocation2 + $0xb4] sm:$0xf] %v2592_v14  ;;  %2600 = vst [vmem:[#allocation2 + $0xc0] sm:$0xf] %v2599_v30  ;;  %v1992_v49 = vrot.slane %v1984_v25, %v8872_v43  ;;  %v1999_v45 = vrot.slane %v1985_v27, %v8872_v43  ;;  %v3063_v59 = vrot.slane %v9441_v54, 1  ;;  %v3064_v60 = vrot.slane %v9447_v39, 1 }
 0x371   : > { %v3062_v53 = vsel %vm3056_vm0, %v3060_v40, %v3061_v44  ;;  %v3072_v62 = vrot.slane %v9449_v42, 1  ;;  %v3068_v48 = vsel %vm3056_vm0, %v3066_v12, %v3067_v47  ;;  %v3073_v56 = vrot.slane %v9461_v37, 1 }
 0x372   : > { %v2032_v35 = vcombine.low %v9358_v38, %v1992_v49  ;;  %v2033_v43 = vcombine.high %v9358_v38, %v1992_v49  ;;  %v2048_v52 = vcombine.low %v9361_v15, %v1999_v45  ;;  %v2049_v55 = vcombine.high %v9361_v15, %v1999_v45  ;;  %3113 = vrot.lane.b32.xlu1 %v3062_v53, %s11947_s12 }
 0x373   : > { %v3065_v16 = vsel %vm3056_vm0, %v3063_v59, %v3064_v60  ;;  %v3069_v7 = vrot.slane %v9469_v31, 1  ;;  %3117 = vrot.lane.b32.xlu0 %v3068_v48, %s11947_s12  ;;  %v3074_v15 = vsel %vm3056_vm0, %v3072_v62, %v3073_v56  ;;  %v3070_v33 = vrot.slane %v9471_v63, 1 }
 0x374   : > { %v2040_v4 = vrot.slane %v2032_v35, %v8886_v19  ;;  %v2047_v26 = vrot.slane %v2033_v43, %v8886_v19  ;;  %v2056_v38 = vrot.slane %v2048_v52, %v8886_v19  ;;  %v2063_v18 = vrot.slane %v2049_v55, %v8886_v19 }
 0x375   : > { %v3078_v25 = vrot.slane %v9483_v34, 1  ;;  %v3079_v27 = vrot.slane %v9477_v20, 1  ;;  %vm2803_vm13 = vsmask.f32 7424 }
 0x376   : > { %v2064_v14 = vcombine.low %v2008_v22, %v2040_v4  ;;  %v2065_v30 = vcombine.high %v2008_v22, %v2040_v4  ;;  %v2066_v40 = vcombine.low %v2015_v23, %v2047_v26  ;;  %v2067_v44 = vcombine.high %v2015_v23, %v2047_v26  ;;  %3115 = vrot.lane.b32.xlu1 %v3065_v16, %s11947_s12 }
 0x377   : > { %v2068_v49 = vcombine.low %v2024_v8, %v2056_v38  ;;  %v2069_v45 = vcombine.high %v2024_v8, %v2056_v38  ;;  %v2070_v12 = vcombine.low %v2031_v41, %v2063_v18  ;;  %v2071_v19 = vcombine.high %v2031_v41, %v2063_v18  ;;  %3121 = vrot.lane.b32.xlu0 %v3074_v15, %s11947_s12 }
 0x378   : > { %v7992_v47 = vpack.c.bf16 %v2064_v14, %v2064_v14  ;;  %v7994_v53 = vpack.c.bf16 %v2065_v30, %v2065_v30  ;;  %v7996_v59 = vpack.c.bf16 %v2066_v40, %v2066_v40  ;;  %v7998_v60 = vpack.c.bf16 %v2067_v44, %v2067_v44 }
 0x379   : > { %v8000_v62 = vpack.c.bf16 %v2068_v49, %v2068_v49  ;;  %v8002_v35 = vpack.c.bf16 %v2069_v45, %v2069_v45  ;;  %v8004_v43 = vpack.c.bf16 %v2070_v12, %v2070_v12  ;;  %v9505_v52 = vpack.c.bf16 %v2071_v19, %v2071_v19 }
 0x37a   : > { %v2315_v22 = vshrl.u32 %v7992_v47, 16  ;;  %v2318_v55 = vshll.u32 %v7992_v47, 16  ;;  %v2332_v23 = vshrl.u32 %v7994_v53, 16  ;;  %v2335_v48 = vshll.u32 %v7994_v53, 16 }
 0x37b   : > { %v2349_v16 = vshrl.u32 %v7996_v59, 16  ;;  %v2352_v56 = vshll.u32 %v7996_v59, 16  ;;  %v2366_v8 = vshrl.u32 %v7998_v60, 16  ;;  %v2369_v4 = vshll.u32 %v7998_v60, 16 }
 0x37c   : > { %v2317_v41 = vrot.slane %v2315_v22, 7  ;;  %v2334_v26 = vrot.slane %v2332_v23, 7  ;;  %v2383_v38 = vshrl.u32 %v8000_v62, 16  ;;  %v2386_v18 = vshll.u32 %v8000_v62, 16  ;;  %v2560_v22 = vld [vmem:[#allocation2 + $0x80] sm:$0x1] }
 0x37d   : > { %v2351_v14 = vrot.slane %v2349_v16, 7  ;;  %v2368_v30 = vrot.slane %v2366_v8, 7  ;;  %v2400_v15 = vshrl.u32 %v8002_v35, 16  ;;  %v2403_v40 = vshll.u32 %v8002_v35, 16 }
 0x37e   : > { %v2320_v44 = vor.u32 %v2318_v55, %v2317_v41  ;;  %v2322_v49 = vrot.slane %v2317_v41, 4  ;;  %v2337_v45 = vor.u32 %v2335_v48, %v2334_v26  ;;  %v2339_v12 = vrot.slane %v2334_v26, 4  ;;  %v2567_v55 = vld [vmem:[#allocation2 + $0x8c] sm:$0x1] }
 0x37f   : > { %v2354_v19 = vor.u32 %v2352_v56, %v2351_v14  ;;  %v2356_v47 = vrot.slane %v2351_v14, 4  ;;  %v2371_v36 = vor.u32 %v2369_v4, %v2368_v30  ;;  %v2373_v53 = vrot.slane %v2368_v30, 4  ;;  %v2595_v4 = vld [vmem:[#allocation2 + $0xbc] sm:$0x1] }
 0x380   : > { %v2321_v59 = vsel %vm9245_vm15, %v2313_v10, %v2320_v44  ;;  %v2338_v60 = vsel %vm9245_vm15, %v2330_v11, %v2337_v45  ;;  %v2385_v62 = vrot.slane %v2383_v38, 7  ;;  %v2402_v35 = vrot.slane %v2400_v15, 7  ;;  %v2581_v11 = vld [vmem:[#allocation2 + $0xa4] sm:$0x1] }
 0x381   : > { %v2355_v23 = vsel %vm9245_vm15, %v2347_v0, %v2354_v19  ;;  %v2372_v21 = vsel %vm9245_vm15, %v2364_v28, %v2371_v36  ;;  %v2417_v10 = vshrl.u32 %v8004_v43, 16  ;;  %v2420_v48 = vshll.u32 %v8004_v43, 16  ;;  %2552 = vst.msk [vmem:[#allocation2 + $0x70] sm:$0xf] %vm406_vm12, %v2321_v59  ;;  %2559 = vst.msk [vmem:[#allocation2 + $0x7c] sm:$0xf] %vm406_vm12, %v2338_v60 }
 0x382   : > { %v2388_v16 = vor.u32 %v2386_v18, %v2385_v62  ;;  %v2390_v56 = vrot.slane %v2385_v62, 4  ;;  %v2405_v8 = vor.u32 %v2403_v40, %v2402_v35  ;;  %v2407_v58 = vrot.slane %v2402_v35, 4  ;;  %2566 = vst.msk [vmem:[#allocation2 + $0x88] sm:$0xf] %vm406_vm12, %v2355_v23  ;;  %2573 = vst.msk [vmem:[#allocation2 + $0x94] sm:$0xf] %vm406_vm12, %v2372_v21 }
 0x383   : > { %v2419_v0 = vrot.slane %v2417_v10, 7  ;;  %v2434_v28 = vshrl.u32 %v9505_v52, 16  ;;  %v2437_v36 = vshll.u32 %v9505_v52, 16  ;;  %v2554_v43 = vsel %vm8949_vm8, %v2322_v49, %v2553_v46  ;;  %v9584_v60 = vld [vmem:[#allocation2 + $0x48] sm:$0xff]  }
 0x384   : > { %v2389_v41 = vsel %vm9245_vm15, %v2381_v1, %v2388_v16  ;;  %v2406_v26 = vsel %vm9245_vm15, %v2398_v61, %v2405_v8  ;;  %2555 = vst [vmem:[#allocation2 + $0x74] sm:$0x1] %v2554_v43  ;;  %v2561_v38 = vsel %vm8949_vm8, %v2339_v12, %v2560_v22  ;;  %v2568_v52 = vsel %vm8949_vm8, %v2356_v47, %v2567_v55  ;;  %v9588_v21 = vld [vmem:[#allocation2 + $0x68] ss:$0 sps:$4 sm:$0x11]  }
 0x385   : > { %v2422_v18 = vor.u32 %v2420_v48, %v2419_v0  ;;  %v2424_v46 = vrot.slane %v2419_v0, 4  ;;  %v2436_v14 = vrot.slane %v2434_v28, 7  ;;  %2562 = vst [vmem:[#allocation2 + $0x80] sm:$0x1] %v2561_v38  ;;  %2569 = vst [vmem:[#allocation2 + $0x8c] sm:$0x1] %v2568_v52  ;;  %v2575_v32 = vsel %vm8949_vm8, %v2373_v53, %v2574_v3 }
 0x386   : > { %2580 = vst.msk [vmem:[#allocation2 + $0xa0] sm:$0xf] %vm406_vm12, %v2389_v41  ;;  %2587 = vst.msk [vmem:[#allocation2 + $0xac] sm:$0xf] %vm406_vm12, %v2406_v26  ;;  %v2582_v1 = vsel %vm8949_vm8, %v2390_v56, %v2581_v11  ;;  %v2589_v61 = vsel %vm8949_vm8, %v2407_v58, %v2588_v24  ;;  %v3071_v30 = vsel %vm3056_vm0, %v3069_v7, %v3070_v33  ;;  %v11963_v40 = vrot.slane %v9413_v6, 4  ;;  %v9592_v11 = vld [vmem:[#allocation2 + $0x60] sm:$0xff]  }
 0x387   : > { %2576 = vst [vmem:[#allocation2 + $0x98] sm:$0x1] %v2575_v32  ;;  %v3080_v15 = vsel %vm3056_vm0, %v3078_v25, %v3079_v27  ;;  %v2439_v49 = vor.u32 %v2437_v36, %v2436_v14  ;;  %v2441_v45 = vrot.slane %v2436_v14, 4  ;;  %2583 = vst [vmem:[#allocation2 + $0xa4] sm:$0x1] %v2582_v1  ;;  %v2596_v12 = vsel %vm8949_vm8, %v2424_v46, %v2595_v4 }
 0x388   : > { %v2423_v44 = vsel %vm9245_vm15, %v11963_v40, %v2422_v18  ;;  %2590 = vst [vmem:[#allocation2 + $0xb0] sm:$0x1] %v2589_v61  ;;  %3119 = vrot.lane.b32.xlu1 %v3071_v30, %s11947_s12  ;;  %3125 = vrot.lane.b32.xlu0 %v3080_v15, %s11947_s12  ;;  %2597 = vst [vmem:[#allocation2 + $0xbc] sm:$0x1] %v2596_v12  ;;  %v2819_v6 = vshll.u32 %v9421_v2, 16  ;;  %v2824_v7 = vshll.u32 %v9423_v17, 16 }
 0x389   : > { %2594 = vst.msk [vmem:[#allocation2 + $0xb8] sm:$0xf] %vm406_vm12, %v2423_v44  ;;  %v9572_v33 = vld [vmem:[#allocation2 + $0x50] ss:$0 sps:$4 sm:$0x11]   ;;  %v11964_v25 = vrot.slane %v9415_v13, 4  ;;  %v2603_v19 = vsel %vm8949_vm8, %v2441_v45, %v2602_v29 }
 0x38a   : > { %v2831_v47 = vshll.u32 %v9441_v54, 16  ;;  %v2836_v53 = vshll.u32 %v9447_v39, 16  ;;  %2604 = vst [vmem:[#allocation2 + $0xc8] sm:$0x1] %v2603_v19  ;;  %v2817_v59 = vshrl.u32 %v9421_v2, 16  ;;  %v2821_v17 = vrot.slane %v2819_v6, 1 }
 0x38b   : > { %v2440_v27 = vsel %vm9245_vm15, %v11964_v25, %v2439_v49  ;;  %v2829_v13 = vshrl.u32 %v9441_v54, 16  ;;  %v2843_v35 = vshll.u32 %v9437_v57, 16  ;;  %v2826_v55 = vrot.slane %v2824_v7, 1  ;;  %v9594_v16 = vld [vmem:[#allocation2 + $0x6c] sm:$0xff]   ;;  %v9613_v14 = vld [vmem:[#allocation2 + $0x78] sm:$0xff]  }
 0x38c   : > { %2601 = vst.msk [vmem:[#allocation2 + $0xc4] sm:$0xf] %vm406_vm12, %v2440_v27  ;;  %v2833_v62 = vrot.slane %v2831_v47, 1  ;;  %v2822_v22 = vor.u32 %v2821_v17, %v2817_v59  ;;  %v2838_v23 = vrot.slane %v2836_v53, 1  ;;  %v2841_v39 = vshrl.u32 %v9437_v57, 16 }
 0x38d   : > { %v2845_v48 = vrot.slane %v2843_v35, 1  ;;  %v2848_v3 = vshll.u32 %v9439_v9, 16  ;;  %v3075_v8 = vrot.slane %v9584_v60, 1  ;;  %v3076_v58 = vrot.slane %v9572_v33, 1 }
 0x38e   : > { %v2834_v10 = vor.u32 %v2833_v62, %v2829_v13  ;;  %v2827_v56 = vsel %vm2803_vm13, %v2822_v22, %v2826_v55  ;;  %v2855_v24 = vshll.u32 %v9469_v31, 16  ;;  %v9600_v0 = vld [vmem:[#allocation2 + $0x74] ss:$0 sps:$4 sm:$0x11]   ;;  %v3084_v43 = vrot.slane %v9594_v16, 1 }
 0x38f   : > { %3022 = vrot.lane.b32.xlu1 %v2827_v56, %s11951_s24  ;;  %v2846_v36 = vor.u32 %v2845_v48, %v2841_v39  ;;  %v2850_v9 = vrot.slane %v2848_v3, 1  ;;  %v3085_v4 = vrot.slane %v9600_v0, 1  ;;  %v3077_v41 = vsel %vm3056_vm0, %v3075_v8, %v3076_v58  ;;  %v9618_v1 = vld [vmem:[#allocation2 + $0x80] ss:$0 sps:$4 sm:$0x11]   ;;  %v9645_v48 = vld [vmem:[#allocation2 + $0x90] sm:$0xff]  }
 0x390   : > { %v2839_v28 = vsel %vm2803_vm13, %v2834_v10, %v2838_v23  ;;  %v3081_v26 = vrot.slane %v9592_v11, 1  ;;  %v3082_v38 = vrot.slane %v9588_v21, 1  ;;  %v2857_v52 = vrot.slane %v2855_v24, 1  ;;  %v9625_v12 = vld [vmem:[#allocation2 + $0x8c] ss:$0 sps:$4 sm:$0x11]  }
 0x391   : > { %3024 = vrot.lane.b32.xlu0 %v2839_v28, %s11951_s24  ;;  %v2851_v18 = vsel %vm2803_vm13, %v2846_v36, %v2850_v9  ;;  %v2853_v46 = vshrl.u32 %v9469_v31, 16  ;;  %v2867_v32 = vshll.u32 %v9449_v42, 16  ;;  %v2860_v29 = vshll.u32 %v9471_v63, 16  ;;  %v9628_v63 = vld [vmem:[#allocation2 + $0x84] sm:$0xff]   ;;  %v9652_v24 = vld [vmem:[#allocation2 + $0x9c] sm:$0xff]  }
 0x392   : > { %v3086_v61 = vsel %vm3056_vm0, %v3084_v43, %v3085_v4  ;;  %v2865_v30 = vshrl.u32 %v9449_v42, 16  ;;  %v2872_v40 = vshll.u32 %v9461_v37, 16  ;;  %v3083_v44 = vsel %vm3056_vm0, %v3081_v26, %v3082_v38  ;;  %v9647_v3 = vld [vmem:[#allocation2 + $0x98] ss:$0 sps:$4 sm:$0x11]  }
 0x393   : > { %3123 = vrot.lane.b32.xlu1 %v3077_v41, %s11947_s12  ;;  %v2869_v15 = vrot.slane %v2867_v32, 1  ;;  %v2858_v49 = vor.u32 %v2857_v52, %v2853_v46  ;;  %v2879_v45 = vshll.u32 %v9584_v60, 16  ;;  %v2862_v7 = vrot.slane %v2860_v29, 1 }
 0x394   : > { %v3087_v25 = vrot.slane %v9613_v14, 1  ;;  %v3088_v27 = vrot.slane %v9618_v1, 1  ;;  %v2891_v37 = vshll.u32 %v9483_v34, 16  ;;  %v2874_v19 = vrot.slane %v2872_v40, 1 }
 0x395   : > { %3026 = vrot.lane.b32.xlu0 %v2851_v18, %s11951_s24  ;;  %v2870_v6 = vor.u32 %v2869_v15, %v2865_v30  ;;  %v2863_v47 = vsel %vm2803_vm13, %v2858_v49, %v2862_v7  ;;  %v2881_v53 = vrot.slane %v2879_v45, 1  ;;  %v3090_v17 = vrot.slane %v9628_v63, 1  ;;  %v9692_v30 = vld [vmem:[#allocation2 + $0xa8] sm:$0xff]   ;;  %v9697_v49 = vld [vmem:[#allocation2 + $0xb4] sm:$0xff]  }
 0x396   : > { %v3091_v13 = vrot.slane %v9625_v12, 1  ;;  %v2893_v62 = vrot.slane %v2891_v37, 1  ;;  %v3089_v35 = vsel %vm3056_vm0, %v3087_v25, %v3088_v27  ;;  %v2877_v22 = vshrl.u32 %v9584_v60, 16  ;;  %v9699_v45 = vld [vmem:[#allocation2 + $0xbc] ss:$0 sps:$4 sm:$0x11]  }
 0x397   : > { %3127 = vrot.lane.b32.xlu1 %v3083_v44, %s11947_s12  ;;  %v2875_v59 = vsel %vm2803_vm13, %v2870_v6, %v2874_v19  ;;  %v2884_v55 = vshll.u32 %v9572_v33, 16  ;;  %v2889_v23 = vshrl.u32 %v9483_v34, 16  ;;  %v2896_v10 = vshll.u32 %v9477_v20, 16  ;;  %v9654_v33 = vld [vmem:[#allocation2 + $0xa4] ss:$0 sps:$4 sm:$0x11]  }
 0x398   : > { %v2882_v39 = vor.u32 %v2881_v53, %v2877_v22  ;;  %v2903_v56 = vshll.u32 %v9592_v11, 16  ;;  %v3092_v8 = vsel %vm3056_vm0, %v3090_v17, %v3091_v13  ;;  %v2915_v28 = vshll.u32 %v9594_v16, 16 }
 0x399   : > { %3129 = vrot.lane.b32.xlu0 %v3086_v61, %s11947_s12  ;;  %v2894_v58 = vor.u32 %v2893_v62, %v2889_v23  ;;  %v8708_v36 = vmov 0   ;;  %v2886_v20 = vrot.slane %v2884_v55, 1  ;;  %v2898_v9 = vrot.slane %v2896_v10, 1  ;;  %v9690_v61 = vld [vmem:[#allocation2 + $0xb0] ss:$0 sps:$4 sm:$0x11]  }
 0x39a   : > { %412 = vst.msk [vmem:[#allocation2 + $0xcc] sm:$0xf] %vm406_vm12, %v8708_v36  ;;  %413 = vst.msk [vmem:[#allocation2 + $0xd0] sm:$0xf] %vm406_vm12, %v8708_v36  ;;  %8445 = vset.pattern.permute.xlu0 %v8708_v36  ;;  %8444 = vset.pattern.permute.xlu1 %v8708_v36  ;;  %v3093_v4 = vrot.slane %v9645_v48, 1  ;;  %v3094_v41 = vrot.slane %v9647_v3, 1 }
 0x39b   : > { %3028 = vrot.lane.b32.xlu1 %v2863_v47, %s11951_s24  ;;  %414 = vst.msk [vmem:[#allocation2 + $0xd4] sm:$0x1] %vm409_vm5, %v8708_v36  ;;  %410 = vst.msk [vmem:[#allocation2 + $0x8] sm:$0x1] %vm409_vm5, %v8708_v36  ;;  %v2887_v43 = vsel %vm2803_vm13, %v2882_v39, %v2886_v20  ;;  %v2905_v26 = vrot.slane %v2903_v56, 1  ;;  %v2899_v38 = vsel %vm2803_vm13, %v2894_v58, %v2898_v9  ;;  %v3096_v52 = vrot.slane %v9652_v24, 1 }
 0x39c   : > { %407 = vst.msk [vmem:[#allocation2] sm:$0xf] %vm406_vm12, %v8708_v36  ;;  %408 = vst.msk [vmem:[#allocation2 + $0x4] sm:$0xf] %vm406_vm12, %v8708_v36  ;;  %v3097_v18 = vrot.slane %v9654_v33, 1  ;;  %v2917_v46 = vrot.slane %v2915_v28, 1 }
 0x39d   : > { %3030 = vrot.lane.b32.xlu0 %v2875_v59, %s11951_s24  ;;  %529 = vst.msk [vmem:[#allocation3] sm:$0xf] %vm528_vm14, %v8708_v36  ;;  %530 = vst.msk [vmem:[#allocation3 + $0x4] sm:$0xf] %vm528_vm14, %v8708_v36  ;;  %v2901_v32 = vshrl.u32 %v9592_v11, 16  ;;  %v2908_v29 = vshll.u32 %v9588_v21, 16  ;;  %v3095_v21 = vsel %vm3056_vm0, %v3093_v4, %v3094_v41 }
 0x39e   : > { %534 = vst.msk [vmem:[#allocation3 + $0xcc] sm:$0xf] %vm528_vm14, %v8708_v36  ;;  %535 = vst.msk [vmem:[#allocation3 + $0xd0] sm:$0xf] %vm528_vm14, %v8708_v36  ;;  %v2927_v15 = vshll.u32 %v9613_v14, 16  ;;  %v2913_v40 = vshrl.u32 %v9594_v16, 16  ;;  %v3098_v37 = vsel %vm3056_vm0, %v3096_v52, %v3097_v18 }
 0x39f   : > { %3131 = vrot.lane.b32.xlu1 %v3089_v35, %s11947_s12  ;;  %v2920_v44 = vshll.u32 %v9600_v0, 16  ;;  %v2939_v6 = vshll.u32 %v9628_v63, 16  ;;  %v2906_v7 = vor.u32 %v2905_v26, %v2901_v32  ;;  %v2910_v17 = vrot.slane %v2908_v29, 1 }
 0x3a0   : > { %v2918_v19 = vor.u32 %v2917_v46, %v2913_v40  ;;  %v3099_v35 = vrot.slane %v9692_v30, 1  ;;  %v3100_v23 = vrot.slane %v9690_v61, 1  ;;  %v2929_v10 = vrot.slane %v2927_v15, 1 }
 0x3a1   : > { %3133 = vrot.lane.b32.xlu0 %v3092_v8, %s11947_s12  ;;  %v469_v25 = vld [vmem:[#allocation2 + $0xcc] sm:$0x1]  ;;  %v2922_v22 = vrot.slane %v2920_v44, 1  ;;  %v2911_v55 = vsel %vm2803_vm13, %v2906_v7, %v2910_v17  ;;  %v2932_v39 = vshll.u32 %v9618_v1, 16  ;;  %v3102_v56 = vrot.slane %v9697_v49, 1 }
 0x3a2   : > { %v525_v27 = vld [vmem:[#allocation2 + $0xd4] sm:$0x1]  ;;  %v470_v47 = vsel %vm8949_vm8, 0, %v469_v25  ;;  %v474_v59 = vld [vmem:[#allocation2 + $0x8] sm:$0x1]  ;;  %v3103_v5 = vrot.slane %v9699_v45, 1  ;;  %v3101_v9 = vsel %vm3056_vm0, %v3099_v35, %v3100_v23 }
 0x3a3   : > { %3032 = vrot.lane.b32.xlu1 %v2887_v43, %s11951_s24  ;;  %v526_v0 = vsel %vm9001_vm11, 0, %v525_v27  ;;  %v418_v53 = vld [vmem:[#allocation2] sm:$0x1]  ;;  %471 = vst [vmem:[#allocation2 + $0xcc] sm:$0x1] %v470_v47  ;;  %v475_v62 = vsel %vm9001_vm11, 0, %v474_v59  ;;  %v2923_v50 = vsel %vm2803_vm13, %v2918_v19, %v2922_v22 }
 0x3a4   : > { %527 = vst [vmem:[#allocation2 + $0xd4] sm:$0x1] %v526_v0  ;;  %v419_v13 = vsel %vm8949_vm8, 0, %v418_v53  ;;  %476 = vst [vmem:[#allocation2 + $0x8] sm:$0x1] %v475_v62  ;;  %v2941_v8 = vrot.slane %v2939_v6, 1  ;;  %v3104_v26 = vsel %vm3056_vm0, %v3102_v56, %v3103_v5 }
 0x3a5   : > { %3034 = vrot.lane.b32.xlu0 %v2899_v38, %s11951_s24  ;;  %420 = vst [vmem:[#allocation2] sm:$0x1] %v419_v13  ;;  %v2925_v58 = vshrl.u32 %v9613_v14, 16  ;;  %v2937_v28 = vshrl.u32 %v9628_v63, 16  ;;  %v2944_v20 = vshll.u32 %v9625_v12, 16  ;;  %v2934_v43 = vrot.slane %v2932_v39, 1 }
 0x3a6   : > { %v2951_v4 = vshll.u32 %v9645_v48, 16  ;;  %v2963_v52 = vshll.u32 %v9652_v24, 16  ;;  %v2956_v19 = vshll.u32 %v9647_v3, 16  ;;  %v2949_v59 = vshrl.u32 %v9645_v48, 16  ;;  %v9753_v3 = vld [vmem:[#allocation2 + $0xc0] sm:$0xff]  }
 0x3a7   : > { %3135 = vrot.lane.b32.xlu1 %v3095_v21, %s11947_s12  ;;  %v2930_v1 = vor.u32 %v2929_v10, %v2925_v58  ;;  %v2942_v38 = vor.u32 %v2941_v8, %v2937_v28  ;;  %v2946_v29 = vrot.slane %v2944_v20, 1  ;;  %v2975_v62 = vshll.u32 %v9692_v30, 16  ;;  %v8483_v58 = vld [vmem:[#allocation2 + $0xc8] ss:$0 sps:$4 sm:$0x11]  }
 0x3a8   : > { %v2953_v44 = vrot.slane %v2951_v4, 1  ;;  %v2965_v0 = vrot.slane %v2963_v52, 1  ;;  %v2961_v35 = vshrl.u32 %v9652_v24, 16  ;;  %v2968_v10 = vshll.u32 %v9654_v33, 16 }
 0x3a9   : > { %3137 = vrot.lane.b32.xlu0 %v3098_v37, %s11947_s12  ;;  %v2935_v15 = vsel %vm2803_vm13, %v2930_v1, %v2934_v43  ;;  %v2947_v7 = vsel %vm2803_vm13, %v2942_v38, %v2946_v29  ;;  %v2958_v39 = vrot.slane %v2956_v19, 1  ;;  %v2987_v28 = vshll.u32 %v9697_v49, 16 }
 0x3aa   : > { %v9729_v41 = vld [vmem:[#allocation2 + $0xcc] sm:$0xff]   ;;  %v2977_v20 = vrot.slane %v2975_v62, 1  ;;  %v2970_v33 = vrot.slane %v2968_v10, 1  ;;  %v2999_v1 = vshll.u32 %v9753_v3, 16  ;;  %v2973_v43 = vshrl.u32 %v9692_v30, 16 }
 0x3ab   : > { %3036 = vrot.lane.b32.xlu1 %v2911_v55, %s11951_s24  ;;  %v9733_v18 = vld [vmem:[#allocation2 + $0xd4] ss:$0 sps:$4 sm:$0x11]   ;;  %v3009_v46 = vshrl.u32 %v9729_v41, 16  ;;  %v3011_v32 = vshll.u32 %v9729_v41, 16  ;;  %v2954_v55 = vor.u32 %v2953_v44, %v2949_v59  ;;  %v2980_v4 = vshll.u32 %v9690_v61, 16 }
 0x3ac   : > { %v9736_v12 = vld [vmem:[#allocation2] sm:$0xff]   ;;  %v3016_v40 = vshll.u32 %v9733_v18, 16  ;;  %v8481_v6 = vld [vmem:[#allocation2 + $0x8] ss:$0 sps:$4 sm:$0x11]   ;;  %v2978_v29 = vor.u32 %v2977_v20, %v2973_v43  ;;  %v2992_v44 = vshll.u32 %v9699_v45, 16 }
 0x3ad   : > { %3038 = vrot.lane.b32.xlu0 %v2923_v50, %s11951_s24  ;;  %v3013_v21 = vrot.slane %v3011_v32, 1  ;;  %v2805_v25 = vshrl.u32 %v9736_v12, 16  ;;  %v2807_v27 = vshll.u32 %v9736_v12, 16  ;;  %v2812_v47 = vshll.u32 %v8481_v6, 16  ;;  %v8484_v59 = vld [vmem:[%s11891_s4] sm:$0xff]  }
 0x3ae   : > { %v3018_v37 = vrot.slane %v3016_v40, 1  ;;  %v2966_v50 = vor.u32 %v2965_v0, %v2961_v35  ;;  %v3057_v56 = vrot.slane %v9736_v12, 1  ;;  %v3058_v5 = vrot.slane %v8481_v6, 1  ;;  %8221 = vmatprep.subr.bf16.mxu1 %v8484_v59  ;;  %v8487_v35 = vld [vmem:[%s11891_s4 + $0x18] sm:$0xff]  }
 0x3af   : > { %3139 = vrot.lane.b32.xlu1 %v3101_v9, %s11947_s12  ;;  %v3014_v53 = vor.u32 %v3013_v21, %v3009_v46  ;;  %v2809_v17 = vrot.slane %v2807_v27, 1  ;;  %v2814_v13 = vrot.slane %v2812_v47, 1  ;;  %v2959_v9 = vsel %vm2803_vm13, %v2954_v55, %v2958_v39  ;;  %8222 = vmatpush3.bf16.msra.mxu1 %v8484_v59  ;;  %v8488_v39 = vld [vmem:[%s11891_s4 + $0x20] ss:$0 sps:$4 sm:$0xff]  }
 0x3b0   : > { %v3059_v38 = vsel %vm3056_vm0, %v3057_v56, %v3058_v5  ;;  %v2971_v52 = vsel %vm2803_vm13, %v2966_v50, %v2970_v33  ;;  %v3106_v46 = vrot.slane %v8483_v58, 1  ;;  %v2989_v32 = vrot.slane %v2987_v28, 1 }
 0x3b1   : > { %3141 = vrot.lane.b32.xlu0 %v3104_v26, %s11947_s12  ;;  %v3019_v22 = vsel %vm2803_vm13, %v3014_v53, %v3018_v37  ;;  %v2810_v23 = vor.u32 %v2809_v17, %v2805_v25  ;;  %v3105_v26 = vrot.slane %v9753_v3, 1  ;;  %v2985_v40 = vshrl.u32 %v9697_v49, 16  ;;  %v8485_v17 = vld [vmem:[%s11891_s4 + $0x8] sm:$0xff]  }
 0x3b2   : > { %v2982_v6 = vrot.slane %v2980_v4, 1  ;;  %v2997_v61 = vshrl.u32 %v9753_v3, 16  ;;  %v3004_v21 = vshll.u32 %v8483_v58, 16  ;;  %v2994_v19 = vrot.slane %v2992_v44, 1  ;;  %8223 = vmatprep.subr.bf16.mxu1 %v8485_v17 }
 0x3b3   : > { %3040 = vrot.lane.b32.xlu1 %v2935_v15, %s11951_s24  ;;  %v2815_v8 = vsel %vm2803_vm13, %v2810_v23, %v2814_v13  ;;  %v3001_v15 = vrot.slane %v2999_v1, 1  ;;  %v2990_v25 = vor.u32 %v2989_v32, %v2985_v40  ;;  %v3108_v47 = vrot.slane %v9729_v41, 1  ;;  %8224 = vmatpush3.bf16.msra.mxu1 %v8485_v17 }
 0x3b4   : > { %v2983_v27 = vsel %vm2803_vm13, %v2978_v29, %v2982_v6  ;;  %v3109_v0 = vrot.slane %v9733_v18, 1  ;;  %v3006_v45 = vrot.slane %v3004_v21, 1  ;;  %v8486_v18 = vld [vmem:[%s11891_s4 + $0x10] sm:$0xff]   ;;  %v3440_v50 = vsel %vm667_vm1, %v8488_v39, 0 }
 0x3b5   : > { %3042 = vrot.lane.b32.xlu0 %v2947_v7, %s11951_s24  ;;  %v3107_v7 = vsel %vm3056_vm0, %v3105_v26, %v3106_v46  ;;  %v3002_v37 = vor.u32 %v3001_v15, %v2997_v61  ;;  %v2995_v53 = vsel %vm2803_vm13, %v2990_v25, %v2994_v19  ;;  %8225 = vmatprep.subr.bf16.mxu1 %v8486_v18  ;;  %vm4860_vm8 = vcmask 97280  }
 0x3b6   : > { %v3110_v62 = vsel %vm3056_vm0, %v3108_v47, %v3109_v0 }
 0x3b7   : > { %3054 = vrot.lane.b32.xlu1 %v3019_v22, %s11951_s24  ;;  %v3007_v13 = vsel %vm2803_vm13, %v3002_v37, %v3006_v45  ;;  %8226 = vmatpush3.bf16.msra.mxu1 %v8486_v18 }
 0x3b8   : > { %8227 = vmatprep.subr.bf16.mxu1 %v8487_v35 }
 0x3b9   : > { %3020 = vrot.lane.b32.xlu0 %v2815_v8, %s11951_s24 }
 0x3bb   : > { %3044 = vrot.lane.b32.xlu1 %v2959_v9, %s11951_s24  ;;  %8228 = vmatpush3.bf16.msra.mxu1 %v8487_v35 }
 0x3bc   : > { %8371 = vmatprep.subr.msk.bf16.mxu1 %vm667_vm1, %v8488_v39  ;;  %vm531_vm1 = vcmask 24576  }
 0x3bd   : > { %3046 = vrot.lane.b32.xlu0 %v2971_v52, %s11951_s24  ;;  %532 = vst.msk [vmem:[#allocation3 + $0x8] sm:$0x1] %vm531_vm1, %v8708_v36  ;;  %vm9939_vm5 = vmand %vm531_vm1, %vm416_vm6 }
 0x3be   : > { %536 = vst.msk [vmem:[#allocation3 + $0xd4] sm:$0x1] %vm531_vm1, %v8708_v36  ;;  %vm9957_vm6 = vmand %vm531_vm1, %vm472_vm9 }
 0x3bf   : > { %3111 = vrot.lane.b32.xlu1 %v3059_v38, %s11947_s12  ;;  %8230 = vmatpush3.bf16.msra.mxu1 %v3440_v50 }
 0x3c1   : > { %3143 = vrot.lane.b32.xlu0 %v3107_v7, %s11947_s12 }
 0x3c3   : > { %3048 = vrot.lane.b32.xlu1 %v2983_v27, %s11951_s24 }
 0x3c5   : > { %3050 = vrot.lane.b32.xlu0 %v2995_v53, %s11951_s24 }
 0x3c7   : > { %3052 = vrot.lane.b32.xlu1 %v3007_v13, %s11951_s24 }
 0x3c9   : > { %3145 = vrot.lane.b32.xlu0 %v3110_v62, %s11947_s12  ;;  %s8709_s12 = smov 4  }
 0x3e4   : > { %v3114_v22 = vpop.permute.xlu1 %3113 }
 0x3e5   : > { %v3118_v55 = vpop.permute.xlu0 %3117 }
 0x3e8   : > { %v3116_v23 = vpop.permute.xlu1 %3115 }
 0x3e9   : > { %v3122_v10 = vpop.permute.xlu0 %3121 }
 0x3fa   : > { %v3120_v56 = vpop.permute.xlu1 %3119  ;;  %v3126_v5 = vpop.permute.xlu0 %3125 }
 0x401   : > { %v3023_v8 = vpop.permute.xlu1 %3022 }
 0x402   : > { %v3150_v58 = vsel %vm663_vm2, %v9421_v2, %v3023_v8  ;;  %v539_v8 = vld [vmem:[#allocation3] sm:$0x1] }
 0x403   : > { %v3025_v28 = vpop.permute.xlu0 %3024  ;;  %v9807_v9 = vsel %vm1353_vm3, %v3150_v58, %v3114_v22  ;;  %v590_v58 = vld [vmem:[#allocation3 + $0xcc] sm:$0x1] }
 0x404   : > { %v3152_v20 = vsel %vm663_vm2, %v9441_v54, %v3025_v28  ;;  %3235 = vrot.lane.b32.xlu1 %v9807_v9, %s11948_s30 }
 0x405   : > { %v9812_v33 = vsel %vm1353_vm3, %v3152_v20, %v3116_v23  ;;  %v3124_v1 = vpop.permute.xlu1 %3123 }
 0x406   : > { %3237 = vrot.lane.b32.xlu0 %v9812_v33, %s11948_s30 }
 0x407   : > { %v3027_v43 = vpop.permute.xlu0 %3026 }
 0x408   : > { %v3154_v2 = vsel %vm663_vm2, %v9437_v57, %v3027_v43  ;;  %3268 = vrot.lane.b32.xlu1 %v9812_v33, %s11943_s25 }
 0x409   : > { %v9821_v54 = vsel %vm1353_vm3, %v3154_v2, %v3118_v55  ;;  %v3128_v4 = vpop.permute.xlu1 %3127 }
 0x40a   : > { %3270 = vrot.lane.b32.xlu0 %v9821_v54, %s11943_s25 }
 0x40b   : > { %v3130_v26 = vpop.permute.xlu0 %3129 }
 0x40c   : > { %3239 = vrot.lane.b32.xlu1 %v9821_v54, %s11948_s30 }
 0x40d   : > { %v3029_v38 = vpop.permute.xlu1 %3028 }
 0x40e   : > { %v3156_v52 = vsel %vm663_vm2, %v9469_v31, %v3029_v38 }
 0x40f   : > { %v3031_v46 = vpop.permute.xlu0 %3030  ;;  %v9830_v57 = vsel %vm1353_vm3, %v3156_v52, %v3120_v56 }
 0x410   : > { %v3158_v32 = vsel %vm663_vm2, %v9449_v42, %v3031_v46  ;;  %3272 = vrot.lane.b32.xlu1 %v9830_v57, %s11943_s25  ;;  %3241 = vrot.lane.b32.xlu0 %v9830_v57, %s11948_s30 }
 0x411   : > { %v3132_v29 = vpop.permute.xlu1 %3131  ;;  %v9839_v15 = vsel %vm1353_vm3, %v3158_v32, %v3122_v10 }
 0x413   : > { %v3134_v40 = vpop.permute.xlu0 %3133 }
 0x414   : > { %3243 = vrot.lane.b32.xlu1 %v9839_v15, %s11948_s30  ;;  %3274 = vrot.lane.b32.xlu0 %v9839_v15, %s11943_s25 }
 0x415   : > { %v3033_v31 = vpop.permute.xlu1 %3032 }
 0x416   : > { %v3160_v42 = vsel %vm663_vm2, %v9584_v60, %v3033_v31 }
 0x417   : > { %v3035_v44 = vpop.permute.xlu0 %3034  ;;  %v9848_v6 = vsel %vm1353_vm3, %v3160_v42, %v3124_v1  ;;  %v591_v1 = vsel %vm9939_vm5, 0, %v590_v58  ;;  %v9975_v42 = vld [vmem:[%s8841_s29 + $0xc] sm:$0xff]  }
 0x418   : > { %v3162_v61 = vsel %vm663_vm2, %v9483_v34, %v3035_v44  ;;  %3276 = vrot.lane.b32.xlu1 %v9848_v6, %s11943_s25  ;;  %3245 = vrot.lane.b32.xlu0 %v9848_v6, %s11948_s30  ;;  %592 = vst [vmem:[#allocation3 + $0xcc] sm:$0x1] %v591_v1  ;;  %v9978_v44 = vld [vmem:[%s8841_s29 + $0x18] sm:$0xff]  }
 0x419   : > { %v3136_v21 = vpop.permute.xlu1 %3135  ;;  %v9857_v7 = vsel %vm1353_vm3, %v3162_v61, %v3126_v5 }
 0x41b   : > { %v3138_v25 = vpop.permute.xlu0 %3137 }
 0x41c   : > { %3247 = vrot.lane.b32.xlu1 %v9857_v7, %s11948_s30  ;;  %3278 = vrot.lane.b32.xlu0 %v9857_v7, %s11943_s25 }
 0x41d   : > { %v3037_v60 = vpop.permute.xlu1 %3036 }
 0x41e   : > { %v3164_v34 = vsel %vm663_vm2, %v9592_v11, %v3037_v60 }
 0x41f   : > { %v3039_v27 = vpop.permute.xlu0 %3038  ;;  %v9866_v37 = vsel %vm1353_vm3, %v3164_v34, %v3128_v4  ;;  %v4377_v34 = vshrl.u32 %v9975_v42, 16 }
 0x420   : > { %v3166_v19 = vsel %vm663_vm2, %v9594_v16, %v3039_v27  ;;  %3280 = vrot.lane.b32.xlu1 %v9866_v37, %s11943_s25  ;;  %3249 = vrot.lane.b32.xlu0 %v9866_v37, %s11948_s30  ;;  %v9987_v27 = vld [vmem:[%s8841_s29 + $0x24] sm:$0xff]  }
 0x421   : > { %v3140_v47 = vpop.permute.xlu1 %3139  ;;  %v9875_v0 = vsel %vm1353_vm3, %v3166_v19, %v3130_v26  ;;  %v645_v26 = vld [vmem:[#allocation3 + $0xd4] sm:$0x1] }
 0x422   : > { %v646_v52 = vsel %vm9957_vm6, 0, %v645_v26 }
 0x423   : > { %v3142_v45 = vpop.permute.xlu0 %3141  ;;  %647 = vst [vmem:[#allocation3 + $0xd4] sm:$0x1] %v646_v52 }
 0x424   : > { %3251 = vrot.lane.b32.xlu1 %v9875_v0, %s11948_s30  ;;  %3282 = vrot.lane.b32.xlu0 %v9875_v0, %s11943_s25 }
 0x425   : > { %v3041_v11 = vpop.permute.xlu1 %3040 }
 0x426   : > { %v3168_v16 = vsel %vm663_vm2, %v9613_v14, %v3041_v11  ;;  %v4391_v11 = vshll.u32 %v9978_v44, 16 }
 0x427   : > { %v3043_v53 = vpop.permute.xlu0 %3042  ;;  %v9884_v59 = vsel %vm1353_vm3, %v3168_v16, %v3132_v29 }
 0x428   : > { %v3170_v17 = vsel %vm663_vm2, %v9628_v63, %v3043_v53  ;;  %3284 = vrot.lane.b32.xlu1 %v9884_v59, %s11943_s25  ;;  %3253 = vrot.lane.b32.xlu0 %v9884_v59, %s11948_s30 }
 0x429   : > { %v9893_v13 = vsel %vm1353_vm3, %v3170_v17, %v3134_v40  ;;  %v3055_v62 = vpop.permute.xlu1 %3054  ;;  %v9971_v40 = vld [vmem:[#allocation3 + $0xcc] sm:$0xff]  }
 0x42a   : > { %v3182_v46 = vsel %vm663_vm2, %v9729_v41, %v3055_v62  ;;  %v5330_v61 = vshll.u32 %v9971_v40, 16  ;;  %v5328_v19 = vshrl.u32 %v9971_v40, 16  ;;  %v8492_v17 = vld [vmem:[#allocation3 + $0xd4] ss:$0 sps:$4 sm:$0x11]   ;;  %v4389_v62 = vshrl.u32 %v9978_v44, 16 }
 0x42b   : > { %v9899_v14 = vpop.permute.xlu0 %3020  ;;  %v5427_v58 = vrot.slane %v8492_v17, 1 }
 0x42c   : > { %3255 = vrot.lane.b32.xlu1 %v9893_v13, %s11948_s30  ;;  %3286 = vrot.lane.b32.xlu0 %v9893_v13, %s11943_s25 }
 0x42d   : > { %v3045_v18 = vpop.permute.xlu1 %3044 }
 0x42e   : > { %v3172_v63 = vsel %vm663_vm2, %v9645_v48, %v3045_v18 }
 0x42f   : > { %v9904_v35 = vsel %vm1353_vm3, %v3172_v63, %v3136_v21  ;;  %v3047_v22 = vpop.permute.xlu0 %3046  ;;  %v8494_v21 = vld [vmem:[%s8841_s29 + $0x14] ss:$0 sps:$4 sm:$0x11]  }
 0x430   : > { %3288 = vrot.lane.b32.xlu1 %v9904_v35, %s11943_s25  ;;  %3257 = vrot.lane.b32.xlu0 %v9904_v35, %s11948_s30  ;;  %v3174_v55 = vsel %vm663_vm2, %v9652_v24, %v3047_v22  ;;  %v4384_v53 = vshll.u32 %v8494_v21, 16 }
 0x431   : > { %v9912_v23 = vpop.permute.xlu1 %3111  ;;  %v9915_v10 = vsel %vm1353_vm3, %v3174_v55, %v3138_v25  ;;  %v9983_v25 = vld [vmem:[%s8841_s29 + $0x20] ss:$0 sps:$4 sm:$0x11]   ;;  %v4403_v55 = vshll.u32 %v9987_v27, 16 }
 0x432   : > { %v4396_v22 = vshll.u32 %v9983_v25, 16 }
 0x433   : > { %v3144_v39 = vpop.permute.xlu0 %3143 }
 0x434   : > { %3259 = vrot.lane.b32.xlu1 %v9915_v10, %s11948_s30  ;;  %3290 = vrot.lane.b32.xlu0 %v9915_v10, %s11943_s25 }
 0x435   : > { %v3049_v48 = vpop.permute.xlu1 %3048 }
 0x436   : > { %v3176_v50 = vsel %vm663_vm2, %v9692_v30, %v3049_v48  ;;  %v11965_v30 = vmov 0  ;;  %v5335_v48 = vshll.u32 %v8492_v17, 16 }
 0x437   : > { %v9924_v56 = vsel %vm1353_vm3, %v3176_v50, %v3140_v47  ;;  %v3051_v24 = vpop.permute.xlu0 %3050  ;;  %v11966_v30 = vsel %vm9939_vm5, 4294967295, %v11965_v30  ;;  %v5332_v47 = vrot.slane %v5330_v61, 1  ;;  %v5426_v50 = vrot.slane %v9971_v40, 1 }
 0x438   : > { %3292 = vrot.lane.b32.xlu1 %v9924_v56, %s11943_s25  ;;  %3261 = vrot.lane.b32.xlu0 %v9924_v56, %s11948_s30  ;;  %v3178_v5 = vsel %vm663_vm2, %v9697_v49, %v3051_v24  ;;  %11967 = vst [vmem:[#allocation9_spill] sm:$0xff] %v11966_v30  ;;  %v540_v49 = vsel %vm9939_vm5, 0, %v539_v8  ;;  %v4393_v24 = vrot.slane %v4391_v11, 1  ;;  %v8560_v30 = vld [vmem:[%s8841_s29 + $0xd4] ss:$0 sps:$4 sm:$0x11]  }
 0x439   : > { %v3053_v28 = vpop.permute.xlu1 %3052  ;;  %v9933_v20 = vsel %vm1353_vm3, %v3178_v5, %v3142_v45  ;;  %541 = vst [vmem:[#allocation3] sm:$0x1] %v540_v49  ;;  %v4379_v45 = vshll.u32 %v9975_v42, 16  ;;  %v8498_v5 = vld [vmem:[%s8841_s29 + $0x2c] ss:$0 sps:$4 sm:$0x11]   ;;  %v5428_v52 = vsel %vm3056_vm0, %v5426_v50, %v5427_v58 }
 0x43a   : > { %v3180_v43 = vsel %vm663_vm2, %v9753_v3, %v3053_v28  ;;  %v594_v3 = vld [vmem:[#allocation3 + $0x8] sm:$0x1]  ;;  %v5337_v28 = vrot.slane %v5335_v48, 1  ;;  %v4408_v26 = vshll.u32 %v8498_v5, 16  ;;  %v4622_v48 = vrot.slane %v9978_v44, 1 }
 0x43b   : > { %v3216_v2 = vsel %vm1353_vm3, %v3180_v43, %v3144_v39  ;;  %v3146_v4 = vpop.permute.xlu0 %3145  ;;  %v595_v38 = vsel %vm9957_vm6, 0, %v594_v3  ;;  %v5333_v39 = vor.u32 %v5332_v47, %v5328_v19  ;;  %v4381_v43 = vrot.slane %v4379_v45, 1  ;;  %v8502_v45 = vld [vmem:[%s8841_s29 + $0x44] ss:$0 sps:$4 sm:$0x11]  }
 0x43c   : > { %3263 = vrot.lane.b32.xlu1 %v9933_v20, %s11948_s30  ;;  %3294 = vrot.lane.b32.xlu0 %v9933_v20, %s11943_s25  ;;  %596 = vst [vmem:[#allocation3 + $0x8] sm:$0x1] %v595_v38  ;;  %v3218_v29 = vsel %vm1353_vm3, %v3182_v46, %v3146_v4  ;;  %v4401_v3 = vshrl.u32 %v9987_v27, 16  ;;  %v10002_v38 = vld [vmem:[%s8841_s29 + $0x3c] sm:$0xff]   ;;  %v4394_v46 = vor.u32 %v4393_v24, %v4389_v62  ;;  %v4619_v19 = vrot.slane %v9975_v42, 1 }
 0x43d   : > { %v5338_v4 = vsel %vm2803_vm13, %v5333_v39, %v5337_v28  ;;  %v4382_v61 = vor.u32 %v4381_v43, %v4377_v34  ;;  %v4620_v47 = vrot.slane %v8494_v21, 1  ;;  %v4427_v11 = vshll.u32 %v10002_v38, 16  ;;  %v545_v58 = vld [vmem:[#allocation3 + $0x18] sm:$0x1] }
 0x43e   : > { %v4410_v62 = vrot.slane %v4408_v26, 1  ;;  %v4425_v21 = vshrl.u32 %v10002_v38, 16  ;;  %v4625_v50 = vrot.slane %v9987_v27, 1  ;;  %v4626_v24 = vrot.slane %v8498_v5, 1 }
 0x43f   : > { %v4623_v28 = vrot.slane %v9983_v25, 1  ;;  %v546_v27 = vsel %vm9939_vm5, 0, %v545_v58 }
 0x440   : > { %3296 = vrot.lane.b32.xlu1 %v3216_v2, %s11943_s25  ;;  %3265 = vrot.lane.b32.xlu0 %v3216_v2, %s11948_s30  ;;  %v8489_v32 = vld [vmem:[#allocation3] sm:$0xff]   ;;  %v4627_v5 = vsel %vm3056_vm0, %v4625_v50, %v4626_v24  ;;  %547 = vst [vmem:[#allocation3 + $0x18] sm:$0x1] %v546_v27  ;;  %v8508_v24 = vld [vmem:[%s8841_s29 + $0x68] ss:$0 sps:$4 sm:$0x11]  }
 0x441   : > { %v5126_v31 = vshll.u32 %v8489_v32, 16  ;;  %v5124_v41 = vshrl.u32 %v8489_v32, 16  ;;  %v5375_v49 = vrot.slane %v8489_v32, 1  ;;  %v4398_v32 = vrot.slane %v4396_v22, 1 }
 0x442   : > { %v4429_v22 = vrot.slane %v4427_v11, 1  ;;  %v4624_v26 = vsel %vm3056_vm0, %v4622_v48, %v4623_v28 }
 0x443   : > { %v5128_v60 = vrot.slane %v5126_v31, 1  ;;  %v8490_v16 = vld [vmem:[#allocation3 + $0x8] ss:$0 sps:$4 sm:$0x11]  }
 0x444   : > { %3298 = vrot.lane.b32.xlu0 %v3218_v29, %s11943_s25  ;;  %v5131_v63 = vshll.u32 %v8490_v16, 16  ;;  %v5376_v1 = vrot.slane %v8490_v16, 1  ;;  %5373 = vrot.lane.b32.xlu1 %v5338_v4, %s8709_s12  ;;  %v4405_v29 = vrot.slane %v4403_v55, 1  ;;  %v4399_v16 = vsel %vm2803_vm13, %v4394_v46, %v4398_v32  ;;  %v8504_v32 = vld [vmem:[%s8841_s29 + $0x50] ss:$0 sps:$4 sm:$0x11]  }
 0x445   : > { %v5129_v18 = vor.u32 %v5128_v60, %v5124_v41  ;;  %v4386_v41 = vrot.slane %v4384_v53, 1  ;;  %v10008_v60 = vld [vmem:[%s8841_s29 + $0x30] sm:$0xff]   ;;  %v8500_v53 = vld [vmem:[%s8841_s29 + $0x38] ss:$0 sps:$4 sm:$0x11]   ;;  %v4432_v55 = vshll.u32 %v8502_v45, 16  ;;  %v4430_v4 = vor.u32 %v4429_v22, %v4425_v21 }
 0x446   : > { %v5133_v8 = vrot.slane %v5131_v63, 1  ;;  %v5377_v31 = vsel %vm3056_vm0, %v5375_v49, %v5376_v1  ;;  %v4406_v17 = vor.u32 %v4405_v29, %v4401_v3  ;;  %v4621_v63 = vsel %vm3056_vm0, %v4619_v19, %v4620_v47  ;;  %v8506_v3 = vld [vmem:[%s8841_s29 + $0x5c] ss:$0 sps:$4 sm:$0x11]   ;;  %s8710_s25 = smov 12  }
 0x447   : > { %v4387_v34 = vsel %vm2803_vm13, %v4382_v61, %v4386_v41  ;;  %v4413_v49 = vshrl.u32 %v10008_v60, 16  ;;  %v4420_v43 = vshll.u32 %v8500_v53, 16  ;;  %v4434_v44 = vrot.slane %v4432_v55, 1  ;;  %v8510_v22 = vld [vmem:[%s8841_s29 + $0x74] ss:$0 sps:$4 sm:$0x11]  }
 0x448   : > { %v5134_v2 = vsel %vm2803_vm13, %v5129_v18, %v5133_v8  ;;  %5429 = vrot.lane.b32.xlu1 %v5377_v31, %s11951_s24  ;;  %v4415_v18 = vshll.u32 %v10008_v60, 16  ;;  %v4411_v39 = vsel %vm2803_vm13, %v4406_v17, %v4410_v62  ;;  %v10027_v8 = vld [vmem:[%s8841_s29 + $0x54] sm:$0xff]   ;;  %v4628_v61 = vrot.slane %v10008_v60, 1  ;;  %v10051_v62 = vld [vmem:[%s8841_s29 + $0x6c] sm:$0xff]  }
 0x449   : > { %5339 = vrot.lane.b32.xlu0 %v5134_v2, %s8709_s12  ;;  %v10032_v2 = vld [vmem:[%s8841_s29 + $0x48] sm:$0xff]   ;;  %v4451_v25 = vshll.u32 %v10027_v8, 16  ;;  %v4422_v46 = vrot.slane %v4420_v43, 1  ;;  %v4435_v31 = vsel %vm2803_vm13, %v4430_v4, %v4434_v44  ;;  %v4629_v41 = vrot.slane %v8500_v53, 1  ;;  %v10056_v53 = vld [vmem:[%s8841_s29 + $0x60] sm:$0xff]  }
 0x44a   : > { %v4417_v1 = vrot.slane %v4415_v18, 1  ;;  %v4439_v29 = vshll.u32 %v10032_v2, 16  ;;  %v4631_v19 = vrot.slane %v10002_v38, 1  ;;  %v4632_v47 = vrot.slane %v8502_v45, 1 }
 0x44b   : > { %v4449_v11 = vshrl.u32 %v10027_v8, 16  ;;  %v4456_v17 = vshll.u32 %v8506_v3, 16  ;;  %v4437_v18 = vshrl.u32 %v10032_v2, 16  ;;  %v4444_v60 = vshll.u32 %v8504_v32, 16 }
 0x44c   : > { %4582 = vrot.lane.b32.xlu1 %v4387_v34, %s8709_s12  ;;  %v4633_v38 = vsel %vm3056_vm0, %v4631_v19, %v4632_v47  ;;  %v4475_v55 = vshll.u32 %v10051_v62, 16  ;;  %v4463_v58 = vshll.u32 %v10056_v53, 16  ;;  %v4634_v28 = vrot.slane %v10032_v2, 1 }
 0x44d   : > { %5463 = vrot.lane.b32.xlu0 %v5428_v52, %s11951_s24  ;;  %v4418_v52 = vor.u32 %v4417_v1, %v4413_v49  ;;  %v4458_v21 = vrot.slane %v4456_v17, 1  ;;  %v4446_v50 = vrot.slane %v4444_v60, 1  ;;  %v4635_v49 = vrot.slane %v8504_v32, 1 }
 0x44e   : > { %v4637_v1 = vrot.slane %v10027_v8, 1  ;;  %v4638_v43 = vrot.slane %v8506_v3, 1  ;;  %v4473_v44 = vshrl.u32 %v10051_v62, 16  ;;  %v4477_v27 = vrot.slane %v4475_v55, 1  ;;  %v8511_v8 = vld [vmem:[%s8841_s29 + $0x78] sm:$0xff]  }
 0x44f   : > { %v4423_v34 = vsel %vm2803_vm13, %v4418_v52, %v4422_v46  ;;  %v4461_v2 = vshrl.u32 %v10056_v53, 16  ;;  %v4465_v52 = vrot.slane %v4463_v58, 1  ;;  %v4468_v46 = vshll.u32 %v8508_v24, 16 }
 0x450   : > { %4672 = vrot.lane.b32.xlu1 %v4621_v63, %s11951_s24  ;;  %v4441_v63 = vrot.slane %v4439_v29, 1  ;;  %v4639_v3 = vsel %vm3056_vm0, %v4637_v1, %v4638_v43  ;;  %v4478_v32 = vor.u32 %v4477_v27, %v4473_v44  ;;  %v4640_v17 = vrot.slane %v10056_v53, 1 }
 0x451   : > { %4584 = vrot.lane.b32.xlu0 %v4399_v16, %s8709_s12  ;;  %v4453_v16 = vrot.slane %v4451_v25, 1  ;;  %v10073_v25 = vld [vmem:[%s8841_s29 + $0x84] sm:$0xff]   ;;  %v4466_v19 = vor.u32 %v4465_v52, %v4461_v2  ;;  %v4470_v47 = vrot.slane %v4468_v46, 1  ;;  %v4646_v27 = vrot.slane %v8511_v8, 1 }
 0x452   : > { %v4442_v48 = vor.u32 %v4441_v63, %v4437_v18  ;;  %v4643_v18 = vrot.slane %v10051_v62, 1  ;;  %v4644_v63 = vrot.slane %v8510_v22, 1  ;;  %v3148_v62 = vsel %vm663_vm2, %v9736_v12, %v9899_v14 }
 0x453   : > { %v4454_v45 = vor.u32 %v4453_v16, %v4449_v11  ;;  %v8512_v11 = vld [vmem:[%s8841_s29 + $0x80] ss:$0 sps:$4 sm:$0x11]   ;;  %v4487_v16 = vshll.u32 %v8511_v8, 16  ;;  %v4471_v55 = vsel %vm2803_vm13, %v4466_v19, %v4470_v47 }
 0x454   : > { %4674 = vrot.lane.b32.xlu1 %v4624_v26, %s11951_s24  ;;  %v4447_v26 = vsel %vm2803_vm13, %v4442_v48, %v4446_v50  ;;  %v4492_v50 = vshll.u32 %v8512_v11, 16  ;;  %v4647_v46 = vrot.slane %v8512_v11, 1 }
 0x455   : > { %4586 = vrot.lane.b32.xlu0 %v4411_v39, %s8709_s12  ;;  %v4630_v39 = vsel %vm3056_vm0, %v4628_v61, %v4629_v41  ;;  %v4459_v4 = vsel %vm2803_vm13, %v4454_v45, %v4458_v21  ;;  %v4499_v61 = vshll.u32 %v10073_v25, 16  ;;  %v4636_v41 = vsel %vm3056_vm0, %v4634_v28, %v4635_v49 }
 0x456   : > { %v4489_v48 = vrot.slane %v4487_v16, 1  ;;  %v4494_v43 = vrot.slane %v4492_v50, 1 }
 0x457   : > { %v4501_v45 = vrot.slane %v4499_v61, 1 }
 0x458   : > { %4588 = vrot.lane.b32.xlu1 %v4423_v34, %s8709_s12  ;;  %v4641_v34 = vrot.slane %v8508_v24, 1 }
 0x459   : > { %4676 = vrot.lane.b32.xlu0 %v4627_v5, %s11951_s24  ;;  %v4480_v5 = vshll.u32 %v8510_v22, 16  ;;  %v4645_v22 = vsel %vm3056_vm0, %v4643_v18, %v4644_v63 }
 0x45a   : > { %v4642_v49 = vsel %vm3056_vm0, %v4640_v17, %v4641_v34 }
 0x45b   : > { %v4482_v29 = vrot.slane %v4480_v5, 1 }
 0x45c   : > { %4678 = vrot.lane.b32.xlu1 %v4630_v39, %s11951_s24  ;;  %v4485_v39 = vshrl.u32 %v8511_v8, 16  ;;  %v4648_v8 = vsel %vm3056_vm0, %v4646_v27, %v4647_v46 }
 0x45d   : > { %4590 = vrot.lane.b32.xlu0 %v4435_v31, %s8709_s12  ;;  %v10082_v31 = vld [vmem:[%s8841_s29 + $0x8c] ss:$0 sps:$4 sm:$0x11]   ;;  %v4483_v60 = vsel %vm2803_vm13, %v4478_v32, %v4482_v29 }
 0x45e   : > { %v4504_v21 = vshll.u32 %v10082_v31, 16  ;;  %v4490_v1 = vor.u32 %v4489_v48, %v4485_v39 }
 0x460   : > { %4592 = vrot.lane.b32.xlu1 %v4447_v26, %s8709_s12  ;;  %v4506_v58 = vrot.slane %v4504_v21, 1  ;;  %v4495_v52 = vsel %vm2803_vm13, %v4490_v1, %v4494_v43 }
 0x461   : > { %4680 = vrot.lane.b32.xlu0 %v4633_v38, %s11951_s24  ;;  %v4497_v38 = vshrl.u32 %v10073_v25, 16 }
 0x463   : > { %v4502_v24 = vor.u32 %v4501_v45, %v4497_v38 }
 0x464   : > { %4682 = vrot.lane.b32.xlu1 %v4636_v41, %s11951_s24 }
 0x465   : > { %4594 = vrot.lane.b32.xlu0 %v4459_v4, %s8709_s12  ;;  %v3184_v4 = vsel %vm1353_vm3, %v3148_v62, %v9912_v23  ;;  %v4507_v14 = vsel %vm2803_vm13, %v4502_v24, %v4506_v58  ;;  %vm4706_vm3 = vcmask 31744  }
 0x468   : > { %4596 = vrot.lane.b32.xlu1 %v4471_v55, %s8709_s12 }
 0x469   : > { %4684 = vrot.lane.b32.xlu0 %v4639_v3, %s11951_s24 }
 0x46c   : > { %4686 = vrot.lane.b32.xlu1 %v4642_v49, %s11951_s24 }
 0x46d   : > { %4598 = vrot.lane.b32.xlu0 %v4483_v60, %s8709_s12 }
 0x470   : > { %4600 = vrot.lane.b32.xlu1 %v4495_v52, %s8709_s12 }
 0x471   : > { %4688 = vrot.lane.b32.xlu0 %v4645_v22, %s11951_s24 }
 0x474   : > { %4690 = vrot.lane.b32.xlu1 %v4648_v8, %s11951_s24 }
 0x475   : > { %4602 = vrot.lane.b32.xlu0 %v4507_v14, %s8709_s12 }
 0x476   : > { %v3236_v53 = vpop.permute.xlu1 %3235 }
 0x477   : > { %v3301_v44 = vsel %vm1355_vm4, %v3184_v4, %v3236_v53 }
 0x478   : > { %v3238_v28 = vpop.permute.xlu0 %3237 }
 0x479   : > { %v3303_v5 = vsel %vm1355_vm4, %v9807_v9, %v3238_v28 }
 0x47a   : > { %v3269_v12 = vpop.permute.xlu1 %3268 }
 0x47b   : > { %v3333_v26 = vsel %vm1361_vm7, %v3301_v44, %v3269_v12 }
 0x47c   : > { %v3271_v2 = vpop.permute.xlu0 %3270  ;;  %8231 = vmatprep.mubr.msk.bf16.mxu1 %vm1367_vm10, %v3333_v26 }
 0x47d   : > { %v3335_v23 = vsel %vm1361_vm7, %v3303_v5, %v3271_v2 }
 0x47e   : > { %8232 = vmatmul.mubr.msk.bf16.vlgmr.msra.gmra.mrb[28].mxu1 %vm1367_vm10, %v3335_v23  ;;  %v3240_v3 = vpop.permute.xlu1 %3239 }
 0x47f   : > { %v3305_v9 = vsel %vm1355_vm4, %v9812_v33, %v3240_v3 }
 0x482   : > { %v3273_v32 = vpop.permute.xlu1 %3272  ;;  %v3242_v29 = vpop.permute.xlu0 %3241 }
 0x483   : > { %v3337_v61 = vsel %vm1361_vm7, %v3305_v9, %v3273_v32  ;;  %v3307_v41 = vsel %vm1355_vm4, %v9821_v54, %v3242_v29  ;;  %v8515_v9 = vld [vmem:[%s8841_s29 + $0x90] sm:$0xff]   ;;  %v542_v32 = vld [vmem:[#allocation3 + $0xc] sm:$0x1]  ;;  %v4649_v29 = vrot.slane %v10073_v25, 1 }
 0x484   : > { %8235 = vmatprep.mubr.msk.bf16.mxu1 %vm1367_vm10, %v3337_v61  ;;  %v4650_v61 = vrot.slane %v10082_v31, 1 }
 0x486   : > { %v3244_v19 = vpop.permute.xlu1 %3243  ;;  %v3275_v47 = vpop.permute.xlu0 %3274 }
 0x487   : > { %v3339_v11 = vsel %vm1361_vm7, %v3307_v41, %v3275_v47  ;;  %v3309_v33 = vsel %vm1355_vm4, %v9830_v57, %v3244_v19  ;;  %v600_v41 = vld [vmem:[#allocation3 + $0x20] sm:$0x1]  ;;  %v4511_v19 = vshll.u32 %v8515_v9, 16 }
 0x488   : > { %8236 = vmatmul.mubr.msk.bf16.gmra.mrb[32].mxu1 %vm1367_vm10, %v3339_v11  ;;  %v8516_v47 = vld [vmem:[%s8841_s29 + $0x98] ss:$0 sps:$4 sm:$0x11]   ;;  %v4509_v11 = vshrl.u32 %v8515_v9, 16 }
 0x489   : > { %v4516_v25 = vshll.u32 %v8516_v47, 16 }
 0x48a   : > { %v3277_v16 = vpop.permute.xlu1 %3276  ;;  %v3246_v17 = vpop.permute.xlu0 %3245 }
 0x48b   : > { %v3341_v34 = vsel %vm1361_vm7, %v3309_v33, %v3277_v16  ;;  %v3311_v18 = vsel %vm1355_vm4, %v9839_v15, %v3246_v17  ;;  %v8517_v33 = vld [vmem:[%s8841_s29 + $0x9c] sm:$0xff]   ;;  %v4651_v16 = vsel %vm3056_vm0, %v4649_v29, %v4650_v61  ;;  %v4513_v17 = vrot.slane %v4511_v19, 1  ;;  %v603_v29 = vld [vmem:[#allocation3 + $0x2c] sm:$0x1] }
 0x48c   : > { %8239 = vmatprep.mubr.msk.bf16.mxu1 %vm1367_vm10, %v3341_v34  ;;  %v597_v34 = vld [vmem:[#allocation3 + $0x14] sm:$0x1]  ;;  %4692 = vrot.lane.b32.xlu0 %v4651_v16, %s11951_s24 }
 0x48d   : > { %v598_v31 = vsel %vm9957_vm6, 0, %v597_v34 }
 0x48e   : > { %v3248_v63 = vpop.permute.xlu1 %3247  ;;  %v3279_v54 = vpop.permute.xlu0 %3278  ;;  %599 = vst [vmem:[#allocation3 + $0x14] sm:$0x1] %v598_v31 }
 0x48f   : > { %v3343_v60 = vsel %vm1361_vm7, %v3311_v18, %v3279_v54  ;;  %v3313_v38 = vsel %vm1355_vm4, %v9848_v6, %v3248_v63  ;;  %v8518_v18 = vld [vmem:[%s8841_s29 + $0xa4] ss:$0 sps:$4 sm:$0x11]   ;;  %v4521_v63 = vshrl.u32 %v8517_v33, 16  ;;  %v4523_v54 = vshll.u32 %v8517_v33, 16 }
 0x490   : > { %8240 = vmatmul.mubr.msk.bf16.gmra.mrb[36].mxu1 %vm1367_vm10, %v3343_v60  ;;  %v4514_v60 = vor.u32 %v4513_v17, %v4509_v11 }
 0x492   : > { %v3281_v45 = vpop.permute.xlu1 %3280  ;;  %v3250_v57 = vpop.permute.xlu0 %3249 }
 0x493   : > { %v3345_v21 = vsel %vm1361_vm7, %v3313_v38, %v3281_v45  ;;  %v3315_v55 = vsel %vm1355_vm4, %v9857_v7, %v3250_v57  ;;  %v4528_v38 = vshll.u32 %v8518_v18, 16  ;;  %v10190_v57 = vld [vmem:[%s8841_s29] sm:$0xff]  }
 0x494   : > { %8243 = vmatprep.mubr.msk.bf16.mxu1 %vm1367_vm10, %v3345_v21  ;;  %v10193_v21 = vld [vmem:[%s8841_s29 + $0x8] ss:$0 sps:$4 sm:$0x11]  }
 0x496   : > { %v3252_v39 = vpop.permute.xlu1 %3251  ;;  %v3283_v15 = vpop.permute.xlu0 %3282 }
 0x497   : > { %v3347_v48 = vsel %vm1361_vm7, %v3315_v55, %v3283_v15  ;;  %v3317_v50 = vsel %vm1355_vm4, %v9866_v37, %v3252_v39  ;;  %v4518_v55 = vrot.slane %v4516_v25, 1  ;;  %v4525_v39 = vrot.slane %v4523_v54, 1 }
 0x498   : > { %8244 = vmatmul.mubr.msk.bf16.gmra.mrb[40].mxu1 %vm1367_vm10, %v3347_v48  ;;  %v4652_v15 = vrot.slane %v8515_v9, 1  ;;  %v4653_v48 = vrot.slane %v8516_v47, 1  ;;  %v4616_v54 = vrot.slane %v10190_v57, 1 }
 0x49a   : > { %v3285_v62 = vpop.permute.xlu1 %3284  ;;  %v3254_v6 = vpop.permute.xlu0 %3253 }
 0x49b   : > { %v3349_v53 = vsel %vm1361_vm7, %v3317_v50, %v3285_v62  ;;  %v3319_v22 = vsel %vm1355_vm4, %v9875_v0, %v3254_v6  ;;  %v10196_v50 = vld [vmem:[%s8841_s29 + $0xb4] sm:$0xff]   ;;  %v4530_v62 = vrot.slane %v4528_v38, 1 }
 0x49c   : > { %8247 = vmatprep.mubr.msk.bf16.mxu1 %vm1367_vm10, %v3349_v53  ;;  %v10201_v53 = vld [vmem:[%s8841_s29 + $0xbc] ss:$0 sps:$4 sm:$0x11]   ;;  %v554_v38 = vld [vmem:[#allocation3 + $0x3c] sm:$0x1] }
 0x49e   : > { %v3256_v24 = vpop.permute.xlu1 %3255  ;;  %v3287_v7 = vpop.permute.xlu0 %3286 }
 0x49f   : > { %v3351_v58 = vsel %vm1361_vm7, %v3319_v22, %v3287_v7  ;;  %v3321_v28 = vsel %vm1355_vm4, %v9884_v59, %v3256_v24  ;;  %v4519_v22 = vsel %vm2803_vm13, %v4514_v60, %v4518_v55  ;;  %v4526_v24 = vor.u32 %v4525_v39, %v4521_v63  ;;  %v612_v55 = vld [vmem:[#allocation3 + $0x50] sm:$0x1] }
 0x4a0   : > { %8248 = vmatmul.mubr.msk.bf16.gmra.mrb[44].mxu1 %vm1367_vm10, %v3351_v58  ;;  %v4655_v7 = vrot.slane %v8517_v33, 1  ;;  %v4656_v58 = vrot.slane %v8518_v18, 1  ;;  %4604 = vrot.lane.b32.xlu1 %v4519_v22, %s8709_s12  ;;  %v4617_v60 = vrot.slane %v10193_v21, 1  ;;  %v4661_v22 = vrot.slane %v10196_v50, 1 }
 0x4a2   : > { %v3289_v49 = vpop.permute.xlu1 %3288  ;;  %v3258_v37 = vpop.permute.xlu0 %3257 }
 0x4a3   : > { %v3353_v1 = vsel %vm1361_vm7, %v3321_v28, %v3289_v49  ;;  %v3323_v43 = vsel %vm1355_vm4, %v9893_v13, %v3258_v37  ;;  %v551_v28 = vld [vmem:[#allocation3 + $0x30] sm:$0x1]  ;;  %v4365_v49 = vshrl.u32 %v10190_v57, 16  ;;  %v4367_v37 = vshll.u32 %v10190_v57, 16 }
 0x4a4   : > { %8251 = vmatprep.mubr.msk.bf16.mxu1 %vm1367_vm10, %v3353_v1  ;;  %v4372_v1 = vshll.u32 %v10193_v21, 16 }
 0x4a6   : > { %v3260_v4 = vpop.permute.xlu1 %3259  ;;  %v3291_v0 = vpop.permute.xlu0 %3290 }
 0x4a7   : > { %v3355_v44 = vsel %vm1361_vm7, %v3323_v43, %v3291_v0  ;;  %v3325_v12 = vsel %vm1355_vm4, %v9904_v35, %v3260_v4  ;;  %v4531_v43 = vsel %vm2803_vm13, %v4526_v24, %v4530_v62  ;;  %v4654_v4 = vsel %vm3056_vm0, %v4652_v15, %v4653_v48 }
 0x4a8   : > { %8252 = vmatmul.mubr.msk.bf16.gmra.mrb[48].mxu1 %vm1367_vm10, %v3355_v44  ;;  %v4545_v0 = vshrl.u32 %v10196_v50, 16  ;;  %v4547_v44 = vshll.u32 %v10196_v50, 16  ;;  %4606 = vrot.lane.b32.xlu0 %v4531_v43, %s8709_s12  ;;  %v613_v48 = vsel %vm9957_vm6, 0, %v612_v55  ;;  %v4618_v62 = vsel %vm3056_vm0, %v4616_v54, %v4617_v60  ;;  %v563_v50 = vld [vmem:[#allocation3 + $0x60] sm:$0x1] }
 0x4a9   : > { %4694 = vrot.lane.b32.xlu1 %v4654_v4, %s11951_s24  ;;  %614 = vst [vmem:[#allocation3 + $0x50] sm:$0x1] %v613_v48  ;;  %v4662_v24 = vrot.slane %v10201_v53, 1  ;;  %v615_v4 = vld [vmem:[#allocation3 + $0x5c] sm:$0x1] }
 0x4aa   : > { %v3293_v14 = vpop.permute.xlu1 %3292  ;;  %v3262_v59 = vpop.permute.xlu0 %3261 }
 0x4ab   : > { %v3357_v27 = vsel %vm1361_vm7, %v3325_v12, %v3293_v14  ;;  %v3327_v5 = vsel %vm1355_vm4, %v9915_v10, %v3262_v59  ;;  %v4369_v12 = vrot.slane %v4367_v37, 1  ;;  %v4374_v14 = vrot.slane %v4372_v1, 1  ;;  %v618_v1 = vld [vmem:[#allocation3 + $0x68] sm:$0x1] }
 0x4ac   : > { %8255 = vmatprep.mubr.msk.bf16.mxu1 %vm1367_vm10, %v3357_v27  ;;  %v4552_v27 = vshll.u32 %v10201_v53, 16  ;;  %v564_v53 = vsel %vm9939_vm5, 0, %v563_v50  ;;  %v619_v43 = vsel %vm9957_vm6, 0, %v618_v1  ;;  %v4061_v1 = vld [vmem:[#allocation3 + $0x18] sm:$0xf] }
 0x4ad   : > { %565 = vst [vmem:[#allocation3 + $0x60] sm:$0x1] %v564_v53  ;;  %620 = vst [vmem:[#allocation3 + $0x68] sm:$0x1] %v619_v43 }
 0x4ae   : > { %v3264_v13 = vpop.permute.xlu1 %3263  ;;  %v3295_v26 = vpop.permute.xlu0 %3294 }
 0x4af   : > { %v3359_v2 = vsel %vm1361_vm7, %v3327_v5, %v3295_v26  ;;  %v3329_v52 = vsel %vm1355_vm4, %v9924_v56, %v3264_v13  ;;  %v543_v56 = vsel %vm9939_vm5, 0, %v542_v32  ;;  %v552_v5 = vsel %vm9939_vm5, 0, %v551_v28  ;;  %v548_v13 = vld [vmem:[#allocation3 + $0x24] sm:$0x1]  ;;  %v8523_v32 = vld [vmem:[%s8841_s29 + $0xa8] sm:$0xff]  }
 0x4b0   : > { %8256 = vmatmul.mubr.msk.bf16.gmra.mrb[52].mxu1 %vm1367_vm10, %v3359_v2  ;;  %544 = vst [vmem:[#allocation3 + $0xc] sm:$0x1] %v543_v56  ;;  %v4657_v26 = vsel %vm3056_vm0, %v4655_v7, %v4656_v58  ;;  %v4549_v2 = vrot.slane %v4547_v44, 1  ;;  %553 = vst [vmem:[#allocation3 + $0x30] sm:$0x1] %v552_v5  ;;  %v4535_v47 = vshll.u32 %v8523_v32, 16 }
 0x4b1   : > { %v8524_v56 = vld [vmem:[%s8841_s29 + $0xb0] ss:$0 sps:$4 sm:$0x11]   ;;  %4696 = vrot.lane.b32.xlu0 %v4657_v26, %s11951_s24  ;;  %v4658_v17 = vrot.slane %v8523_v32, 1  ;;  %v609_v7 = vld [vmem:[#allocation3 + $0x44] sm:$0x1] }
 0x4b2   : > { %v3297_v35 = vpop.permute.xlu1 %3296  ;;  %v3266_v46 = vpop.permute.xlu0 %3265  ;;  %v4550_v9 = vor.u32 %v4549_v2, %v4545_v0  ;;  %v4540_v11 = vshll.u32 %v8524_v56, 16  ;;  %v4537_v34 = vrot.slane %v4535_v47, 1  ;;  %v4659_v25 = vrot.slane %v8524_v56, 1  ;;  %v569_v44 = vld [vmem:[#allocation3 + $0x78] sm:$0x1] }
 0x4b3   : > { %v3361_v23 = vsel %vm1361_vm7, %v3329_v52, %v3297_v35  ;;  %v3331_v10 = vsel %vm1355_vm4, %v9933_v20, %v3266_v46  ;;  %v601_v20 = vsel %vm9957_vm6, 0, %v600_v41  ;;  %v549_v52 = vsel %vm9939_vm5, 0, %v548_v13  ;;  %v606_v35 = vld [vmem:[#allocation3 + $0x38] sm:$0x1]  ;;  %v621_v26 = vld [vmem:[#allocation3 + $0x74] sm:$0x1] }
 0x4b4   : > { %8259 = vmatprep.mubr.msk.bf16.mxu1 %vm1367_vm10, %v3361_v23  ;;  %602 = vst [vmem:[#allocation3 + $0x20] sm:$0x1] %v601_v20  ;;  %v4370_v23 = vor.u32 %v4369_v12, %v4365_v49  ;;  %550 = vst [vmem:[#allocation3 + $0x24] sm:$0x1] %v549_v52  ;;  %v604_v41 = vsel %vm9957_vm6, 0, %v603_v29  ;;  %v4533_v20 = vshrl.u32 %v8523_v32, 16  ;;  %v4660_v15 = vsel %vm3056_vm0, %v4658_v17, %v4659_v25 }
 0x4b5   : > { %605 = vst [vmem:[#allocation3 + $0x2c] sm:$0x1] %v604_v41  ;;  %v4542_v18 = vrot.slane %v4540_v11, 1  ;;  %v610_v58 = vsel %vm9957_vm6, 0, %v609_v7  ;;  %v560_v49 = vld [vmem:[#allocation3 + $0x54] sm:$0x1] }
 0x4b6   : > { %v3299_v3 = vpop.permute.xlu0 %3298  ;;  %v5374_v45 = vpop.permute.xlu1 %5373  ;;  %v4375_v61 = vsel %vm2803_vm13, %v4370_v23, %v4374_v14  ;;  %v4538_v63 = vor.u32 %v4537_v34, %v4533_v20  ;;  %611 = vst [vmem:[#allocation3 + $0x44] sm:$0x1] %v610_v58  ;;  %v561_v37 = vsel %vm9939_vm5, 0, %v560_v49  ;;  %v616_v0 = vsel %vm9957_vm6, 0, %v615_v4  ;;  %v566_v14 = vld [vmem:[#allocation3 + $0x6c] sm:$0x1] }
 0x4b7   : > { %v3363_v8 = vsel %vm1361_vm7, %v3331_v10, %v3299_v3  ;;  %v5500_v46 = vsel %vm4706_vm3, %v9971_v40, %v5374_v45  ;;  %v4554_v3 = vrot.slane %v4552_v27, 1  ;;  %v557_v40 = vld [vmem:[#allocation3 + $0x48] sm:$0x1]  ;;  %4580 = vrot.lane.b32.xlu1 %v4375_v61, %s8709_s12  ;;  %v555_v45 = vsel %vm9939_vm5, 0, %v554_v38  ;;  %562 = vst [vmem:[#allocation3 + $0x54] sm:$0x1] %v561_v37  ;;  %vm10315_vm7 = vmand %vm528_vm14, %vm472_vm9 }
 0x4b8   : > { %8260 = vmatmul.mubr.msk.bf16.gmra.mrb[56].mxu1 %vm1367_vm10, %v3363_v8  ;;  %v607_v8 = vsel %vm9957_vm6, 0, %v606_v35  ;;  %v558_v31 = vsel %vm9939_vm5, 0, %v557_v40  ;;  %v4543_v39 = vsel %vm2803_vm13, %v4538_v63, %v4542_v18  ;;  %556 = vst [vmem:[#allocation3 + $0x3c] sm:$0x1] %v555_v45  ;;  %617 = vst [vmem:[#allocation3 + $0x5c] sm:$0x1] %v616_v0 }
 0x4b9   : > { %608 = vst [vmem:[#allocation3 + $0x38] sm:$0x1] %v607_v8  ;;  %v4555_v33 = vsel %vm2803_vm13, %v4550_v9, %v4554_v3  ;;  %559 = vst [vmem:[#allocation3 + $0x48] sm:$0x1] %v558_v31  ;;  %v570_v12 = vsel %vm9939_vm5, 0, %v569_v44  ;;  %v567_v5 = vsel %vm9939_vm5, 0, %v566_v14 }
 0x4ba   : > { %v10213_v59 = vpop.permute.xlu1 %5429  ;;  %571 = vst [vmem:[#allocation3 + $0x78] sm:$0x1] %v570_v12  ;;  %v624_v27 = vld [vmem:[#allocation3 + $0x80] sm:$0x1]  ;;  %568 = vst [vmem:[#allocation3 + $0x6c] sm:$0x1] %v567_v5 }
 0x4bb   : > { %v10198_v6 = vpop.permute.xlu0 %5339  ;;  %4610 = vrot.lane.b32.xlu1 %v4555_v33, %s8709_s12  ;;  %v625_v13 = vsel %vm9957_vm6, 0, %v624_v27  ;;  %v622_v2 = vsel %vm9957_vm6, 0, %v621_v26  ;;  %v575_v52 = vld [vmem:[#allocation3 + $0x90] sm:$0x1]  ;;  %v627_v8 = vld [vmem:[#allocation3 + $0x8c] sm:$0x1] }
 0x4bc   : > { %626 = vst [vmem:[#allocation3 + $0x80] sm:$0x1] %v625_v13  ;;  %623 = vst [vmem:[#allocation3 + $0x74] sm:$0x1] %v622_v2  ;;  %v576_v35 = vsel %vm9939_vm5, 0, %v575_v52  ;;  %v628_v9 = vsel %vm9957_vm6, 0, %v627_v8 }
 0x4bd   : > { %577 = vst [vmem:[#allocation3 + $0x90] sm:$0x1] %v576_v35  ;;  %629 = vst [vmem:[#allocation3 + $0x8c] sm:$0x1] %v628_v9  ;;  %v581_v32 = vld [vmem:[#allocation3 + $0xa8] sm:$0x1] }
 0x4be   : > { %v4583_v16 = vpop.permute.xlu1 %4582  ;;  %v582_v56 = vsel %vm9939_vm5, 0, %v581_v32  ;;  %v578_v29 = vld [vmem:[#allocation3 + $0x9c] sm:$0x1]  ;;  %v636_v41 = vld [vmem:[#allocation3 + $0xb0] sm:$0x1]  ;;  %v11971_v37 = vmov 0 }
 0x4bf   : > { %v5464_v10 = vpop.permute.xlu0 %5463  ;;  %v4710_v57 = vsel %vm4706_vm3, %v9975_v42, %v4583_v16  ;;  %4698 = vrot.lane.b32.xlu1 %v4660_v15, %s11951_s24  ;;  %v4663_v42 = vsel %vm3056_vm0, %v4661_v22, %v4662_v24  ;;  %583 = vst [vmem:[#allocation3 + $0xa8] sm:$0x1] %v582_v56  ;;  %v579_v61 = vsel %vm9939_vm5, 0, %v578_v29  ;;  %v637_v40 = vsel %vm9957_vm6, 0, %v636_v41  ;;  %v587_v47 = vld [vmem:[#allocation3 + $0xc0] sm:$0x1] }
 0x4c0   : > { %v5536_v19 = vsel %vm663_vm2, %v5500_v46, %v5464_v10  ;;  %v572_v46 = vld [vmem:[#allocation3 + $0x84] sm:$0x1]  ;;  %v630_v10 = vld [vmem:[#allocation3 + $0x98] sm:$0x1]  ;;  %580 = vst [vmem:[#allocation3 + $0x9c] sm:$0x1] %v579_v61 }
 0x4c1   : > { %5616 = vrot.lane.b32.xlu0 %v5536_v19, %s11948_s30  ;;  %v573_v23 = vsel %vm9939_vm5, 0, %v572_v46  ;;  %v631_v3 = vsel %vm9957_vm6, 0, %v630_v10  ;;  %638 = vst [vmem:[#allocation3 + $0xb0] sm:$0x1] %v637_v40  ;;  %v633_v19 = vld [vmem:[#allocation3 + $0xa4] sm:$0x1] }
 0x4c2   : > { %v4673_v21 = vpop.permute.xlu1 %4672  ;;  %574 = vst [vmem:[#allocation3 + $0x84] sm:$0x1] %v573_v23  ;;  %632 = vst [vmem:[#allocation3 + $0x98] sm:$0x1] %v631_v3  ;;  %v634_v20 = vsel %vm9957_vm6, 0, %v633_v19  ;;  %v588_v11 = vsel %vm9939_vm5, 0, %v587_v47 }
 0x4c3   : > { %v10257_v28 = vsel %vm663_vm2, %v4710_v57, %v4673_v21  ;;  %635 = vst [vmem:[#allocation3 + $0xa4] sm:$0x1] %v634_v20  ;;  %589 = vst [vmem:[#allocation3 + $0xc0] sm:$0x1] %v588_v11  ;;  %v584_v33 = vld [vmem:[#allocation3 + $0xb4] sm:$0x1] }
 0x4c4   : > { %11970 = vst [vmem:[#allocation10_spill] sm:$0xff] %v10257_v28  ;;  %4795 = vrot.lane.b32.xlu1 %v10257_v28, %s8710_s25  ;;  %v585_v16 = vsel %vm9939_vm5, 0, %v584_v33  ;;  %v642_v17 = vld [vmem:[#allocation3 + $0xc8] sm:$0x1]  ;;  %v639_v18 = vld [vmem:[#allocation3 + $0xbc] sm:$0x1] }
 0x4c5   : > { %4608 = vrot.lane.b32.xlu0 %v4543_v39, %s8709_s12  ;;  %586 = vst [vmem:[#allocation3 + $0xb4] sm:$0x1] %v585_v16  ;;  %v643_v34 = vsel %vm9957_vm6, 0, %v642_v17  ;;  %v640_v25 = vsel %vm9957_vm6, 0, %v639_v18  ;;  %v10307_v31 = vld [vmem:[%s11892_s5] ss:$0 sm:$0xff] }
 0x4c6   : > { %644 = vst [vmem:[#allocation3 + $0xc8] sm:$0x1] %v643_v34  ;;  %641 = vst [vmem:[#allocation3 + $0xbc] sm:$0x1] %v640_v25  ;;  %v11972_v37 = vsel %vm10315_vm7, 4294967295, %v11971_v37  ;;  %vm5740_vm10 = vcmask 1041408  }
 0x4c7   : > { %11973 = vst [vmem:[#allocation11_spill] sm:$0xff] %v11972_v37  ;;  %v4054_v27 = vld [vmem:[#allocation3 + $0xc] sm:$0xf]  ;;  %v4065_v35 = vld [vmem:[#allocation3 + $0x20] sm:$0x1]  ;;  %v4576_v28 = vshll.u32 %v8560_v30, 16 }
 0x4c8   : > { %v4058_v32 = vld [vmem:[#allocation3 + $0x14] sm:$0x1]  ;;  %vm5707_vm9 = vcmask 293888  }
 0x4c9   : > { %4670 = vrot.lane.b32.xlu0 %v4618_v62, %s11951_s24 }
 0x4cd   : > { %4700 = vrot.lane.b32.xlu0 %v4663_v42, %s11951_s24 }
 0x551   : > { %v8233_v63 = vpop.f32.mrb[28].mxu1 }
 0x552   : > { %v3485_v54 = vadd.f32 %v8233_v63, %v10307_v31  ;;  %v3476_v60 = vpop.f32.mrb[29].mxu1 }
 0x553   : > { %v3477_v38 = vadd.f32 %v10307_v31, %v3476_v60  ;;  %v8234_v45 = vpop.f32.mrb[30].mxu1 }
 0x554   : > { %v3605_v55 = vmax.f32 %v3485_v54, 0.0  ;;  %v3488_v39 = vadd.f32 %v8234_v45, %v10307_v31  ;;  %v3479_v15 = vpop.f32.mrb[31].mxu1 }
 0x555   : > { %v3603_v48 = vmax.f32 %v3477_v38, 0.0  ;;  %v3480_v36 = vadd.f32 %v10307_v31, %v3479_v15 }
 0x556   : > { %v8009_v57 = vpack.c.bf16 %v3605_v55, %v3605_v55  ;;  %v3606_v21 = vmax.f32 %v3488_v39, 0.0  ;;  %v4075_v55 = vld [vmem:[#allocation3 + $0x30] sm:$0xf] }
 0x557   : > { %v8007_v62 = vpack.c.bf16 %v3603_v48, %v3603_v48  ;;  %v3604_v22 = vmax.f32 %v3480_v36, 0.0 }
 0x558   : > { %v3749_v24 = vshrl.u32 %v8009_v57, 16  ;;  %v8010_v7 = vpack.c.bf16 %v3606_v21, %v3606_v21  ;;  %v3752_v53 = vshll.u32 %v8009_v57, 16  ;;  %v4068_v21 = vld [vmem:[#allocation3 + $0x24] sm:$0xf] }
 0x559   : > { %v3732_v58 = vshrl.u32 %v8007_v62, 16  ;;  %v8008_v42 = vpack.c.bf16 %v3604_v22, %v3604_v22  ;;  %v3735_v4 = vshll.u32 %v8007_v62, 16 }
 0x55a   : > { %v3751_v50 = vrot.slane %v3749_v24, 7  ;;  %v3757_v49 = vshrl.u32 %v8010_v7, 16  ;;  %v3760_v0 = vshll.u32 %v8010_v7, 16 }
 0x55b   : > { %v3734_v43 = vrot.slane %v3732_v58, 7  ;;  %v3740_v44 = vshrl.u32 %v8008_v42, 16  ;;  %v3743_v13 = vshll.u32 %v8008_v42, 16  ;;  %v8237_v26 = vpop.f32.mrb[32].mxu1 }
 0x55c   : > { %v3754_v12 = vor.u32 %v3752_v53, %v3751_v50  ;;  %v3755_v14 = vrot.slane %v3751_v50, 4  ;;  %v3759_v5 = vrot.slane %v3757_v49, 7  ;;  %v3501_v23 = vadd.f32 %v8237_v26, %v10307_v31  ;;  %v3492_v10 = vpop.f32.mrb[33].mxu1 }
 0x55d   : > { %v3737_v2 = vor.u32 %v3735_v4, %v3734_v43  ;;  %v3738_v52 = vrot.slane %v3734_v43, 4  ;;  %v3742_v46 = vrot.slane %v3740_v44, 7  ;;  %v3493_v56 = vadd.f32 %v10307_v31, %v3492_v10  ;;  %v8238_v29 = vpop.f32.mrb[34].mxu1  ;;  %v4079_v43 = vld [vmem:[#allocation3 + $0x38] sm:$0x1] }
 0x55e   : > { %v4062_v3 = vsel %vm10315_vm7, %v3754_v12, %v4061_v1  ;;  %v3762_v8 = vor.u32 %v3760_v0, %v3759_v5  ;;  %v3764_v9 = vrot.slane %v3759_v5, 4  ;;  %v3609_v19 = vmax.f32 %v3501_v23, 0.0  ;;  %v3495_v20 = vpop.f32.mrb[35].mxu1  ;;  %v4072_v10 = vld [vmem:[#allocation3 + $0x2c] sm:$0x1] }
 0x55f   : > { %4063 = vst [vmem:[#allocation3 + $0x18] sm:$0xf] %v4062_v3  ;;  %v4055_v61 = vsel %vm10315_vm7, %v3737_v2, %v4054_v27  ;;  %v3745_v41 = vor.u32 %v3743_v13, %v3742_v46  ;;  %v3747_v40 = vrot.slane %v3742_v46, 4  ;;  %v3607_v33 = vmax.f32 %v3493_v56, 0.0 }
 0x560   : > { %4056 = vst [vmem:[#allocation3 + $0xc] sm:$0xf] %v4055_v61  ;;  %v3763_v47 = vsel %vm9245_vm15, %v3755_v14, %v3762_v8  ;;  %v4066_v11 = vsel %vm9939_vm5, %v3764_v9, %v4065_v35  ;;  %v3504_v16 = vadd.f32 %v8238_v29, %v10307_v31  ;;  %v8013_v18 = vpack.c.bf16 %v3609_v19, %v3609_v19 }
 0x561   : > { %4064 = vst.msk [vmem:[#allocation3 + $0x1c] sm:$0xf] %vm528_vm14, %v3763_v47  ;;  %4067 = vst [vmem:[#allocation3 + $0x20] sm:$0x1] %v4066_v11  ;;  %v3746_v17 = vsel %vm9245_vm15, %v3738_v52, %v3745_v41  ;;  %v4059_v34 = vsel %vm9939_vm5, %v3747_v40, %v4058_v32  ;;  %v3496_v25 = vadd.f32 %v10307_v31, %v3495_v20 }
 0x562   : > { %4057 = vst.msk [vmem:[#allocation3 + $0x10] sm:$0xf] %vm528_vm14, %v3746_v17  ;;  %4060 = vst [vmem:[#allocation3 + $0x14] sm:$0x1] %v4059_v34  ;;  %v8011_v63 = vpack.c.bf16 %v3607_v33, %v3607_v33  ;;  %v3610_v54 = vmax.f32 %v3504_v16, 0.0  ;;  %v3783_v60 = vshrl.u32 %v8013_v18, 16 }
 0x563   : > { %v3608_v38 = vmax.f32 %v3496_v25, 0.0  ;;  %v3786_v45 = vshll.u32 %v8013_v18, 16  ;;  %v8241_v48 = vpop.f32.mrb[36].mxu1 }
 0x564   : > { %v3766_v39 = vshrl.u32 %v8011_v63, 16  ;;  %v8014_v15 = vpack.c.bf16 %v3610_v54, %v3610_v54  ;;  %v3785_v36 = vrot.slane %v3783_v60, 7  ;;  %v3769_v57 = vshll.u32 %v8011_v63, 16  ;;  %v3508_v24 = vpop.f32.mrb[37].mxu1 }
 0x565   : > { %v8012_v62 = vpack.c.bf16 %v3608_v38, %v3608_v38  ;;  %v3517_v22 = vadd.f32 %v8241_v48, %v10307_v31  ;;  %v3509_v50 = vadd.f32 %v10307_v31, %v3508_v24  ;;  %v8242_v53 = vpop.f32.mrb[38].mxu1  ;;  %v4089_v38 = vld [vmem:[#allocation3 + $0x48] sm:$0xf] }
 0x566   : > { %v3768_v7 = vrot.slane %v3766_v39, 7  ;;  %v3791_v58 = vshrl.u32 %v8014_v15, 16  ;;  %v3794_v42 = vshll.u32 %v8014_v15, 16  ;;  %v3788_v49 = vor.u32 %v3786_v45, %v3785_v36  ;;  %v3511_v44 = vpop.f32.mrb[39].mxu1 }
 0x567   : > { %v3789_v1 = vrot.slane %v3785_v36, 4  ;;  %v3774_v4 = vshrl.u32 %v8012_v62, 16  ;;  %v3777_v0 = vshll.u32 %v8012_v62, 16  ;;  %v3613_v5 = vmax.f32 %v3517_v22, 0.0 }
 0x568   : > { %v3771_v12 = vor.u32 %v3769_v57, %v3768_v7  ;;  %v3772_v14 = vrot.slane %v3768_v7, 4  ;;  %v3793_v27 = vrot.slane %v3791_v58, 7  ;;  %v4076_v13 = vsel %vm10315_vm7, %v3788_v49, %v4075_v55  ;;  %v10344_v8 = vld [vmem:[#allocation3 + $0x18] sm:$0xff]   ;;  %v10346_v61 = vld [vmem:[#allocation3 + $0x20] ss:$0 sps:$4 sm:$0x11]  }
 0x569   : > { %v3776_v26 = vrot.slane %v3774_v4, 7  ;;  %v3611_v2 = vmax.f32 %v3509_v50, 0.0  ;;  %v3520_v52 = vadd.f32 %v8242_v53, %v10307_v31  ;;  %4077 = vst [vmem:[#allocation3 + $0x30] sm:$0xf] %v4076_v13  ;;  %v8017_v3 = vpack.c.bf16 %v3613_v5, %v3613_v5  ;;  %v4093_v58 = vld [vmem:[#allocation3 + $0x50] sm:$0x1] }
 0x56a   : > { %v4069_v35 = vsel %vm10315_vm7, %v3771_v12, %v4068_v21  ;;  %v3796_v46 = vor.u32 %v3794_v42, %v3793_v27  ;;  %v3798_v23 = vrot.slane %v3793_v27, 4  ;;  %v3512_v63 = vadd.f32 %v10307_v31, %v3511_v44  ;;  %v4082_v21 = vld [vmem:[#allocation3 + $0x3c] sm:$0xf]  ;;  %v10379_v27 = vld [vmem:[#allocation3 + $0x14] ss:$0 sps:$4 sm:$0x11]  }
 0x56b   : > { %4070 = vst [vmem:[#allocation3 + $0x24] sm:$0xf] %v4069_v35  ;;  %v3779_v9 = vor.u32 %v3777_v0, %v3776_v26  ;;  %v3781_v32 = vrot.slane %v3776_v26, 4  ;;  %v8015_v56 = vpack.c.bf16 %v3611_v2, %v3611_v2  ;;  %v3614_v29 = vmax.f32 %v3520_v52, 0.0  ;;  %v8245_v47 = vpop.f32.mrb[40].mxu1 }
 0x56c   : > { %v3797_v41 = vsel %vm9245_vm15, %v3789_v1, %v3796_v46  ;;  %v4080_v40 = vsel %vm9939_vm5, %v3798_v23, %v4079_v43  ;;  %v3817_v19 = vshrl.u32 %v8017_v3, 16  ;;  %v3820_v20 = vshll.u32 %v8017_v3, 16  ;;  %v3524_v34 = vpop.f32.mrb[41].mxu1 }
 0x56d   : > { %4078 = vst.msk [vmem:[#allocation3 + $0x34] sm:$0xf] %vm528_vm14, %v3797_v41  ;;  %4081 = vst [vmem:[#allocation3 + $0x38] sm:$0x1] %v4080_v40  ;;  %v3780_v11 = vsel %vm9245_vm15, %v3772_v14, %v3779_v9  ;;  %v4073_v33 = vsel %vm9939_vm5, %v3781_v32, %v4072_v10  ;;  %v3800_v16 = vshrl.u32 %v8015_v56, 16  ;;  %v3803_v17 = vshll.u32 %v8015_v56, 16 }
 0x56e   : > { %4071 = vst.msk [vmem:[#allocation3 + $0x28] sm:$0xf] %vm528_vm14, %v3780_v11  ;;  %4074 = vst [vmem:[#allocation3 + $0x2c] sm:$0x1] %v4073_v33  ;;  %v3819_v18 = vrot.slane %v3817_v19, 7  ;;  %v8018_v25 = vpack.c.bf16 %v3614_v29, %v3614_v29  ;;  %v5381_v54 = vrot.slane %v10344_v8, 1  ;;  %v3533_v39 = vadd.f32 %v8245_v47, %v10307_v31 }
 0x56f   : > { %v8246_v60 = vpop.f32.mrb[42].mxu1  ;;  %v10360_v45 = vrot.slane %v3800_v16, 7  ;;  %v5382_v55 = vrot.slane %v10346_v61, 1  ;;  %v3525_v15 = vadd.f32 %v10307_v31, %v3524_v34  ;;  %v3612_v42 = vmax.f32 %v3512_v63, 0.0  ;;  %v10377_v14 = vld [vmem:[#allocation3 + $0xc] sm:$0xff]  }
 0x570   : > { %v10365_v48 = vpop.f32.mrb[43].mxu1  ;;  %v3822_v36 = vor.u32 %v3820_v20, %v3819_v18  ;;  %v3823_v57 = vrot.slane %v3819_v18, 4  ;;  %v3825_v62 = vshrl.u32 %v8018_v25, 16  ;;  %v3828_v22 = vshll.u32 %v8018_v25, 16  ;;  %v4086_v32 = vld [vmem:[#allocation3 + $0x44] sm:$0x1] }
 0x571   : > { %v3805_v24 = vor.u32 %v3803_v17, %v10360_v45  ;;  %v3806_v7 = vrot.slane %v10360_v45, 4  ;;  %v5383_v50 = vsel %vm3056_vm0, %v5381_v54, %v5382_v55  ;;  %v3617_v1 = vmax.f32 %v3533_v39, 0.0  ;;  %v4103_v25 = vld [vmem:[#allocation3 + $0x60] sm:$0xf]  ;;  %v4096_v45 = vld [vmem:[#allocation3 + $0x54] sm:$0xf] }
 0x572   : > { %v4090_v53 = vsel %vm10315_vm7, %v3822_v36, %v4089_v38  ;;  %v3827_v49 = vrot.slane %v3825_v62, 7  ;;  %5433 = vrot.lane.b32.xlu1 %v5383_v50, %s11951_s24  ;;  %v3615_v43 = vmax.f32 %v3525_v15, 0.0  ;;  %v8016_v0 = vpack.c.bf16 %v3612_v42, %v3612_v42 }
 0x573   : > { %4091 = vst [vmem:[#allocation3 + $0x48] sm:$0xf] %v4090_v53  ;;  %v4083_v4 = vsel %vm10315_vm7, %v3805_v24, %v4082_v21  ;;  %v5148_v44 = vshrl.u32 %v10344_v8, 16  ;;  %v5150_v12 = vshll.u32 %v10344_v8, 16  ;;  %v8021_v26 = vpack.c.bf16 %v3617_v1, %v3617_v1  ;;  %v8249_v52 = vpop.f32.mrb[44].mxu1 }
 0x574   : > { %4084 = vst [vmem:[#allocation3 + $0x3c] sm:$0xf] %v4083_v4  ;;  %v3830_v5 = vor.u32 %v3828_v22, %v3827_v49  ;;  %v3832_v13 = vrot.slane %v3827_v49, 4  ;;  %v8019_v2 = vpack.c.bf16 %v3615_v43, %v3615_v43  ;;  %v3808_v35 = vshrl.u32 %v8016_v0, 16  ;;  %v3540_v3 = vpop.f32.mrb[45].mxu1 }
 0x575   : > { %v3811_v46 = vshll.u32 %v8016_v0, 16  ;;  %v5152_v23 = vrot.slane %v5150_v12, 1  ;;  %v5155_v10 = vshll.u32 %v10346_v61, 16  ;;  %v3851_v56 = vshrl.u32 %v8021_v26, 16  ;;  %v8250_v41 = vpop.f32.mrb[46].mxu1 }
 0x576   : > { %v3831_v9 = vsel %vm9245_vm15, %v3823_v57, %v3830_v5  ;;  %v4094_v8 = vsel %vm9939_vm5, %v3832_v13, %v4093_v58  ;;  %v3854_v29 = vshll.u32 %v8021_v26, 16  ;;  %v3810_v40 = vrot.slane %v3808_v35, 7  ;;  %v3543_v11 = vpop.f32.mrb[47].mxu1 }
 0x577   : > { %4092 = vst.msk [vmem:[#allocation3 + $0x4c] sm:$0xf] %vm528_vm14, %v3831_v9  ;;  %4095 = vst [vmem:[#allocation3 + $0x50] sm:$0x1] %v4094_v8  ;;  %v3834_v19 = vshrl.u32 %v8019_v2, 16  ;;  %v3837_v20 = vshll.u32 %v8019_v2, 16  ;;  %v5153_v47 = vor.u32 %v5152_v23, %v5148_v44  ;;  %v3536_v16 = vadd.f32 %v8246_v60, %v10307_v31 }
 0x578   : > { %v10387_v61 = vrot.slane %v3851_v56, 7  ;;  %v5157_v33 = vrot.slane %v5155_v10, 1  ;;  %v5378_v17 = vrot.slane %v10377_v14, 1  ;;  %v3813_v34 = vor.u32 %v3811_v46, %v3810_v40  ;;  %v10428_v8 = vld [vmem:[#allocation3 + $0x30] sm:$0xff]  }
 0x579   : > { %v3815_v18 = vrot.slane %v3810_v40, 4  ;;  %v10391_v63 = vrot.slane %v3834_v19, 7  ;;  %v5379_v54 = vrot.slane %v10379_v27, 1  ;;  %v3618_v39 = vmax.f32 %v3536_v16, 0.0  ;;  %v4100_v16 = vld [vmem:[#allocation3 + $0x5c] sm:$0x1] }
 0x57a   : > { %v3856_v38 = vor.u32 %v3854_v29, %v10387_v61  ;;  %v5158_v55 = vsel %vm2803_vm13, %v5153_v47, %v5157_v33  ;;  %v3814_v15 = vsel %vm9245_vm15, %v3806_v7, %v3813_v34  ;;  %v3857_v36 = vrot.slane %v10387_v61, 4 }
 0x57b   : > { %v4087_v60 = vsel %vm9939_vm5, %v3815_v18, %v4086_v32  ;;  %v3839_v57 = vor.u32 %v3837_v20, %v10391_v63  ;;  %5343 = vrot.lane.b32.xlu0 %v5158_v55, %s8709_s12  ;;  %4085 = vst.msk [vmem:[#allocation3 + $0x40] sm:$0xf] %vm528_vm14, %v3814_v15  ;;  %v8022_v62 = vpack.c.bf16 %v3618_v39, %v3618_v39  ;;  %v3840_v7 = vrot.slane %v10391_v63, 4  ;;  %v10415_v53 = vpop.f32.mrb[48].mxu1 }
 0x57c   : > { %4088 = vst [vmem:[#allocation3 + $0x44] sm:$0x1] %v4087_v60  ;;  %v4104_v21 = vsel %vm10315_vm7, %v3856_v38, %v4103_v25  ;;  %v5380_v22 = vsel %vm3056_vm0, %v5378_v17, %v5379_v54  ;;  %v3528_v24 = vadd.f32 %v10307_v31, %v10365_v48  ;;  %v5138_v42 = vshll.u32 %v10377_v14, 16  ;;  %v10419_v4 = vpop.f32.mrb[49].mxu1  ;;  %v10440_v38 = vld [vmem:[#allocation3 + $0x24] sm:$0xff]  }
 0x57d   : > { %4105 = vst [vmem:[#allocation3 + $0x60] sm:$0xf] %v4104_v21  ;;  %v4097_v58 = vsel %vm10315_vm7, %v3839_v57, %v4096_v45  ;;  %5431 = vrot.lane.b32.xlu1 %v5380_v22, %s11951_s24  ;;  %v5143_v50 = vshll.u32 %v10379_v27, 16  ;;  %v3859_v49 = vshrl.u32 %v8022_v62, 16  ;;  %v5136_v43 = vshrl.u32 %v10377_v14, 16  ;;  %v10423_v13 = vpop.f32.mrb[50].mxu1 }
 0x57e   : > { %4098 = vst [vmem:[#allocation3 + $0x54] sm:$0xf] %v4097_v58  ;;  %v3616_v1 = vmax.f32 %v3528_v24, 0.0  ;;  %v3549_v48 = vadd.f32 %v8249_v52, %v10307_v31  ;;  %v3862_v0 = vshll.u32 %v8022_v62, 16  ;;  %v5140_v44 = vrot.slane %v5138_v42, 1  ;;  %v10426_v46 = vpop.f32.mrb[51].mxu1 }
 0x57f   : > { %v3541_v12 = vadd.f32 %v10307_v31, %v3540_v3  ;;  %v3552_v5 = vadd.f32 %v8250_v41, %v10307_v31  ;;  %v3861_v27 = vrot.slane %v3859_v49, 7  ;;  %v3544_v35 = vadd.f32 %v10307_v31, %v3543_v11  ;;  %v4107_v14 = vld [vmem:[#allocation3 + $0x68] sm:$0x1]  ;;  %v10430_v41 = vld [vmem:[#allocation3 + $0x38] ss:$0 sps:$4 sm:$0x11]  }
 0x580   : > { %v8020_v26 = vpack.c.bf16 %v3616_v1, %v3616_v1  ;;  %v3621_v2 = vmax.f32 %v3549_v48, 0.0  ;;  %v5141_v23 = vor.u32 %v5140_v44, %v5136_v43  ;;  %v5145_v52 = vrot.slane %v5143_v50, 1  ;;  %v10442_v45 = vld [vmem:[#allocation3 + $0x2c] ss:$0 sps:$4 sm:$0x11]  }
 0x581   : > { %v3619_v10 = vmax.f32 %v3541_v12, 0.0  ;;  %v3622_v9 = vmax.f32 %v3552_v5, 0.0  ;;  %v3864_v32 = vor.u32 %v3862_v0, %v3861_v27  ;;  %v3866_v3 = vrot.slane %v3861_v27, 4  ;;  %v4117_v60 = vld [vmem:[#allocation3 + $0x78] sm:$0xf] }
 0x582   : > { %v3842_v56 = vshrl.u32 %v8020_v26, 16  ;;  %v3845_v29 = vshll.u32 %v8020_v26, 16  ;;  %v5146_v40 = vsel %vm2803_vm13, %v5141_v23, %v5145_v52  ;;  %v8025_v19 = vpack.c.bf16 %v3621_v2, %v3621_v2  ;;  %v4110_v1 = vld [vmem:[#allocation3 + $0x6c] sm:$0xf]  ;;  %v4121_v27 = vld [vmem:[#allocation3 + $0x80] sm:$0x1]  ;;  %v10461_v26 = vpop.permute.xlu0 %4584 }
 0x583   : > { %v8023_v20 = vpack.c.bf16 %v3619_v10, %v3619_v10  ;;  %v8026_v47 = vpack.c.bf16 %v3622_v9, %v3622_v9  ;;  %v3865_v11 = vsel %vm9245_vm15, %v3857_v36, %v3864_v32  ;;  %v4108_v61 = vsel %vm9939_vm5, %v3866_v3, %v4107_v14  ;;  %5341 = vrot.lane.b32.xlu1 %v5146_v40, %s8709_s12  ;;  %v10444_v55 = vpop.f32.mrb[52].mxu1 }
 0x584   : > { %v3844_v33 = vrot.slane %v3842_v56, 7  ;;  %v3620_v17 = vmax.f32 %v3544_v35, 0.0  ;;  %4106 = vst.msk [vmem:[#allocation3 + $0x64] sm:$0xf] %vm528_vm14, %v3865_v11  ;;  %4109 = vst [vmem:[#allocation3 + $0x68] sm:$0x1] %v4108_v61 }
 0x585   : > { %v3885_v34 = vshrl.u32 %v8025_v19, 16  ;;  %v3888_v18 = vshll.u32 %v8025_v19, 16  ;;  %v3868_v25 = vshrl.u32 %v8023_v20, 16  ;;  %v5387_v54 = vrot.slane %v10428_v8, 1  ;;  %v10446_v21 = vpop.f32.mrb[53].mxu1 }
 0x586   : > { %v3847_v39 = vor.u32 %v3845_v29, %v3844_v33  ;;  %v3849_v15 = vrot.slane %v3844_v33, 4  ;;  %v3871_v36 = vshll.u32 %v8023_v20, 16  ;;  %v3893_v57 = vshrl.u32 %v8026_v47, 16  ;;  %v10449_v42 = vpop.f32.mrb[54].mxu1  ;;  %v4114_v19 = vld [vmem:[#allocation3 + $0x74] sm:$0x1] }
 0x587   : > { %v3887_v62 = vrot.slane %v3885_v34, 7  ;;  %v3870_v22 = vrot.slane %v3868_v25, 7  ;;  %v8024_v24 = vpack.c.bf16 %v3620_v17, %v3620_v17  ;;  %v5388_v58 = vrot.slane %v10430_v41, 1  ;;  %v10457_v0 = vpop.f32.mrb[55].mxu1 }
 0x588   : > { %v3848_v50 = vsel %vm9245_vm15, %v3840_v7, %v3847_v39  ;;  %v4101_v49 = vsel %vm9939_vm5, %v3849_v15, %v4100_v16  ;;  %v3895_v43 = vrot.slane %v3893_v57, 7  ;;  %v3896_v48 = vshll.u32 %v8026_v47, 16  ;;  %v10492_v15 = vpop.permute.xlu0 %4586 }
 0x589   : > { %4099 = vst.msk [vmem:[#allocation3 + $0x58] sm:$0xf] %vm528_vm14, %v3848_v50  ;;  %4102 = vst [vmem:[#allocation3 + $0x5c] sm:$0x1] %v4101_v49  ;;  %v3890_v44 = vor.u32 %v3888_v18, %v3887_v62  ;;  %v3891_v12 = vrot.slane %v3887_v62, 4  ;;  %v3873_v5 = vor.u32 %v3871_v36, %v3870_v22  ;;  %v5384_v63 = vrot.slane %v10440_v38, 1 }
 0x58a   : > { %v3898_v7 = vor.u32 %v3896_v48, %v3895_v43  ;;  %v3900_v2 = vrot.slane %v3895_v43, 4  ;;  %v3876_v35 = vshrl.u32 %v8024_v24, 16  ;;  %v3879_v14 = vshll.u32 %v8024_v24, 16 }
 0x58b   : > { %v4118_v23 = vsel %vm10315_vm7, %v3890_v44, %v4117_v60  ;;  %v4111_v52 = vsel %vm10315_vm7, %v3873_v5, %v4110_v1  ;;  %v5389_v10 = vsel %vm3056_vm0, %v5387_v54, %v5388_v58  ;;  %v5385_v9 = vrot.slane %v10442_v45, 1  ;;  %v10481_v61 = vpop.f32.mrb[56].mxu1  ;;  %v10500_v58 = vld [vmem:[#allocation3 + $0x48] sm:$0xff]   ;;  %v10508_v44 = vld [vmem:[#allocation3 + $0x50] ss:$0 sps:$4 sm:$0x11]  }
 0x58c   : > { %4119 = vst [vmem:[#allocation3 + $0x78] sm:$0xf] %v4118_v23  ;;  %4112 = vst [vmem:[#allocation3 + $0x6c] sm:$0xf] %v4111_v52  ;;  %v3899_v32 = vsel %vm9245_vm15, %v3891_v12, %v3898_v7  ;;  %v4122_v3 = vsel %vm9939_vm5, %v3900_v2, %v4121_v27  ;;  %v3878_v56 = vrot.slane %v3876_v35, 7  ;;  %5437 = vrot.lane.b32.xlu1 %v5389_v10, %s11951_s24  ;;  %v3874_v40 = vrot.slane %v3870_v22, 4  ;;  %v10510_v12 = vpop.permute.xlu1 %4674 }
 0x58d   : > { %v3565_v29 = vadd.f32 %v10415_v53, %v10307_v31  ;;  %4120 = vst.msk [vmem:[#allocation3 + $0x7c] sm:$0xf] %vm528_vm14, %v3899_v32  ;;  %4123 = vst [vmem:[#allocation3 + $0x80] sm:$0x1] %v4122_v3  ;;  %v5386_v20 = vsel %vm3056_vm0, %v5384_v63, %v5385_v9  ;;  %v3557_v47 = vadd.f32 %v10307_v31, %v10419_v4  ;;  %v5174_v11 = vshll.u32 %v10428_v8, 16  ;;  %v10485_v34 = vpop.f32.mrb[57].mxu1  ;;  %v10515_v3 = vpop.permute.xlu0 %4676 }
 0x58e   : > { %v3881_v33 = vor.u32 %v3879_v14, %v3878_v56  ;;  %v3883_v16 = vrot.slane %v3878_v56, 4  ;;  %5435 = vrot.lane.b32.xlu0 %v5386_v20, %s11951_s24  ;;  %v5179_v53 = vshll.u32 %v10430_v41, 16  ;;  %v5172_v25 = vshrl.u32 %v10428_v8, 16  ;;  %v10490_v39 = vpop.f32.mrb[58].mxu1  ;;  %v4131_v27 = vld [vmem:[#allocation3 + $0x90] sm:$0xf] }
 0x58f   : > { %v3625_v17 = vmax.f32 %v3565_v29, 0.0  ;;  %v3623_v18 = vmax.f32 %v3557_v47, 0.0  ;;  %v5176_v54 = vrot.slane %v5174_v11, 1  ;;  %v3568_v4 = vadd.f32 %v10423_v13, %v10307_v31  ;;  %v10502_v50 = vpop.f32.mrb[59].mxu1  ;;  %v4124_v23 = vld [vmem:[#allocation3 + $0x84] sm:$0xf] }
 0x590   : > { %v3882_v60 = vsel %vm9245_vm15, %v3874_v40, %v3881_v33  ;;  %v4115_v36 = vsel %vm9939_vm5, %v3883_v16, %v4114_v19  ;;  %v5181_v57 = vrot.slane %v5179_v53, 1  ;;  %v5162_v13 = vshll.u32 %v10440_v38, 16  ;;  %v10517_v20 = vld [vmem:[#allocation3 + $0x3c] sm:$0xff]   ;;  %v10519_v47 = vld [vmem:[#allocation3 + $0x44] ss:$0 sps:$4 sm:$0x11]  }
 0x591   : > { %v8029_v41 = vpack.c.bf16 %v3625_v17, %v3625_v17  ;;  %4113 = vst.msk [vmem:[#allocation3 + $0x70] sm:$0xf] %vm528_vm14, %v3882_v60  ;;  %4116 = vst [vmem:[#allocation3 + $0x74] sm:$0x1] %v4115_v36  ;;  %v8027_v62 = vpack.c.bf16 %v3623_v18, %v3623_v18  ;;  %v5177_v22 = vor.u32 %v5176_v54, %v5172_v25  ;;  %v3626_v24 = vmax.f32 %v3568_v4, 0.0  ;;  %v10525_v60 = vpop.permute.xlu1 %4588 }
 0x592   : > { %v5160_v1 = vshrl.u32 %v10440_v38, 16  ;;  %v5167_v43 = vshll.u32 %v10442_v45, 16  ;;  %v3560_v48 = vadd.f32 %v10307_v31, %v10426_v46  ;;  %v5164_v52 = vrot.slane %v5162_v13, 1  ;;  %v4135_v17 = vld [vmem:[#allocation3 + $0x98] sm:$0x1] }
 0x593   : > { %v3919_v49 = vshrl.u32 %v8029_v41, 16  ;;  %v3922_v5 = vshll.u32 %v8029_v41, 16  ;;  %v3902_v63 = vshrl.u32 %v8027_v62, 16  ;;  %v5182_v7 = vsel %vm2803_vm13, %v5177_v22, %v5181_v57 }
 0x594   : > { %v8030_v2 = vpack.c.bf16 %v3626_v24, %v3626_v24  ;;  %v3905_v14 = vshll.u32 %v8027_v62, 16  ;;  %5347 = vrot.lane.b32.xlu1 %v5182_v7, %s8709_s12  ;;  %v3624_v45 = vmax.f32 %v3560_v48, 0.0  ;;  %v5169_v46 = vrot.slane %v5167_v43, 1 }
 0x595   : > { %v3921_v35 = vrot.slane %v3919_v49, 7  ;;  %v3904_v10 = vrot.slane %v3902_v63, 7  ;;  %v5393_v32 = vrot.slane %v10500_v58, 1  ;;  %v5165_v40 = vor.u32 %v5164_v52, %v5160_v1  ;;  %v10542_v63 = vpop.permute.xlu0 %4590 }
 0x596   : > { %v3927_v9 = vshrl.u32 %v8030_v2, 16  ;;  %v3930_v29 = vshll.u32 %v8030_v2, 16  ;;  %v8028_v19 = vpack.c.bf16 %v3624_v45, %v3624_v45  ;;  %v5394_v53 = vrot.slane %v10508_v44, 1 }
 0x597   : > { %v3924_v56 = vor.u32 %v3922_v5, %v3921_v35  ;;  %v3925_v11 = vrot.slane %v3921_v35, 4  ;;  %v3907_v33 = vor.u32 %v3905_v14, %v3904_v10  ;;  %v5170_v25 = vsel %vm2803_vm13, %v5165_v40, %v5169_v46  ;;  %v4128_v5 = vld [vmem:[#allocation3 + $0x8c] sm:$0x1] }
 0x598   : > { %v3929_v16 = vrot.slane %v3927_v9, 7  ;;  %v3910_v54 = vshrl.u32 %v8028_v19, 16  ;;  %v3913_v4 = vshll.u32 %v8028_v19, 16  ;;  %5345 = vrot.lane.b32.xlu0 %v5170_v25, %s8709_s12  ;;  %v5395_v62 = vsel %vm3056_vm0, %v5393_v32, %v5394_v53  ;;  %v10556_v32 = vpop.permute.xlu1 %4678  ;;  %v4145_v53 = vld [vmem:[#allocation3 + $0xa8] sm:$0xf] }
 0x599   : > { %v4132_v18 = vsel %vm10315_vm7, %v3924_v56, %v4131_v27  ;;  %v4125_v36 = vsel %vm10315_vm7, %v3907_v33, %v4124_v23  ;;  %5441 = vrot.lane.b32.xlu1 %v5395_v62, %s11951_s24  ;;  %v5390_v24 = vrot.slane %v10517_v20, 1  ;;  %v5391_v13 = vrot.slane %v10519_v47, 1 }
 0x59a   : > { %4133 = vst [vmem:[#allocation3 + $0x90] sm:$0xf] %v4132_v18  ;;  %v3932_v41 = vor.u32 %v3930_v29, %v3929_v16  ;;  %v3934_v57 = vrot.slane %v3929_v16, 4  ;;  %4126 = vst [vmem:[#allocation3 + $0x84] sm:$0xf] %v4125_v36  ;;  %v3912_v22 = vrot.slane %v3910_v54, 7  ;;  %v3581_v49 = vadd.f32 %v10444_v55, %v10307_v31  ;;  %v10566_v36 = vpop.permute.xlu0 %4680 }
 0x59b   : > { %v3908_v1 = vrot.slane %v3904_v10, 4  ;;  %v3573_v27 = vadd.f32 %v10307_v31, %v10446_v21  ;;  %v5392_v55 = vsel %vm3056_vm0, %v5390_v24, %v5391_v13  ;;  %v5198_v23 = vshll.u32 %v10500_v58, 16  ;;  %v10562_v16 = vld [vmem:[#allocation3 + $0x68] ss:$0 sps:$4 sm:$0x11]  }
 0x59c   : > { %v3933_v43 = vsel %vm9245_vm15, %v3925_v11, %v3932_v41  ;;  %v4136_v48 = vsel %vm9939_vm5, %v3934_v57, %v4135_v17  ;;  %v3915_v7 = vor.u32 %v3913_v4, %v3912_v22  ;;  %v3917_v2 = vrot.slane %v3912_v22, 4  ;;  %5439 = vrot.lane.b32.xlu0 %v5392_v55, %s11951_s24  ;;  %v10564_v4 = vld [vmem:[#allocation3 + $0x60] sm:$0xff]   ;;  %v10570_v24 = vld [vmem:[#allocation3 + $0x5c] ss:$0 sps:$4 sm:$0x11]   ;;  %v10578_v55 = vpop.permute.xlu1 %4592 }
 0x59d   : > { %4134 = vst.msk [vmem:[#allocation3 + $0x94] sm:$0xf] %vm528_vm14, %v3933_v43  ;;  %4137 = vst [vmem:[#allocation3 + $0x98] sm:$0x1] %v4136_v48  ;;  %v3629_v35 = vmax.f32 %v3581_v49, 0.0  ;;  %v3627_v14 = vmax.f32 %v3573_v27, 0.0  ;;  %v3584_v21 = vadd.f32 %v10449_v42, %v10307_v31  ;;  %v3576_v22 = vadd.f32 %v10307_v31, %v10457_v0 }
 0x59e   : > { %v5203_v52 = vshll.u32 %v10508_v44, 16  ;;  %v3916_v45 = vsel %vm9245_vm15, %v3908_v1, %v3915_v7  ;;  %v4129_v10 = vsel %vm9939_vm5, %v3917_v2, %v4128_v5  ;;  %v5196_v46 = vshrl.u32 %v10500_v58, 16  ;;  %v10575_v43 = vld [vmem:[#allocation3 + $0x54] sm:$0xff]   ;;  %v4138_v5 = vld [vmem:[#allocation3 + $0x9c] sm:$0xf] }
 0x59f   : > { %v8033_v9 = vpack.c.bf16 %v3629_v35, %v3629_v35  ;;  %4127 = vst.msk [vmem:[#allocation3 + $0x88] sm:$0xf] %vm528_vm14, %v3916_v45  ;;  %4130 = vst [vmem:[#allocation3 + $0x8c] sm:$0x1] %v4129_v10  ;;  %v8031_v56 = vpack.c.bf16 %v3627_v14, %v3627_v14  ;;  %v5200_v29 = vrot.slane %v5198_v23, 1  ;;  %v3630_v44 = vmax.f32 %v3584_v21, 0.0 }
 0x5a0   : > { %v5184_v40 = vshrl.u32 %v10517_v20, 16  ;;  %v5205_v19 = vrot.slane %v5203_v52, 1  ;;  %v5186_v11 = vshll.u32 %v10517_v20, 16  ;;  %v5191_v33 = vshll.u32 %v10519_v47, 16  ;;  %v4149_v23 = vld [vmem:[#allocation3 + $0xb0] sm:$0x1] }
 0x5a1   : > { %v3953_v42 = vshrl.u32 %v8033_v9, 16  ;;  %v3956_v17 = vshll.u32 %v8033_v9, 16  ;;  %v3936_v18 = vshrl.u32 %v8031_v56, 16  ;;  %v5201_v25 = vor.u32 %v5200_v29, %v5196_v46 }
 0x5a2   : > { %v8034_v54 = vpack.c.bf16 %v3630_v44, %v3630_v44  ;;  %v3939_v57 = vshll.u32 %v8031_v56, 16  ;;  %v5188_v62 = vrot.slane %v5186_v11, 1  ;;  %v5193_v1 = vrot.slane %v5191_v33, 1 }
 0x5a3   : > { %v3955_v41 = vrot.slane %v3953_v42, 7  ;;  %v10572_v47 = vrot.slane %v3936_v18, 7  ;;  %v5206_v13 = vsel %vm2803_vm13, %v5201_v25, %v5205_v19  ;;  %v3628_v2 = vmax.f32 %v3576_v22, 0.0  ;;  %v10607_v22 = vpop.permute.xlu1 %4682 }
 0x5a4   : > { %v3961_v49 = vshrl.u32 %v8034_v54, 16  ;;  %5351 = vrot.lane.b32.xlu1 %v5206_v13, %s8709_s12  ;;  %v3964_v27 = vshll.u32 %v8034_v54, 16  ;;  %v5189_v7 = vor.u32 %v5188_v62, %v5184_v40  ;;  %v5399_v52 = vrot.slane %v10564_v4, 1  ;;  %v10590_v40 = vpop.permute.xlu0 %4594 }
 0x5a5   : > { %v3958_v48 = vor.u32 %v3956_v17, %v3955_v41  ;;  %v3959_v0 = vrot.slane %v3955_v41, 4  ;;  %v3941_v35 = vor.u32 %v3939_v57, %v10572_v47  ;;  %v8032_v10 = vpack.c.bf16 %v3628_v2, %v3628_v2 }
 0x5a6   : > { %v3963_v14 = vrot.slane %v3961_v49, 7  ;;  %v5194_v45 = vsel %vm2803_vm13, %v5189_v7, %v5193_v1  ;;  %v5400_v9 = vrot.slane %v10562_v16, 1  ;;  %v5396_v44 = vrot.slane %v10575_v43, 1 }
 0x5a7   : > { %v4146_v21 = vsel %vm10315_vm7, %v3958_v48, %v4145_v53  ;;  %v4139_v46 = vsel %vm10315_vm7, %v3941_v35, %v4138_v5  ;;  %5349 = vrot.lane.b32.xlu0 %v5194_v45, %s8709_s12  ;;  %v3942_v42 = vrot.slane %v10572_v47, 4  ;;  %v3944_v19 = vshrl.u32 %v8032_v10, 16  ;;  %v4142_v47 = vld [vmem:[#allocation3 + $0xa4] sm:$0x1] }
 0x5a8   : > { %4147 = vst [vmem:[#allocation3 + $0xa8] sm:$0xf] %v4146_v21  ;;  %v3966_v56 = vor.u32 %v3964_v27, %v3963_v14  ;;  %v3968_v29 = vrot.slane %v3963_v14, 4  ;;  %4140 = vst [vmem:[#allocation3 + $0x9c] sm:$0xf] %v4139_v46  ;;  %v5401_v11 = vsel %vm3056_vm0, %v5399_v52, %v5400_v9  ;;  %v5397_v33 = vrot.slane %v10570_v24, 1 }
 0x5a9   : > { %5445 = vrot.lane.b32.xlu1 %v5401_v11, %s11951_s24  ;;  %v3597_v18 = vadd.f32 %v10481_v61, %v10307_v31  ;;  %v3589_v25 = vadd.f32 %v10307_v31, %v10485_v34  ;;  %v3946_v54 = vrot.slane %v3944_v19, 7  ;;  %v3947_v41 = vshll.u32 %v8032_v10, 16  ;;  %v8603_v31 = vld [vmem:[%s11892_s5] ss:$0 sm:$0xff]  ;;  %v10616_v14 = vld [vmem:[#allocation3 + $0x78] sm:$0xff]  }
 0x5aa   : > { %v3967_v17 = vsel %vm9245_vm15, %v3959_v0, %v3966_v56  ;;  %v4150_v53 = vsel %vm9939_vm5, %v3968_v29, %v4149_v23  ;;  %v5398_v57 = vsel %vm3056_vm0, %v5396_v44, %v5397_v33  ;;  %v5222_v62 = vshll.u32 %v10564_v4, 16  ;;  %v10618_v23 = vpop.permute.xlu0 %4684  ;;  %v10625_v45 = vld [vmem:[#allocation3 + $0x80] ss:$0 sps:$4 sm:$0x11]   ;;  %v4152_v44 = vld [vmem:[#allocation3 + $0xb4] sm:$0xf] }
 0x5ab   : > { %4148 = vst.msk [vmem:[#allocation3 + $0xac] sm:$0xf] %vm528_vm14, %v3967_v17  ;;  %4151 = vst [vmem:[#allocation3 + $0xb0] sm:$0x1] %v4150_v53  ;;  %5443 = vrot.lane.b32.xlu0 %v5398_v57, %s11951_s24  ;;  %v3633_v13 = vmax.f32 %v3597_v18, 0.0  ;;  %v3631_v49 = vmax.f32 %v3589_v25, 0.0  ;;  %v3600_v34 = vadd.f32 %v8603_v31, %v10490_v39  ;;  %v3949_v1 = vor.u32 %v3947_v41, %v3946_v54  ;;  %v10633_v53 = vpop.permute.xlu1 %4596 }
 0x5ac   : > { %v5227_v61 = vshll.u32 %v10562_v16, 16  ;;  %v3951_v48 = vrot.slane %v3946_v54, 4  ;;  %v5220_v5 = vshrl.u32 %v10564_v4, 16  ;;  %v5224_v27 = vrot.slane %v5222_v62, 1  ;;  %v4159_v29 = vld [vmem:[#allocation3 + $0xc0] sm:$0xf] }
 0x5ad   : > { %v8037_v7 = vpack.c.bf16 %v3633_v13, %v3633_v13  ;;  %v8035_v2 = vpack.c.bf16 %v3631_v49, %v3631_v49  ;;  %v3634_v35 = vmax.f32 %v3600_v34, 0.0  ;;  %v3950_v16 = vsel %vm9245_vm15, %v3942_v42, %v3949_v1  ;;  %v10631_v17 = vld [vmem:[#allocation3 + $0x74] ss:$0 sps:$4 sm:$0x11]   ;;  %v10639_v57 = vld [vmem:[#allocation3 + $0x6c] sm:$0xff]  }
 0x5ae   : > { %v5229_v0 = vrot.slane %v5227_v61, 1  ;;  %v4143_v52 = vsel %vm9939_vm5, %v3951_v48, %v4142_v47  ;;  %v5225_v39 = vor.u32 %v5224_v27, %v5220_v5  ;;  %v5210_v21 = vshll.u32 %v10575_v43, 16  ;;  %4141 = vst.msk [vmem:[#allocation3 + $0xa0] sm:$0xf] %vm528_vm14, %v3950_v16  ;;  %v10643_v48 = vpop.permute.xlu0 %4598 }
 0x5af   : > { %4144 = vst [vmem:[#allocation3 + $0xa4] sm:$0x1] %v4143_v52  ;;  %v3987_v10 = vshrl.u32 %v8037_v7, 16  ;;  %v3990_v9 = vshll.u32 %v8037_v7, 16  ;;  %v3970_v46 = vshrl.u32 %v8035_v2, 16  ;;  %v5208_v56 = vshrl.u32 %v10575_v43, 16 }
 0x5b0   : > { %v5230_v42 = vsel %vm2803_vm13, %v5225_v39, %v5229_v0  ;;  %v8038_v19 = vpack.c.bf16 %v3634_v35, %v3634_v35  ;;  %v5212_v11 = vrot.slane %v5210_v21, 1  ;;  %v5215_v33 = vshll.u32 %v10570_v24, 16  ;;  %v4163_v0 = vld [vmem:[#allocation3 + $0xc8] sm:$0x1] }
 0x5b1   : > { %v3989_v18 = vrot.slane %v3987_v10, 7  ;;  %v10635_v25 = vrot.slane %v3970_v46, 7  ;;  %v3973_v54 = vshll.u32 %v8035_v2, 16  ;;  %5355 = vrot.lane.b32.xlu1 %v5230_v42, %s8709_s12  ;;  %v3592_v41 = vadd.f32 %v8603_v31, %v10502_v50  ;;  %v8546_v42 = vld [vmem:[#allocation3 + $0x98] ss:$0 sps:$4 sm:$0x11]  }
 0x5b2   : > { %v3995_v62 = vshrl.u32 %v8038_v19, 16  ;;  %v5213_v47 = vor.u32 %v5212_v11, %v5208_v56  ;;  %v5217_v13 = vrot.slane %v5215_v33, 1  ;;  %v5405_v49 = vrot.slane %v10616_v14, 1 }
 0x5b3   : > { %v3992_v24 = vor.u32 %v3990_v9, %v3989_v18  ;;  %v3993_v61 = vrot.slane %v3989_v18, 4  ;;  %v3975_v34 = vor.u32 %v3973_v54, %v10635_v25  ;;  %v3998_v1 = vshll.u32 %v8038_v19, 16  ;;  %v10655_v9 = vpop.permute.xlu1 %4686  ;;  %v10667_v18 = vld [vmem:[#allocation3 + $0x84] sm:$0xff]   ;;  %v8548_v54 = vld [vmem:[#allocation3 + $0x8c] ss:$0 sps:$4 sm:$0x11]  }
 0x5b4   : > { %v3997_v5 = vrot.slane %v3995_v62, 7  ;;  %v5218_v27 = vsel %vm2803_vm13, %v5213_v47, %v5217_v13  ;;  %v3632_v7 = vmax.f32 %v3592_v41, 0.0  ;;  %v5406_v50 = vrot.slane %v10625_v45, 1  ;;  %v10673_v13 = vpop.permute.xlu0 %4688 }
 0x5b5   : > { %v4160_v31 = vsel %vm10315_vm7, %v3992_v24, %v4159_v29  ;;  %v4153_v2 = vsel %vm10315_vm7, %v3975_v34, %v4152_v44  ;;  %5353 = vrot.lane.b32.xlu0 %v5218_v27, %s8709_s12  ;;  %v5402_v35 = vrot.slane %v10639_v57, 1  ;;  %v5403_v16 = vrot.slane %v10631_v17, 1  ;;  %v10661_v44 = vld [vmem:[#allocation3 + $0x90] sm:$0xff]  }
 0x5b6   : > { %4161 = vst [vmem:[#allocation3 + $0xc0] sm:$0xf] %v4160_v31  ;;  %4154 = vst [vmem:[#allocation3 + $0xb4] sm:$0xf] %v4153_v2  ;;  %v4000_v52 = vor.u32 %v3998_v1, %v3997_v5  ;;  %v4002_v39 = vrot.slane %v3997_v5, 4  ;;  %v8036_v21 = vpack.c.bf16 %v3632_v7, %v3632_v7  ;;  %v5407_v10 = vsel %vm3056_vm0, %v5405_v49, %v5406_v50 }
 0x5b7   : > { %5449 = vrot.lane.b32.xlu1 %v5407_v10, %s11951_s24  ;;  %v5404_v46 = vsel %vm3056_vm0, %v5402_v35, %v5403_v16  ;;  %v5246_v56 = vshll.u32 %v10616_v14, 16  ;;  %v5251_v29 = vshll.u32 %v10625_v45, 16  ;;  %v5244_v45 = vshrl.u32 %v10616_v14, 16  ;;  %v4156_v1 = vld [vmem:[#allocation3 + $0xbc] sm:$0x1]  ;;  %v10680_v16 = vpop.permute.xlu1 %4600 }
 0x5b8   : > { %v4001_v19 = vsel %vm9245_vm15, %v3993_v61, %v4000_v52  ;;  %v4164_v11 = vsel %vm9939_vm5, %v4002_v39, %v4163_v0  ;;  %v3978_v33 = vshrl.u32 %v8036_v21, 16  ;;  %v3981_v41 = vshll.u32 %v8036_v21, 16 }
 0x5b9   : > { %4162 = vst.msk [vmem:[#allocation3 + $0xc4] sm:$0xf] %vm528_vm14, %v4001_v19  ;;  %4165 = vst [vmem:[#allocation3 + $0xc8] sm:$0x1] %v4164_v11  ;;  %5447 = vrot.lane.b32.xlu0 %v5404_v46, %s11951_s24  ;;  %v5248_v62 = vrot.slane %v5246_v56, 1  ;;  %v5234_v47 = vshll.u32 %v10639_v57, 16 }
 0x5ba   : > { %v3980_v49 = vrot.slane %v3978_v33, 7  ;;  %v5253_v24 = vrot.slane %v5251_v29, 1  ;;  %v5232_v61 = vshrl.u32 %v10639_v57, 16  ;;  %v5239_v34 = vshll.u32 %v10631_v17, 16  ;;  %v10689_v29 = vld [vmem:[#allocation3 + $0xa8] sm:$0xff]  }
 0x5bb   : > { %v5249_v5 = vor.u32 %v5248_v62, %v5244_v45  ;;  %v5236_v27 = vrot.slane %v5234_v47, 1  ;;  %v5411_v7 = vrot.slane %v10661_v44, 1  ;;  %v5412_v50 = vrot.slane %v8546_v42, 1  ;;  %v8550_v19 = vld [vmem:[#allocation3 + $0xb0] ss:$0 sps:$4 sm:$0x11]  }
 0x5bc   : > { %v3976_v31 = vrot.slane %v10635_v25, 4  ;;  %v3983_v2 = vor.u32 %v3981_v41, %v3980_v49  ;;  %v3985_v0 = vrot.slane %v3980_v49, 4  ;;  %v5408_v35 = vrot.slane %v10667_v18, 1  ;;  %v10695_v62 = vld [vmem:[#allocation3 + $0x9c] sm:$0xff]   ;;  %v10697_v49 = vpop.permute.xlu0 %4602 }
 0x5bd   : > { %v5254_v52 = vsel %vm2803_vm13, %v5249_v5, %v5253_v24  ;;  %v5237_v39 = vor.u32 %v5236_v27, %v5232_v61  ;;  %v5241_v21 = vrot.slane %v5239_v34, 1  ;;  %v5409_v10 = vrot.slane %v8548_v54, 1  ;;  %v8552_v47 = vld [vmem:[#allocation3 + $0xa4] ss:$0 sps:$4 sm:$0x11]  }
 0x5be   : > { %v3984_v17 = vsel %vm9245_vm15, %v3976_v31, %v3983_v2  ;;  %v4157_v46 = vsel %vm9939_vm5, %v3985_v0, %v4156_v1  ;;  %5359 = vrot.lane.b32.xlu1 %v5254_v52, %s8709_s12  ;;  %v5270_v25 = vshll.u32 %v10661_v44, 16  ;;  %v5275_v56 = vshll.u32 %v8546_v42, 16  ;;  %v10706_v31 = vpop.permute.xlu1 %4690 }
 0x5bf   : > { %4155 = vst.msk [vmem:[#allocation3 + $0xb8] sm:$0xf] %vm528_vm14, %v3984_v17  ;;  %4158 = vst [vmem:[#allocation3 + $0xbc] sm:$0x1] %v4157_v46  ;;  %v5242_v11 = vsel %vm2803_vm13, %v5237_v39, %v5241_v21  ;;  %v5413_v33 = vsel %vm3056_vm0, %v5411_v7, %v5412_v50  ;;  %v5258_v41 = vshll.u32 %v10667_v18, 16  ;;  %v5263_v45 = vshll.u32 %v8548_v54, 16 }
 0x5c0   : > { %5357 = vrot.lane.b32.xlu0 %v5242_v11, %s8709_s12  ;;  %v5268_v42 = vshrl.u32 %v10661_v44, 16  ;;  %v5272_v24 = vrot.slane %v5270_v25, 1  ;;  %v5410_v61 = vsel %vm3056_vm0, %v5408_v35, %v5409_v10  ;;  %v5277_v34 = vrot.slane %v5275_v56, 1  ;;  %v10709_v35 = vld [vmem:[#allocation3 + $0xc0] sm:$0xff]  }
 0x5c1   : > { %v5256_v1 = vshrl.u32 %v10667_v18, 16  ;;  %v5260_v5 = vrot.slane %v5258_v41, 1  ;;  %v5417_v54 = vrot.slane %v10689_v29, 1  ;;  %v5418_v7 = vrot.slane %v8550_v19, 1 }
 0x5c2   : > { %5453 = vrot.lane.b32.xlu1 %v5413_v33, %s11951_s24  ;;  %v5273_v27 = vor.u32 %v5272_v24, %v5268_v42  ;;  %v5294_v50 = vshll.u32 %v10689_v29, 16  ;;  %v5265_v0 = vrot.slane %v5263_v45, 1  ;;  %v5414_v52 = vrot.slane %v10695_v62, 1  ;;  %v8554_v11 = vld [vmem:[#allocation3 + $0xc8] ss:$0 sps:$4 sm:$0x11]   ;;  %v10716_v33 = vpop.permute.xlu0 %4692 }
 0x5c3   : > { %v5261_v2 = vor.u32 %v5260_v5, %v5256_v1  ;;  %v5415_v39 = vrot.slane %v8552_v47, 1  ;;  %v5299_v17 = vshll.u32 %v8550_v19, 16  ;;  %v5282_v46 = vshll.u32 %v10695_v62, 16  ;;  %v10724_v5 = vpop.permute.xlu1 %4604 }
 0x5c4   : > { %5451 = vrot.lane.b32.xlu0 %v5410_v61, %s11951_s24  ;;  %v5278_v21 = vsel %vm2803_vm13, %v5273_v27, %v5277_v34  ;;  %v5296_v10 = vrot.slane %v5294_v50, 1  ;;  %v5292_v56 = vshrl.u32 %v10689_v29, 16  ;;  %v5419_v41 = vsel %vm3056_vm0, %v5417_v54, %v5418_v7 }
 0x5c5   : > { %v5266_v25 = vsel %vm2803_vm13, %v5261_v2, %v5265_v0  ;;  %v5284_v45 = vrot.slane %v5282_v46, 1  ;;  %v5280_v24 = vshrl.u32 %v10695_v62, 16  ;;  %v5287_v61 = vshll.u32 %v8552_v47, 16 }
 0x5c6   : > { %5363 = vrot.lane.b32.xlu1 %v5278_v21, %s8709_s12  ;;  %v5297_v42 = vor.u32 %v5296_v10, %v5292_v56  ;;  %v5318_v19 = vshll.u32 %v10709_v35, 16  ;;  %v5416_v34 = vsel %vm3056_vm0, %v5414_v52, %v5415_v39  ;;  %v5301_v1 = vrot.slane %v5299_v17, 1  ;;  %v10729_v21 = vld [vmem:[#allocation3 + $0xb4] sm:$0xff]   ;;  %v10731_v10 = vpop.permute.xlu0 %4606 }
 0x5c7   : > { %v5285_v27 = vor.u32 %v5284_v45, %v5280_v24  ;;  %v5316_v50 = vshrl.u32 %v10709_v35, 16  ;;  %v5323_v0 = vshll.u32 %v8554_v11, 16  ;;  %v5289_v7 = vrot.slane %v5287_v61, 1 }
 0x5c8   : > { %5361 = vrot.lane.b32.xlu0 %v5266_v25, %s8709_s12  ;;  %v5320_v2 = vrot.slane %v5318_v19, 1  ;;  %v5302_v54 = vsel %vm2803_vm13, %v5297_v42, %v5301_v1  ;;  %v5423_v39 = vrot.slane %v10709_v35, 1  ;;  %v5424_v17 = vrot.slane %v8554_v11, 1  ;;  %v10737_v25 = vpop.permute.xlu1 %4694 }
 0x5c9   : > { %v5290_v52 = vsel %vm2803_vm13, %v5285_v27, %v5289_v7  ;;  %v5325_v46 = vrot.slane %v5323_v0, 1  ;;  %v5306_v45 = vshll.u32 %v10729_v21, 16  ;;  %v5420_v11 = vrot.slane %v10729_v21, 1 }
 0x5ca   : > { %5457 = vrot.lane.b32.xlu1 %v5419_v41, %s11951_s24  ;;  %v5321_v47 = vor.u32 %v5320_v2, %v5316_v50  ;;  %v8556_v41 = vld [vmem:[#allocation3 + $0xbc] ss:$0 sps:$4 sm:$0x11]   ;;  %v5425_v42 = vsel %vm3056_vm0, %v5423_v39, %v5424_v17  ;;  %v10743_v24 = vpop.permute.xlu0 %4696  ;;  %v5304_v1 = vshrl.u32 %v10729_v21, 16 }
 0x5cb   : > { %v5421_v61 = vrot.slane %v8556_v41, 1  ;;  %v5308_v19 = vrot.slane %v5306_v45, 1  ;;  %v5311_v27 = vshll.u32 %v8556_v41, 16 }
 0x5cc   : > { %5455 = vrot.lane.b32.xlu0 %v5416_v34, %s11951_s24  ;;  %v5326_v56 = vsel %vm2803_vm13, %v5321_v47, %v5325_v46  ;;  %v10748_v34 = vpop.permute.xlu1 %4580 }
 0x5cd   : > { %v5422_v50 = vsel %vm3056_vm0, %v5420_v11, %v5421_v61  ;;  %v5309_v2 = vor.u32 %v5308_v19, %v5304_v1 }
 0x5ce   : > { %5367 = vrot.lane.b32.xlu1 %v5302_v54, %s8709_s12  ;;  %v10752_v0 = vpop.permute.xlu0 %5616  ;;  %v5313_v54 = vrot.slane %v5311_v27, 1  ;;  %v8605_v27 = vld [vmem:[#allocation3 + $0xc] sm:$0xff]  }
 0x5d0   : > { %5365 = vrot.lane.b32.xlu0 %v5290_v52, %s8709_s12  ;;  %v10755_v7 = vpop.permute.xlu1 %4610  ;;  %v5314_v47 = vsel %vm2803_vm13, %v5309_v2, %v5313_v54 }
 0x5d2   : > { %5371 = vrot.lane.b32.xlu1 %v5326_v56, %s8709_s12  ;;  %v10759_v52 = vpop.permute.xlu0 %4608 }
 0x5d4   : > { %5461 = vrot.lane.b32.xlu0 %v5425_v42, %s11951_s24  ;;  %v10761_v39 = vpop.permute.xlu1 %4698  ;;  %v8604_v42 = vld [vmem:[#allocation3 + $0x18] sm:$0xff]  }
 0x5d6   : > { %v10763_v17 = vpop.permute.xlu0 %4670 }
 0x5d8   : > { %5459 = vrot.lane.b32.xlu0 %v5422_v50, %s11951_s24  ;;  %v10765_v46 = vpop.permute.xlu1 %4795 }
 0x5da   : > { %v10767_v56 = vpop.permute.xlu0 %4700 }
 0x5dc   : > { %5369 = vrot.lane.b32.xlu0 %v5314_v47, %s8709_s12 }
 0x5e4   : > { %v5434_v41 = vpop.permute.xlu1 %5433 }
 0x5ed   : > { %v5344_v45 = vpop.permute.xlu0 %5343 }
 0x5ee   : > { %v5470_v11 = vsel %vm4706_vm3, %v8604_v42, %v5344_v45 }
 0x5ef   : > { %v10771_v61 = vsel %vm663_vm2, %v5470_v11, %v5434_v41  ;;  %v5432_v19 = vpop.permute.xlu1 %5431  ;;  %v8561_v41 = vld [vmem:[%s11894_s7] sm:$0xff]  }
 0x5f0   : > { %5555 = vrot.lane.b32.xlu0 %v10771_v61, %s8710_s25  ;;  %5586 = vrot.lane.b32.xlu1 %v10771_v61, %s11948_s30 }
 0x5f1   : > { %8263 = vmatprep.subr.bf16.mxu0 %v8561_v41 }
 0x5f2   : > { %8264 = vmatpush3.bf16.msra.mxu0 %v8561_v41 }
 0x5f5   : > { %v5342_v1 = vpop.permute.xlu1 %5341 }
 0x5f6   : > { %v5468_v50 = vsel %vm4706_vm3, %v8605_v27, %v5342_v1 }
 0x5f7   : > { %v10779_v2 = vsel %vm663_vm2, %v5468_v50, %v5432_v19  ;;  %v8562_v19 = vld [vmem:[%s11894_s7 + $0x8] sm:$0xff]   ;;  %v8563_v50 = vld [vmem:[%s11894_s7 + $0x10] ss:$0 sps:$4 sm:$0x33]  }
 0x5f8   : > { %5553 = vrot.lane.b32.xlu1 %v10779_v2, %s8710_s25  ;;  %8265 = vmatprep.subr.bf16.mxu0 %v8562_v19 }
 0x5f9   : > { %8266 = vmatpush3.bf16.msra.mxu0 %v8562_v19 }
 0x5fa   : > { %8372 = vmatprep.subr.msk.bf16.mxu0 %vm5740_vm10, %v8563_v50 }
 0x5fe   : > { %v5438_v54 = vpop.permute.xlu1 %5437 }
 0x600   : > { %v5436_v47 = vpop.permute.xlu0 %5435 }
 0x606   : > { %v5348_v45 = vpop.permute.xlu1 %5347 }
 0x607   : > { %v5474_v42 = vsel %vm4706_vm3, %v10428_v8, %v5348_v45 }
 0x608   : > { %v10789_v11 = vsel %vm663_vm2, %v5474_v42, %v5438_v54  ;;  %v5742_v54 = vsel %vm5740_vm10, %v8563_v50, 0 }
 0x609   : > { %5590 = vrot.lane.b32.xlu1 %v10789_v11, %s11948_s30  ;;  %5559 = vrot.lane.b32.xlu0 %v10789_v11, %s8710_s25 }
 0x60a   : > { %v5346_v1 = vpop.permute.xlu0 %5345  ;;  %8268 = vmatpush3.bf16.msra.mxu0 %v5742_v54 }
 0x60b   : > { %v5472_v8 = vsel %vm4706_vm3, %v10440_v38, %v5346_v1  ;;  %v5442_v38 = vpop.permute.xlu1 %5441 }
 0x60c   : > { %v10801_v27 = vsel %vm663_vm2, %v5472_v8, %v5436_v47 }
 0x60d   : > { %5557 = vrot.lane.b32.xlu1 %v10801_v27, %s8710_s25  ;;  %5588 = vrot.lane.b32.xlu0 %v10801_v27, %s11948_s30 }
 0x60e   : > { %v5440_v41 = vpop.permute.xlu0 %5439 }
 0x616   : > { %v5352_v47 = vpop.permute.xlu1 %5351 }
 0x617   : > { %v5478_v45 = vsel %vm4706_vm3, %v10500_v58, %v5352_v47 }
 0x618   : > { %v10815_v42 = vsel %vm663_vm2, %v5478_v45, %v5442_v38 }
 0x619   : > { %v5350_v19 = vpop.permute.xlu0 %5349  ;;  %5594 = vrot.lane.b32.xlu1 %v10815_v42, %s11948_s30  ;;  %5563 = vrot.lane.b32.xlu0 %v10815_v42, %s8710_s25 }
 0x61a   : > { %v5476_v1 = vsel %vm4706_vm3, %v10517_v20, %v5350_v19 }
 0x61b   : > { %v10824_v8 = vsel %vm663_vm2, %v5476_v1, %v5440_v41  ;;  %v5446_v50 = vpop.permute.xlu1 %5445 }
 0x61d   : > { %5561 = vrot.lane.b32.xlu1 %v10824_v8, %s8710_s25  ;;  %5592 = vrot.lane.b32.xlu0 %v10824_v8, %s11948_s30  ;;  %v5444_v58 = vpop.permute.xlu0 %5443 }
 0x623   : > { %v5356_v54 = vpop.permute.xlu1 %5355 }
 0x624   : > { %v5482_v38 = vsel %vm4706_vm3, %v10564_v4, %v5356_v54 }
 0x625   : > { %v10833_v47 = vsel %vm663_vm2, %v5482_v38, %v5446_v50 }
 0x626   : > { %5598 = vrot.lane.b32.xlu1 %v10833_v47, %s11948_s30  ;;  %5567 = vrot.lane.b32.xlu0 %v10833_v47, %s8710_s25 }
 0x627   : > { %v5354_v20 = vpop.permute.xlu0 %5353 }
 0x628   : > { %v5480_v41 = vsel %vm4706_vm3, %v10575_v43, %v5354_v20 }
 0x629   : > { %v10842_v45 = vsel %vm663_vm2, %v5480_v41, %v5444_v58  ;;  %v5450_v19 = vpop.permute.xlu1 %5449 }
 0x62a   : > { %5565 = vrot.lane.b32.xlu1 %v10842_v45, %s8710_s25  ;;  %5596 = vrot.lane.b32.xlu0 %v10842_v45, %s11948_s30 }
 0x62b   : > { %v5448_v4 = vpop.permute.xlu0 %5447 }
 0x630   : > { %v5360_v1 = vpop.permute.xlu1 %5359 }
 0x631   : > { %v5486_v50 = vsel %vm4706_vm3, %v10616_v14, %v5360_v1 }
 0x632   : > { %v5358_v54 = vpop.permute.xlu0 %5357  ;;  %v10851_v38 = vsel %vm663_vm2, %v5486_v50, %v5450_v19 }
 0x633   : > { %v5484_v43 = vsel %vm4706_vm3, %v10639_v57, %v5358_v54  ;;  %5602 = vrot.lane.b32.xlu1 %v10851_v38, %s11948_s30  ;;  %5571 = vrot.lane.b32.xlu0 %v10851_v38, %s8710_s25 }
 0x634   : > { %v5454_v58 = vpop.permute.xlu1 %5453  ;;  %v10860_v41 = vsel %vm663_vm2, %v5484_v43, %v5448_v4 }
 0x636   : > { %v5452_v20 = vpop.permute.xlu0 %5451 }
 0x637   : > { %5569 = vrot.lane.b32.xlu1 %v10860_v41, %s8710_s25  ;;  %5600 = vrot.lane.b32.xlu0 %v10860_v41, %s11948_s30 }
 0x638   : > { %v5364_v14 = vpop.permute.xlu1 %5363 }
 0x639   : > { %v5490_v57 = vsel %vm4706_vm3, %v10661_v44, %v5364_v14 }
 0x63a   : > { %v5362_v19 = vpop.permute.xlu0 %5361  ;;  %v10869_v1 = vsel %vm663_vm2, %v5490_v57, %v5454_v58 }
 0x63b   : > { %v5488_v50 = vsel %vm4706_vm3, %v10667_v18, %v5362_v19  ;;  %5606 = vrot.lane.b32.xlu1 %v10869_v1, %s11948_s30  ;;  %5575 = vrot.lane.b32.xlu0 %v10869_v1, %s8710_s25 }
 0x63c   : > { %v5458_v4 = vpop.permute.xlu1 %5457  ;;  %v10878_v43 = vsel %vm663_vm2, %v5488_v50, %v5452_v20 }
 0x63e   : > { %v5456_v54 = vpop.permute.xlu0 %5455 }
 0x63f   : > { %5573 = vrot.lane.b32.xlu1 %v10878_v43, %s8710_s25  ;;  %5604 = vrot.lane.b32.xlu0 %v10878_v43, %s11948_s30 }
 0x640   : > { %v5368_v44 = vpop.permute.xlu1 %5367 }
 0x641   : > { %v5494_v18 = vsel %vm4706_vm3, %v10689_v29, %v5368_v44 }
 0x642   : > { %v5366_v58 = vpop.permute.xlu0 %5365  ;;  %v10887_v14 = vsel %vm663_vm2, %v5494_v18, %v5458_v4  ;;  %v10903_v4 = vld [vmem:[%s11893_s6] sm:$0xff]  }
 0x643   : > { %v5492_v57 = vsel %vm4706_vm3, %v10695_v62, %v5366_v58  ;;  %5610 = vrot.lane.b32.xlu1 %v10887_v14, %s11948_s30  ;;  %5579 = vrot.lane.b32.xlu0 %v10887_v14, %s8710_s25 }
 0x644   : > { %v5372_v20 = vpop.permute.xlu1 %5371  ;;  %v10898_v50 = vsel %vm663_vm2, %v5492_v57, %v5456_v54  ;;  %8301 = vmatprep.subr.bf16.mxu0 %v10903_v4  ;;  %v10914_v54 = vld [vmem:[%s8841_s29 + $0xc0] sm:$0xff]   ;;  %v8606_v57 = vld [vmem:[%s8841_s29 + $0x18] sm:$0xff]  }
 0x645   : > { %v5498_v19 = vsel %vm4706_vm3, %v10709_v35, %v5372_v20  ;;  %v4712_v20 = vsel %vm4706_vm3, %v8606_v57, %v10461_v26 }
 0x646   : > { %v5462_v29 = vpop.permute.xlu0 %5461 }
 0x647   : > { %5577 = vrot.lane.b32.xlu1 %v10898_v50, %s8710_s25  ;;  %5608 = vrot.lane.b32.xlu0 %v10898_v50, %s11948_s30  ;;  %v5534_v62 = vsel %vm663_vm2, %v5498_v19, %v5462_v29  ;;  %v8558_v19 = vld [vmem:[%s8841_s29 + $0xc8] ss:$0 sps:$4 sm:$0x11]   ;;  %v4559_v29 = vshll.u32 %v10914_v54, 16 }
 0x648   : > { %v4564_v57 = vshll.u32 %v8558_v19, 16 }
 0x64a   : > { %v5460_v35 = vpop.permute.xlu0 %5459 }
 0x64b   : > { %5614 = vrot.lane.b32.xlu1 %v5534_v62, %s11948_s30  ;;  %5583 = vrot.lane.b32.xlu0 %v5534_v62, %s8710_s25  ;;  %v10931_v62 = vld [vmem:[%s8841_s29 + $0xcc] sm:$0xff]  }
 0x64c   : > { %v4571_v51 = vshll.u32 %v10931_v62, 16  ;;  %v4569_v37 = vshrl.u32 %v10931_v62, 16 }
 0x64e   : > { %v5370_v44 = vpop.permute.xlu0 %5369 }
 0x64f   : > { %v5496_v18 = vsel %vm4706_vm3, %v10729_v21, %v5370_v44  ;;  %v10935_v21 = vsel %vm663_vm2, %v4712_v20, %v10510_v12  ;;  %v4557_v44 = vshrl.u32 %v10914_v54, 16  ;;  %v8608_v20 = vld [vmem:[%s8841_s29 + $0x30] sm:$0xff]  }
 0x650   : > { %v10919_v58 = vsel %vm663_vm2, %v5496_v18, %v5460_v35  ;;  %11974 = vst [vmem:[#allocation12_spill] sm:$0xff] %v10935_v21  ;;  %v8607_v35 = vld [vmem:[%s8841_s29 + $0x24] sm:$0xff]   ;;  %v4561_v18 = vrot.slane %v4559_v29, 1  ;;  %v4566_v29 = vrot.slane %v4564_v57, 1 }
 0x651   : > { %5581 = vrot.lane.b32.xlu1 %v10919_v58, %s8710_s25  ;;  %5612 = vrot.lane.b32.xlu0 %v10919_v58, %s11948_s30  ;;  %v4714_v26 = vsel %vm4706_vm3, %v8607_v35, %v10492_v15  ;;  %v4716_v15 = vsel %vm4706_vm3, %v8608_v20, %v10525_v60  ;;  %v4578_v20 = vrot.slane %v4576_v28, 1 }
 0x652   : > { %v10949_v12 = vsel %vm663_vm2, %v4714_v26, %v10515_v3  ;;  %v4562_v35 = vor.u32 %v4561_v18, %v4557_v44  ;;  %v10961_v3 = vsel %vm663_vm2, %v4716_v15, %v10556_v32  ;;  %v8609_v26 = vld [vmem:[%s8841_s29 + $0x3c] sm:$0xff]   ;;  %v4664_v18 = vrot.slane %v10914_v54, 1 }
 0x653   : > { %v4718_v60 = vsel %vm4706_vm3, %v8609_v26, %v10542_v63 }
 0x654   : > { %v4567_v44 = vsel %vm2803_vm13, %v4562_v35, %v4566_v29  ;;  %v10974_v32 = vsel %vm663_vm2, %v4718_v60, %v10566_v36  ;;  %v4667_v35 = vrot.slane %v10931_v62, 1  ;;  %v4668_v29 = vrot.slane %v8560_v30, 1  ;;  %v8610_v36 = vld [vmem:[#allocation3] sm:$0xff]  }
 0x655   : > { %4828 = vrot.lane.b32.xlu1 %v10935_v21, %s11948_s30  ;;  %4797 = vrot.lane.b32.xlu0 %v10935_v21, %s8710_s25  ;;  %v4573_v21 = vrot.slane %v4571_v51, 1  ;;  %v4665_v51 = vrot.slane %v8558_v19, 1  ;;  %v5466_v19 = vsel %vm4706_vm3, %v8610_v36, %v10198_v6 }
 0x656   : > { %v5502_v30 = vsel %vm663_vm2, %v5466_v19, %v10213_v59  ;;  %v8617_v19 = vld [vmem:[%s8841_s29 + $0x90] sm:$0xff]  }
 0x657   : > { %v4574_v57 = vor.u32 %v4573_v21, %v4569_v37  ;;  %v4666_v63 = vsel %vm3056_vm0, %v4664_v18, %v4665_v51  ;;  %v4669_v37 = vsel %vm3056_vm0, %v4667_v35, %v4668_v29  ;;  %v8611_v21 = vld [vmem:[%s8841_s29 + $0x48] sm:$0xff]   ;;  %v8613_v51 = vld [vmem:[%s8841_s29 + $0x60] sm:$0xff]  }
 0x658   : > { %v4720_v26 = vsel %vm4706_vm3, %v8611_v21, %v10578_v55  ;;  %v8612_v55 = vld [vmem:[%s8841_s29 + $0x54] sm:$0xff]   ;;  %v4732_v21 = vsel %vm4706_vm3, %v8617_v19, %v10724_v5 }
 0x659   : > { %4799 = vrot.lane.b32.xlu1 %v10949_v12, %s8710_s25  ;;  %4830 = vrot.lane.b32.xlu0 %v10949_v12, %s11948_s30  ;;  %v4579_v15 = vsel %vm2803_vm13, %v4574_v57, %v4578_v20  ;;  %v10997_v6 = vsel %vm663_vm2, %v4720_v26, %v10607_v22  ;;  %v4722_v18 = vsel %vm4706_vm3, %v8612_v55, %v10590_v40  ;;  %v8614_v20 = vld [vmem:[%s8841_s29 + $0x6c] sm:$0xff]  }
 0x65a   : > { %v11011_v22 = vsel %vm663_vm2, %v4722_v18, %v10618_v23  ;;  %v4724_v57 = vsel %vm4706_vm3, %v8613_v51, %v10633_v53  ;;  %v4726_v23 = vsel %vm4706_vm3, %v8614_v20, %v10643_v48  ;;  %v11078_v5 = vsel %vm663_vm2, %v4732_v21, %v10737_v25 }
 0x65b   : > { %v11022_v40 = vsel %vm663_vm2, %v4724_v57, %v10655_v9 }
 0x65d   : > { %4832 = vrot.lane.b32.xlu1 %v10961_v3, %s11948_s30  ;;  %4801 = vrot.lane.b32.xlu0 %v10961_v3, %s8710_s25 }
 0x661   : > { %4612 = vrot.lane.b32.xlu1 %v4567_v44, %s8709_s12  ;;  %4834 = vrot.lane.b32.xlu0 %v10974_v32, %s11948_s30 }
 0x662   : > { %v5587_v28 = vpop.permute.xlu1 %5586  ;;  %v5556_v53 = vpop.permute.xlu0 %5555 }
 0x665   : > { %4702 = vrot.lane.b32.xlu1 %v4666_v63, %s11951_s24  ;;  %4614 = vrot.lane.b32.xlu0 %v4579_v15, %s8709_s12  ;;  %v11033_v63 = vsel %vm663_vm2, %v4726_v23, %v10673_v13  ;;  %v8615_v15 = vld [vmem:[%s8841_s29 + $0x78] sm:$0xff]  }
 0x666   : > { %v4728_v9 = vsel %vm4706_vm3, %v8615_v15, %v10680_v16 }
 0x667   : > { %v11044_v29 = vsel %vm663_vm2, %v4728_v9, %v10706_v31 }
 0x669   : > { %4803 = vrot.lane.b32.xlu1 %v10974_v32, %s8710_s25  ;;  %4704 = vrot.lane.b32.xlu0 %v4669_v37, %s11951_s24  ;;  %v5621_v37 = vsel %vm4860_vm8, %v10779_v2, %v5556_v53 }
 0x66a   : > { %v5554_v60 = vpop.permute.xlu1 %5553 }
 0x66b   : > { %v5619_v44 = vsel %vm4860_vm8, %v5502_v30, %v5554_v60  ;;  %v8566_v30 = vld [vmem:[%s11893_s6 + $0x10] ss:$0 sps:$4 sm:$0x33]   ;;  %v8618_v60 = vld [vmem:[%s8841_s29 + $0x9c] sm:$0xff]  }
 0x66c   : > { %v5651_v59 = vsel %vm1355_vm4, %v5619_v44, %v5587_v28  ;;  %v8616_v28 = vld [vmem:[%s8841_s29 + $0x84] sm:$0xff]  }
 0x66d   : > { %4836 = vrot.lane.b32.xlu1 %v10997_v6, %s11948_s30  ;;  %4805 = vrot.lane.b32.xlu0 %v10997_v6, %s8710_s25  ;;  %v4730_v13 = vsel %vm4706_vm3, %v8616_v28, %v10697_v49  ;;  %v8565_v49 = vld [vmem:[%s11893_s6 + $0x8] sm:$0xff]  }
 0x66e   : > { %8269 = vmatprep.mubr.msk.bf16.mxu0 %vm5707_vm9, %v5651_v59  ;;  %v11055_v16 = vsel %vm663_vm2, %v4730_v13, %v10716_v33  ;;  %v8619_v44 = vld [vmem:[%s8841_s29 + $0xa8] sm:$0xff]   ;;  %v8620_v59 = vld [vmem:[%s8841_s29 + $0xb4] sm:$0xff]  }
 0x66f   : > { %v4736_v55 = vsel %vm4706_vm3, %v8619_v44, %v10759_v52  ;;  %v4738_v51 = vsel %vm4706_vm3, %v8620_v59, %v10755_v7 }
 0x670   : > { %v11118_v23 = vsel %vm663_vm2, %v4738_v51, %v10767_v56 }
 0x671   : > { %4807 = vrot.lane.b32.xlu1 %v11011_v22, %s8710_s25  ;;  %4838 = vrot.lane.b32.xlu0 %v11011_v22, %s11948_s30 }
 0x675   : > { %4840 = vrot.lane.b32.xlu1 %v11022_v40, %s11948_s30  ;;  %4809 = vrot.lane.b32.xlu0 %v11022_v40, %s8710_s25 }
 0x679   : > { %4811 = vrot.lane.b32.xlu1 %v11033_v63, %s8710_s25  ;;  %4842 = vrot.lane.b32.xlu0 %v11033_v63, %s11948_s30 }
 0x67b   : > { %v5560_v48 = vpop.permute.xlu0 %5559  ;;  %v5591_v35 = vpop.permute.xlu1 %5590 }
 0x67c   : > { %v5625_v52 = vsel %vm4860_vm8, %v10801_v27, %v5560_v48 }
 0x67d   : > { %4844 = vrot.lane.b32.xlu1 %v11044_v29, %s11948_s30  ;;  %4813 = vrot.lane.b32.xlu0 %v11044_v29, %s8710_s25 }
 0x67f   : > { %v5589_v36 = vpop.permute.xlu0 %5588  ;;  %v5558_v31 = vpop.permute.xlu1 %5557 }
 0x680   : > { %v5653_v33 = vsel %vm1355_vm4, %v5621_v37, %v5589_v36  ;;  %v5623_v2 = vsel %vm4860_vm8, %v10771_v61, %v5558_v31  ;;  %v4734_v61 = vsel %vm4706_vm3, %v8618_v60, %v10731_v10 }
 0x681   : > { %4815 = vrot.lane.b32.xlu1 %v11055_v16, %s8710_s25  ;;  %4846 = vrot.lane.b32.xlu0 %v11055_v16, %s11948_s30  ;;  %v5655_v26 = vsel %vm1355_vm4, %v5623_v2, %v5591_v35  ;;  %v11092_v25 = vsel %vm663_vm2, %v4734_v61, %v10743_v24  ;;  %v11105_v24 = vsel %vm663_vm2, %v4736_v55, %v10761_v39 }
 0x682   : > { %8270 = vmatmul.mubr.msk.bf16.vlgmr.msra.gmra.mrb[8].mxu0 %vm5707_vm9, %v5653_v33 }
 0x683   : > { %8273 = vmatprep.mubr.msk.bf16.mxu0 %vm5707_vm9, %v5655_v26  ;;  %8302 = vmatpush3.bf16.msra.mxu0 %v10903_v4  ;;  %v5953_v4 = vsel %vm5740_vm10, %v8566_v30, 0 }
 0x684   : > { %8303 = vmatprep.subr.bf16.mxu0 %v8565_v49 }
 0x685   : > { %4848 = vrot.lane.b32.xlu1 %v11078_v5, %s11948_s30  ;;  %4817 = vrot.lane.b32.xlu0 %v11078_v5, %s8710_s25 }
 0x687   : > { %8304 = vmatpush3.bf16.msra.mxu0 %v8565_v49 }
 0x688   : > { %8373 = vmatprep.subr.msk.bf16.mxu0 %vm5740_vm10, %v8566_v30 }
 0x689   : > { %4819 = vrot.lane.b32.xlu1 %v11092_v25, %s8710_s25  ;;  %4850 = vrot.lane.b32.xlu0 %v11092_v25, %s11948_s30 }
 0x68b   : > { %v5564_v10 = vpop.permute.xlu0 %5563  ;;  %v5595_v18 = vpop.permute.xlu1 %5594  ;;  %8306 = vmatpush3.bf16.msra.mxu0 %v5953_v4 }
 0x68c   : > { %v5629_v15 = vsel %vm4860_vm8, %v10824_v8, %v5564_v10 }
 0x68d   : > { %4852 = vrot.lane.b32.xlu1 %v11105_v24, %s11948_s30  ;;  %4821 = vrot.lane.b32.xlu0 %v11105_v24, %s8710_s25 }
 0x68f   : > { %v5593_v57 = vpop.permute.xlu0 %5592  ;;  %v5562_v20 = vpop.permute.xlu1 %5561 }
 0x690   : > { %v5657_v39 = vsel %vm1355_vm4, %v5625_v52, %v5593_v57  ;;  %v5627_v7 = vsel %vm4860_vm8, %v10789_v11, %v5562_v20 }
 0x691   : > { %4823 = vrot.lane.b32.xlu1 %v11118_v23, %s8710_s25  ;;  %4854 = vrot.lane.b32.xlu0 %v11118_v23, %s11948_s30  ;;  %v5659_v53 = vsel %vm1355_vm4, %v5627_v7, %v5595_v18  ;;  %v8621_v7 = vld [vmem:[%s8841_s29] sm:$0xff]   ;;  %s11845_s29 = scalar_lea.hbm %s11898_s11, %s8071_s1 }
 0x692   : > { %8274 = vmatmul.mubr.msk.bf16.gmra.mrb[12].mxu0 %vm5707_vm9, %v5657_v39 }
 0x693   : > { %8277 = vmatprep.mubr.msk.bf16.mxu0 %vm5707_vm9, %v5659_v53  ;;  %v4708_v53 = vsel %vm4706_vm3, %v8621_v7, %v10748_v34 }
 0x698   : > { %v5568_v27 = vpop.permute.xlu0 %5567  ;;  %v5599_v56 = vpop.permute.xlu1 %5598 }
 0x699   : > { %v5633_v36 = vsel %vm4860_vm8, %v10842_v45, %v5568_v27 }
 0x69c   : > { %v5597_v9 = vpop.permute.xlu0 %5596  ;;  %v5566_v48 = vpop.permute.xlu1 %5565 }
 0x69d   : > { %v5661_v11 = vsel %vm1355_vm4, %v5629_v15, %v5597_v9  ;;  %v5631_v35 = vsel %vm4860_vm8, %v10815_v42, %v5566_v48 }
 0x69e   : > { %8278 = vmatmul.mubr.msk.bf16.gmra.mrb[16].mxu0 %vm5707_vm9, %v5661_v11  ;;  %v5663_v28 = vsel %vm1355_vm4, %v5631_v35, %v5599_v56 }
 0x69f   : > { %8281 = vmatprep.mubr.msk.bf16.mxu0 %vm5707_vm9, %v5663_v28 }
 0x6a5   : > { %v5572_v13 = vpop.permute.xlu0 %5571  ;;  %v5603_v37 = vpop.permute.xlu1 %5602 }
 0x6a6   : > { %v5637_v2 = vsel %vm4860_vm8, %v10860_v41, %v5572_v13 }
 0x6a9   : > { %v5601_v31 = vpop.permute.xlu0 %5600  ;;  %v5570_v8 = vpop.permute.xlu1 %5569 }
 0x6aa   : > { %v5665_v49 = vsel %vm1355_vm4, %v5633_v36, %v5601_v31  ;;  %v5635_v19 = vsel %vm4860_vm8, %v10833_v47, %v5570_v8  ;;  %v11976_v31 = vld [vmem:[#allocation12_spill] sm:$0xff] }
 0x6ab   : > { %8282 = vmatmul.mubr.msk.bf16.gmra.mrb[20].mxu0 %vm5707_vm9, %v5665_v49  ;;  %v5667_v42 = vsel %vm1355_vm4, %v5635_v19, %v5603_v37 }
 0x6ac   : > { %8285 = vmatprep.mubr.msk.bf16.mxu0 %vm5707_vm9, %v5667_v42 }
 0x6ad   : > { %v5576_v21 = vpop.permute.xlu0 %5575  ;;  %v5607_v33 = vpop.permute.xlu1 %5606 }
 0x6ae   : > { %v5641_v44 = vsel %vm4860_vm8, %v10878_v43, %v5576_v21 }
 0x6b1   : > { %v5605_v26 = vpop.permute.xlu0 %5604  ;;  %v5574_v45 = vpop.permute.xlu1 %5573 }
 0x6b2   : > { %v5669_v30 = vsel %vm1355_vm4, %v5637_v2, %v5605_v26  ;;  %v5639_v60 = vsel %vm4860_vm8, %v10851_v38, %v5574_v45 }
 0x6b3   : > { %8286 = vmatmul.mubr.msk.bf16.gmra.mrb[24].mxu0 %vm5707_vm9, %v5669_v30  ;;  %v5671_v47 = vsel %vm1355_vm4, %v5639_v60, %v5607_v33 }
 0x6b4   : > { %8289 = vmatprep.mubr.msk.bf16.mxu0 %vm5707_vm9, %v5671_v47 }
 0x6b5   : > { %v5580_v61 = vpop.permute.xlu0 %5579  ;;  %v5611_v4 = vpop.permute.xlu1 %5610 }
 0x6b6   : > { %v5645_v52 = vsel %vm4860_vm8, %v10898_v50, %v5580_v61  ;;  %v4744_v50 = vsel %vm663_vm2, %v4708_v53, %v10763_v17  ;;  %v11975_v17 = vld [vmem:[#allocation10_spill] sm:$0xff] }
 0x6b7   : > { %v4862_v48 = vsel %vm4860_vm8, %v4744_v50, %v10765_v46 }
 0x6b9   : > { %v5609_v55 = vpop.permute.xlu0 %5608  ;;  %v5578_v41 = vpop.permute.xlu1 %5577 }
 0x6ba   : > { %v5673_v10 = vsel %vm1355_vm4, %v5641_v44, %v5609_v55  ;;  %v5643_v18 = vsel %vm4860_vm8, %v10869_v1, %v5578_v41 }
 0x6bb   : > { %8290 = vmatmul.mubr.msk.bf16.gmra.mrb[28].mxu0 %vm5707_vm9, %v5673_v10  ;;  %v5675_v38 = vsel %vm1355_vm4, %v5643_v18, %v5611_v4 }
 0x6bc   : > { %8293 = vmatprep.mubr.msk.bf16.mxu0 %vm5707_vm9, %v5675_v38 }
 0x6bd   : > { %v5584_v59 = vpop.permute.xlu0 %5583  ;;  %v5615_v51 = vpop.permute.xlu1 %5614 }
 0x6be   : > { %v5649_v15 = vsel %vm4860_vm8, %v10919_v58, %v5584_v59 }
 0x6bf   : > { %v5681_v11 = vsel %vm1355_vm4, %v5649_v15, %v10752_v0 }
 0x6c3   : > { %v5613_v43 = vpop.permute.xlu0 %5612  ;;  %v5582_v57 = vpop.permute.xlu1 %5581 }
 0x6c4   : > { %v5677_v20 = vsel %vm1355_vm4, %v5645_v52, %v5613_v43  ;;  %v5647_v39 = vsel %vm4860_vm8, %v10887_v14, %v5582_v57 }
 0x6c5   : > { %8294 = vmatmul.mubr.msk.bf16.gmra.mrb[32].mxu0 %vm5707_vm9, %v5677_v20  ;;  %v5679_v1 = vsel %vm1355_vm4, %v5647_v39, %v5615_v51 }
 0x6c6   : > { %8297 = vmatprep.mubr.msk.bf16.mxu0 %vm5707_vm9, %v5679_v1 }
 0x6c7   : > { %v4798_v27 = vpop.permute.xlu0 %4797  ;;  %v4829_v56 = vpop.permute.xlu1 %4828 }
 0x6c8   : > { %v4894_v34 = vsel %vm1355_vm4, %v4862_v48, %v4829_v56  ;;  %v4864_v13 = vsel %vm4860_vm8, %v11975_v17, %v4798_v27 }
 0x6cb   : > { %v4831_v9 = vpop.permute.xlu0 %4830  ;;  %v4800_v14 = vpop.permute.xlu1 %4799 }
 0x6cc   : > { %v4896_v36 = vsel %vm1355_vm4, %v4864_v13, %v4831_v9  ;;  %v4866_v46 = vsel %vm4860_vm8, %v11976_v31, %v4800_v14 }
 0x6cd   : > { %8298 = vmatmul.mubr.msk.bf16.gmra.mrb[36].mxu0 %vm5707_vm9, %v5681_v11 }
 0x6ce   : > { %8307 = vmatprep.mubr.msk.bf16.mxu0 %vm5707_vm9, %v4894_v34 }
 0x6cf   : > { %v4802_v35 = vpop.permute.xlu0 %4801  ;;  %v4833_v28 = vpop.permute.xlu1 %4832 }
 0x6d0   : > { %v4898_v0 = vsel %vm1355_vm4, %v4866_v46, %v4833_v28  ;;  %v4868_v21 = vsel %vm4860_vm8, %v10949_v12, %v4802_v35 }
 0x6d3   : > { %v4835_v58 = vpop.permute.xlu0 %4834  ;;  %v4613_v37 = vpop.permute.xlu1 %4612 }
 0x6d4   : > { %v4740_v8 = vsel %vm4706_vm3, %v10914_v54, %v4613_v37  ;;  %v4900_v45 = vsel %vm1355_vm4, %v4868_v21, %v4835_v58  ;;  %v11256_v37 = vld [vmem:[%s11895_s8] ss:$0 sm:$0xff] }
 0x6d5   : > { %8308 = vmatmul.mubr.msk.bf16.vlgmr.msra.gmra.mrb[8].mxu0 %vm5707_vm9, %v4896_v36 }
 0x6d6   : > { %8311 = vmatprep.mubr.msk.bf16.mxu0 %vm5707_vm9, %v4898_v0 }
 0x6d7   : > { %v4615_v49 = vpop.permute.xlu0 %4614  ;;  %v4703_v19 = vpop.permute.xlu1 %4702 }
 0x6d8   : > { %v4776_v42 = vsel %vm663_vm2, %v4740_v8, %v4703_v19  ;;  %v4742_v33 = vsel %vm4706_vm3, %v10931_v62, %v4615_v49 }
 0x6d9   : > { %4856 = vrot.lane.b32.xlu1 %v4776_v42, %s11948_s30  ;;  %4825 = vrot.lane.b32.xlu0 %v4776_v42, %s8710_s25 }
 0x6db   : > { %v4705_v2 = vpop.permute.xlu0 %4704  ;;  %v4804_v26 = vpop.permute.xlu1 %4803 }
 0x6dc   : > { %v4778_v54 = vsel %vm663_vm2, %v4742_v33, %v4705_v2  ;;  %v4870_v30 = vsel %vm4860_vm8, %v10961_v3, %v4804_v26 }
 0x6dd   : > { %8312 = vmatmul.mubr.msk.bf16.gmra.mrb[12].mxu0 %vm5707_vm9, %v4900_v45  ;;  %4858 = vrot.lane.b32.xlu0 %v4778_v54, %s11948_s30 }
 0x6df   : > { %v4806_v60 = vpop.permute.xlu0 %4805  ;;  %v4837_v47 = vpop.permute.xlu1 %4836 }
 0x6e0   : > { %v4902_v12 = vsel %vm1355_vm4, %v4870_v30, %v4837_v47  ;;  %v4872_v62 = vsel %vm4860_vm8, %v10974_v32, %v4806_v60 }
 0x6e1   : > { %8315 = vmatprep.mubr.msk.bf16.mxu0 %vm5707_vm9, %v4902_v12 }
 0x6e3   : > { %v4839_v61 = vpop.permute.xlu0 %4838  ;;  %v4808_v4 = vpop.permute.xlu1 %4807 }
 0x6e4   : > { %v4904_v44 = vsel %vm1355_vm4, %v4872_v62, %v4839_v61  ;;  %v4874_v55 = vsel %vm4860_vm8, %v10997_v6, %v4808_v4 }
 0x6e5   : > { %8316 = vmatmul.mubr.msk.bf16.gmra.mrb[16].mxu0 %vm5707_vm9, %v4904_v44 }
 0x6e7   : > { %v4810_v41 = vpop.permute.xlu0 %4809  ;;  %v4841_v3 = vpop.permute.xlu1 %4840 }
 0x6e8   : > { %v4906_v10 = vsel %vm1355_vm4, %v4874_v55, %v4841_v3  ;;  %v4876_v18 = vsel %vm4860_vm8, %v11011_v22, %v4810_v41 }
 0x6e9   : > { %8319 = vmatprep.mubr.msk.bf16.mxu0 %vm5707_vm9, %v4906_v10 }
 0x6eb   : > { %v4843_v38 = vpop.permute.xlu0 %4842  ;;  %v4812_v32 = vpop.permute.xlu1 %4811 }
 0x6ec   : > { %v4908_v59 = vsel %vm1355_vm4, %v4876_v18, %v4843_v38  ;;  %v4878_v51 = vsel %vm4860_vm8, %v11022_v40, %v4812_v32 }
 0x6ed   : > { %8320 = vmatmul.mubr.msk.bf16.gmra.mrb[20].mxu0 %vm5707_vm9, %v4908_v59 }
 0x6ef   : > { %v4814_v52 = vpop.permute.xlu0 %4813  ;;  %v4845_v6 = vpop.permute.xlu1 %4844 }
 0x6f0   : > { %v4910_v43 = vsel %vm1355_vm4, %v4878_v51, %v4845_v6  ;;  %v4880_v57 = vsel %vm4860_vm8, %v11033_v63, %v4814_v52 }
 0x6f1   : > { %8323 = vmatprep.mubr.msk.bf16.mxu0 %vm5707_vm9, %v4910_v43 }
 0x6f3   : > { %v4847_v20 = vpop.permute.xlu0 %4846  ;;  %v4816_v22 = vpop.permute.xlu1 %4815 }
 0x6f4   : > { %v4912_v39 = vsel %vm1355_vm4, %v4880_v57, %v4847_v20  ;;  %v4882_v1 = vsel %vm4860_vm8, %v11044_v29, %v4816_v22  ;;  %v6610_v57 = vld [vmem:[#allocation3 + $0x18] sm:$0xf] }
 0x6f5   : > { %8324 = vmatmul.mubr.msk.bf16.gmra.mrb[24].mxu0 %vm5707_vm9, %v4912_v39 }
 0x6f7   : > { %v4818_v7 = vpop.permute.xlu0 %4817  ;;  %v4849_v40 = vpop.permute.xlu1 %4848 }
 0x6f8   : > { %v4914_v53 = vsel %vm1355_vm4, %v4882_v1, %v4849_v40  ;;  %v4884_v27 = vsel %vm4860_vm8, %v11055_v16, %v4818_v7 }
 0x6f9   : > { %8327 = vmatprep.mubr.msk.bf16.mxu0 %vm5707_vm9, %v4914_v53  ;;  %v6603_v53 = vld [vmem:[#allocation3 + $0xc] sm:$0xf] }
 0x6fb   : > { %v4851_v56 = vpop.permute.xlu0 %4850  ;;  %v4820_v63 = vpop.permute.xlu1 %4819 }
 0x6fc   : > { %v4916_v50 = vsel %vm1355_vm4, %v4884_v27, %v4851_v56  ;;  %v4886_v15 = vsel %vm4860_vm8, %v11078_v5, %v4820_v63 }
 0x6fd   : > { %8328 = vmatmul.mubr.msk.bf16.gmra.mrb[28].mxu0 %vm5707_vm9, %v4916_v50 }
 0x6ff   : > { %v4822_v9 = vpop.permute.xlu0 %4821  ;;  %v4853_v29 = vpop.permute.xlu1 %4852 }
 0x700   : > { %v4918_v14 = vsel %vm1355_vm4, %v4886_v15, %v4853_v29  ;;  %v4888_v48 = vsel %vm4860_vm8, %v11092_v25, %v4822_v9  ;;  %v6614_v15 = vld [vmem:[#allocation3 + $0x20] sm:$0x1] }
 0x701   : > { %8331 = vmatprep.mubr.msk.bf16.mxu0 %vm5707_vm9, %v4918_v14 }
 0x703   : > { %v4855_v11 = vpop.permute.xlu0 %4854  ;;  %v4824_v34 = vpop.permute.xlu1 %4823 }
 0x704   : > { %v4920_v16 = vsel %vm1355_vm4, %v4888_v48, %v4855_v11  ;;  %v4890_v35 = vsel %vm4860_vm8, %v11105_v24, %v4824_v34 }
 0x705   : > { %8332 = vmatmul.mubr.msk.bf16.gmra.mrb[32].mxu0 %vm5707_vm9, %v4920_v16 }
 0x74b   : > { %v4826_v28 = vpop.permute.xlu0 %4825  ;;  %v4857_v5 = vpop.permute.xlu1 %4856 }
 0x74c   : > { %v4922_v17 = vsel %vm1355_vm4, %v4890_v35, %v4857_v5  ;;  %v4892_v13 = vsel %vm4860_vm8, %v11118_v23, %v4826_v28  ;;  %v6607_v35 = vld [vmem:[#allocation3 + $0x14] sm:$0x1] }
 0x74d   : > { %8335 = vmatprep.mubr.msk.bf16.mxu0 %vm5707_vm9, %v4922_v17 }
 0x74f   : > { %v4859_v58 = vpop.permute.xlu0 %4858 }
 0x750   : > { %v4924_v25 = vsel %vm1355_vm4, %v4892_v13, %v4859_v58 }
 0x751   : > { %8336 = vmatmul.mubr.msk.bf16.gmra.mrb[36].mxu0 %vm5707_vm9, %v4924_v25 }
 0x7a8   : > { %v8309_v24 = vpop.f32.mrb[8].mxu0 }
 0x7a9   : > { %v6125_v36 = vadd.f32 %v8309_v24, %v11256_v37  ;;  %v5989_v31 = vpop.f32.mrb[9].mxu0 }
 0x7aa   : > { %v6123_v46 = vadd.f32 %v11256_v37, %v5989_v31  ;;  %v8310_v0 = vpop.f32.mrb[10].mxu0 }
 0x7ab   : > { %v6157_v8 = vmax.f32 %v6125_v36, 0.0  ;;  %v6126_v23 = vadd.f32 %v8310_v0, %v11256_v37  ;;  %v5992_v49 = vpop.f32.mrb[11].mxu0 }
 0x7ac   : > { %v6155_v19 = vmax.f32 %v6123_v46, 0.0  ;;  %v6124_v42 = vadd.f32 %v11256_v37, %v5992_v49 }
 0x7ad   : > { %v8041_v21 = vpack.c.bf16 %v6157_v8, %v6157_v8  ;;  %v6158_v33 = vmax.f32 %v6126_v23, 0.0 }
 0x7ae   : > { %v8039_v2 = vpack.c.bf16 %v6155_v19, %v6155_v19  ;;  %v6156_v26 = vmax.f32 %v6124_v42, 0.0 }
 0x7af   : > { %v6301_v45 = vshrl.u32 %v8041_v21, 16  ;;  %v8042_v54 = vpack.c.bf16 %v6158_v33, %v6158_v33  ;;  %v6304_v30 = vshll.u32 %v8041_v21, 16 }
 0x7b0   : > { %v6284_v60 = vshrl.u32 %v8039_v2, 16  ;;  %v6287_v47 = vshll.u32 %v8039_v2, 16  ;;  %v8040_v12 = vpack.c.bf16 %v6156_v26, %v6156_v26  ;;  %v8313_v62 = vpop.f32.mrb[12].mxu0 }
 0x7b1   : > { %v6303_v61 = vrot.slane %v6301_v45, 7  ;;  %v6309_v4 = vshrl.u32 %v8042_v54, 16  ;;  %v6312_v44 = vshll.u32 %v8042_v54, 16  ;;  %v6129_v55 = vadd.f32 %v8313_v62, %v11256_v37  ;;  %v6005_v41 = vpop.f32.mrb[13].mxu0  ;;  %v6624_v45 = vld [vmem:[#allocation3 + $0x30] sm:$0xf] }
 0x7b2   : > { %v6286_v3 = vrot.slane %v6284_v60, 7  ;;  %v6292_v10 = vshrl.u32 %v8040_v12, 16  ;;  %v6295_v18 = vshll.u32 %v8040_v12, 16  ;;  %v6127_v38 = vadd.f32 %v11256_v37, %v6005_v41  ;;  %v8314_v32 = vpop.f32.mrb[14].mxu0  ;;  %v6617_v62 = vld [vmem:[#allocation3 + $0x24] sm:$0xf] }
 0x7b3   : > { %v6306_v59 = vor.u32 %v6304_v30, %v6303_v61  ;;  %v6307_v51 = vrot.slane %v6303_v61, 4  ;;  %v6311_v52 = vrot.slane %v6309_v4, 7  ;;  %v6161_v6 = vmax.f32 %v6129_v55, 0.0  ;;  %v6008_v43 = vpop.f32.mrb[15].mxu0 }
 0x7b4   : > { %v6289_v20 = vor.u32 %v6287_v47, %v6286_v3  ;;  %v6290_v22 = vrot.slane %v6286_v3, 4  ;;  %v6294_v39 = vrot.slane %v6292_v10, 7  ;;  %v6159_v1 = vmax.f32 %v6127_v38, 0.0 }
 0x7b5   : > { %v6611_v40 = vsel %vm10315_vm7, %v6306_v59, %v6610_v57  ;;  %v6314_v27 = vor.u32 %v6312_v44, %v6311_v52  ;;  %v6316_v56 = vrot.slane %v6311_v52, 4  ;;  %v8045_v63 = vpack.c.bf16 %v6161_v6, %v6161_v6 }
 0x7b6   : > { %6612 = vst [vmem:[#allocation3 + $0x18] sm:$0xf] %v6611_v40  ;;  %v6604_v50 = vsel %vm10315_vm7, %v6289_v20, %v6603_v53  ;;  %v6297_v9 = vor.u32 %v6295_v18, %v6294_v39  ;;  %v6299_v29 = vrot.slane %v6294_v39, 4  ;;  %v8043_v14 = vpack.c.bf16 %v6159_v1, %v6159_v1  ;;  %v6628_v53 = vld [vmem:[#allocation3 + $0x38] sm:$0x1] }
 0x7b7   : > { %6605 = vst [vmem:[#allocation3 + $0xc] sm:$0xf] %v6604_v50  ;;  %v6315_v11 = vsel %vm9245_vm15, %v6307_v51, %v6314_v27  ;;  %v6615_v34 = vsel %vm9939_vm5, %v6316_v56, %v6614_v15  ;;  %v6335_v28 = vshrl.u32 %v8045_v63, 16  ;;  %v6338_v13 = vshll.u32 %v8045_v63, 16 }
 0x7b8   : > { %6613 = vst.msk [vmem:[#allocation3 + $0x1c] sm:$0xf] %vm528_vm14, %v6315_v11  ;;  %6616 = vst [vmem:[#allocation3 + $0x20] sm:$0x1] %v6615_v34  ;;  %v6298_v5 = vsel %vm9245_vm15, %v6290_v22, %v6297_v9  ;;  %v6608_v17 = vsel %vm9939_vm5, %v6299_v29, %v6607_v35  ;;  %v6318_v58 = vshrl.u32 %v8043_v14, 16  ;;  %v8317_v25 = vpop.f32.mrb[16].mxu0  ;;  %v6130_v36 = vadd.f32 %v8314_v32, %v11256_v37 }
 0x7b9   : > { %6606 = vst.msk [vmem:[#allocation3 + $0x10] sm:$0xf] %vm528_vm14, %v6298_v5  ;;  %6609 = vst [vmem:[#allocation3 + $0x14] sm:$0x1] %v6608_v17  ;;  %v6337_v24 = vrot.slane %v6335_v28, 7  ;;  %v6128_v31 = vadd.f32 %v11256_v37, %v6008_v43  ;;  %v6133_v46 = vadd.f32 %v8317_v25, %v11256_v37  ;;  %v6021_v0 = vpop.f32.mrb[17].mxu0 }
 0x7ba   : > { %v6320_v8 = vrot.slane %v6318_v58, 7  ;;  %v6321_v23 = vshll.u32 %v8043_v14, 16  ;;  %v6131_v49 = vadd.f32 %v11256_v37, %v6021_v0  ;;  %v8318_v19 = vpop.f32.mrb[18].mxu0  ;;  %v6162_v33 = vmax.f32 %v6130_v36, 0.0  ;;  %v6621_v34 = vld [vmem:[#allocation3 + $0x2c] sm:$0x1] }
 0x7bb   : > { %v6340_v42 = vor.u32 %v6338_v13, %v6337_v24  ;;  %v6341_v21 = vrot.slane %v6337_v24, 4  ;;  %v6160_v2 = vmax.f32 %v6128_v31, 0.0  ;;  %v6024_v26 = vpop.f32.mrb[19].mxu0  ;;  %v6165_v60 = vmax.f32 %v6133_v46, 0.0  ;;  %v6638_v31 = vld [vmem:[#allocation3 + $0x48] sm:$0xf] }
 0x7bc   : > { %v6323_v54 = vor.u32 %v6321_v23, %v6320_v8  ;;  %v6324_v30 = vrot.slane %v6320_v8, 4  ;;  %v6163_v47 = vmax.f32 %v6131_v49, 0.0  ;;  %v8046_v61 = vpack.c.bf16 %v6162_v33, %v6162_v33  ;;  %v6631_v46 = vld [vmem:[#allocation3 + $0x3c] sm:$0xf] }
 0x7bd   : > { %v6625_v12 = vsel %vm10315_vm7, %v6340_v42, %v6624_v45  ;;  %v8044_v4 = vpack.c.bf16 %v6160_v2, %v6160_v2  ;;  %v6134_v44 = vadd.f32 %v8318_v19, %v11256_v37  ;;  %v8049_v41 = vpack.c.bf16 %v6165_v60, %v6165_v60 }
 0x7be   : > { %6626 = vst [vmem:[#allocation3 + $0x30] sm:$0xf] %v6625_v12  ;;  %v6618_v55 = vsel %vm10315_vm7, %v6323_v54, %v6617_v62  ;;  %v8047_v3 = vpack.c.bf16 %v6163_v47, %v6163_v47  ;;  %v6132_v10 = vadd.f32 %v11256_v37, %v6024_v26  ;;  %v6343_v18 = vshrl.u32 %v8046_v61, 16 }
 0x7bf   : > { %6619 = vst [vmem:[#allocation3 + $0x24] sm:$0xf] %v6618_v55  ;;  %v6346_v38 = vshll.u32 %v8046_v61, 16  ;;  %v6326_v32 = vshrl.u32 %v8044_v4, 16  ;;  %v6329_v59 = vshll.u32 %v8044_v4, 16  ;;  %v6369_v51 = vshrl.u32 %v8049_v41, 16 }
 0x7c0   : > { %v6372_v52 = vshll.u32 %v8049_v41, 16  ;;  %v6352_v6 = vshrl.u32 %v8047_v3, 16  ;;  %v6355_v43 = vshll.u32 %v8047_v3, 16  ;;  %v8321_v57 = vpop.f32.mrb[20].mxu0  ;;  %v6345_v20 = vrot.slane %v6343_v18, 7  ;;  %v11312_v19 = vld [vmem:[#allocation3 + $0x18] sm:$0xff]  }
 0x7c1   : > { %v6328_v22 = vrot.slane %v6326_v32, 7  ;;  %v6166_v39 = vmax.f32 %v6134_v44, 0.0  ;;  %v6164_v1 = vmax.f32 %v6132_v10, 0.0  ;;  %v6037_v40 = vpop.f32.mrb[21].mxu0  ;;  %v11288_v27 = vrot.slane %v6369_v51, 7 }
 0x7c2   : > { %v11290_v56 = vrot.slane %v6352_v6, 7  ;;  %v6137_v63 = vadd.f32 %v8321_v57, %v11256_v37  ;;  %v6135_v50 = vadd.f32 %v11256_v37, %v6037_v40  ;;  %v8322_v15 = vpop.f32.mrb[22].mxu0  ;;  %v6348_v9 = vor.u32 %v6346_v38, %v6345_v20  ;;  %v11314_v42 = vld [vmem:[#allocation3 + $0x20] ss:$0 sps:$4 sm:$0x11]  }
 0x7c3   : > { %v6350_v29 = vrot.slane %v6345_v20, 4  ;;  %v6331_v14 = vor.u32 %v6329_v59, %v6328_v22  ;;  %v6333_v11 = vrot.slane %v6328_v22, 4  ;;  %v6040_v35 = vpop.f32.mrb[23].mxu0  ;;  %v6374_v28 = vor.u32 %v6372_v52, %v11288_v27  ;;  %v6642_v57 = vld [vmem:[#allocation3 + $0x50] sm:$0x1] }
 0x7c4   : > { %v6375_v5 = vrot.slane %v11288_v27, 4  ;;  %v6357_v17 = vor.u32 %v6355_v43, %v11290_v56  ;;  %v6358_v13 = vrot.slane %v11290_v56, 4  ;;  %v6349_v58 = vsel %vm9245_vm15, %v6341_v21, %v6348_v9  ;;  %v6652_v9 = vld [vmem:[#allocation3 + $0x60] sm:$0xf] }
 0x7c5   : > { %v6629_v25 = vsel %vm9939_vm5, %v6350_v29, %v6628_v53  ;;  %v6332_v24 = vsel %vm9245_vm15, %v6324_v30, %v6331_v14  ;;  %v6622_v36 = vsel %vm9939_vm5, %v6333_v11, %v6621_v34  ;;  %6627 = vst.msk [vmem:[#allocation3 + $0x34] sm:$0xf] %vm528_vm14, %v6349_v58  ;;  %v6639_v0 = vsel %vm10315_vm7, %v6374_v28, %v6638_v31  ;;  %v11328_v29 = vld [vmem:[#allocation3 + $0xc] sm:$0xff]   ;;  %v11330_v14 = vld [vmem:[#allocation3 + $0x14] ss:$0 sps:$4 sm:$0x11]  }
 0x7c6   : > { %6630 = vst [vmem:[#allocation3 + $0x38] sm:$0x1] %v6629_v25  ;;  %6620 = vst.msk [vmem:[#allocation3 + $0x28] sm:$0xf] %vm528_vm14, %v6332_v24  ;;  %v6632_v8 = vsel %vm10315_vm7, %v6357_v17, %v6631_v46  ;;  %v8050_v23 = vpack.c.bf16 %v6166_v39, %v6166_v39  ;;  %v8048_v49 = vpack.c.bf16 %v6164_v1, %v6164_v1  ;;  %v6169_v21 = vmax.f32 %v6137_v63, 0.0 }
 0x7c7   : > { %6623 = vst [vmem:[#allocation3 + $0x2c] sm:$0x1] %v6622_v36  ;;  %6640 = vst [vmem:[#allocation3 + $0x48] sm:$0xf] %v6639_v0  ;;  %v6167_v33 = vmax.f32 %v6135_v50, 0.0  ;;  %v6138_v2 = vadd.f32 %v8322_v15, %v11256_v37  ;;  %v6136_v26 = vadd.f32 %v11256_v37, %v6040_v35  ;;  %v7171_v3 = vrot.slane %v11312_v19, 1 }
 0x7c8   : > { %6633 = vst [vmem:[#allocation3 + $0x3c] sm:$0xf] %v6632_v8  ;;  %v6377_v45 = vshrl.u32 %v8050_v23, 16  ;;  %v6380_v54 = vshll.u32 %v8050_v23, 16  ;;  %v6360_v30 = vshrl.u32 %v8048_v49, 16  ;;  %v6363_v60 = vshll.u32 %v8048_v49, 16 }
 0x7c9   : > { %v8325_v47 = vpop.f32.mrb[24].mxu0  ;;  %v8053_v12 = vpack.c.bf16 %v6169_v21, %v6169_v21  ;;  %v8051_v62 = vpack.c.bf16 %v6167_v33, %v6167_v33  ;;  %v6170_v61 = vmax.f32 %v6138_v2, 0.0  ;;  %v6168_v4 = vmax.f32 %v6136_v26, 0.0  ;;  %v6635_v39 = vld [vmem:[#allocation3 + $0x44] sm:$0x1] }
 0x7ca   : > { %v6053_v44 = vpop.f32.mrb[25].mxu0  ;;  %v6379_v55 = vrot.slane %v6377_v45, 7  ;;  %v6362_v41 = vrot.slane %v6360_v30, 7  ;;  %v7172_v10 = vrot.slane %v11314_v42, 1  ;;  %v6141_v0 = vadd.f32 %v8325_v47, %v11256_v37 }
 0x7cb   : > { %v8326_v18 = vpop.f32.mrb[26].mxu0  ;;  %v6403_v38 = vshrl.u32 %v8053_v12, 16  ;;  %v6406_v32 = vshll.u32 %v8053_v12, 16  ;;  %v6386_v59 = vshrl.u32 %v8051_v62, 16  ;;  %v6389_v51 = vshll.u32 %v8051_v62, 16 }
 0x7cc   : > { %v6056_v52 = vpop.f32.mrb[27].mxu0  ;;  %v6382_v6 = vor.u32 %v6380_v54, %v6379_v55  ;;  %v6384_v43 = vrot.slane %v6379_v55, 4  ;;  %v6365_v20 = vor.u32 %v6363_v60, %v6362_v41  ;;  %v6367_v22 = vrot.slane %v6362_v41, 4  ;;  %v6649_v55 = vld [vmem:[#allocation3 + $0x5c] sm:$0x1] }
 0x7cd   : > { %v6405_v1 = vrot.slane %v6403_v38, 7  ;;  %v6388_v40 = vrot.slane %v6386_v59, 7  ;;  %v8054_v53 = vpack.c.bf16 %v6170_v61, %v6170_v61  ;;  %v8052_v27 = vpack.c.bf16 %v6168_v4, %v6168_v4  ;;  %v6656_v4 = vld [vmem:[#allocation3 + $0x68] sm:$0x1] }
 0x7ce   : > { %v6383_v56 = vsel %vm9245_vm15, %v6375_v5, %v6382_v6  ;;  %v6643_v63 = vsel %vm9939_vm5, %v6384_v43, %v6642_v57  ;;  %v6366_v50 = vsel %vm9245_vm15, %v6358_v13, %v6365_v20  ;;  %v6636_v15 = vsel %vm9939_vm5, %v6367_v22, %v6635_v39  ;;  %v6645_v5 = vld [vmem:[#allocation3 + $0x54] sm:$0xf] }
 0x7cf   : > { %6641 = vst.msk [vmem:[#allocation3 + $0x4c] sm:$0xf] %vm528_vm14, %v6383_v56  ;;  %6644 = vst [vmem:[#allocation3 + $0x50] sm:$0x1] %v6643_v63  ;;  %v6408_v11 = vor.u32 %v6406_v32, %v6405_v1  ;;  %v6409_v34 = vrot.slane %v6405_v1, 4  ;;  %v6391_v35 = vor.u32 %v6389_v51, %v6388_v40  ;;  %v6392_v28 = vrot.slane %v6388_v40, 4 }
 0x7d0   : > { %6634 = vst.msk [vmem:[#allocation3 + $0x40] sm:$0xf] %vm528_vm14, %v6366_v50  ;;  %6637 = vst [vmem:[#allocation3 + $0x44] sm:$0x1] %v6636_v15  ;;  %v6411_v17 = vshrl.u32 %v8054_v53, 16  ;;  %v6414_v13 = vshll.u32 %v8054_v53, 16  ;;  %v7173_v46 = vsel %vm3056_vm0, %v7171_v3, %v7172_v10  ;;  %v6139_v45 = vadd.f32 %v11256_v37, %v6053_v44 }
 0x7d1   : > { %v6394_v58 = vshrl.u32 %v8052_v27, 16  ;;  %v6397_v25 = vshll.u32 %v8052_v27, 16  ;;  %v11334_v24 = vpop.f32.mrb[28].mxu0  ;;  %v6653_v36 = vsel %vm10315_vm7, %v6408_v11, %v6652_v9  ;;  %v6646_v31 = vsel %vm10315_vm7, %v6391_v35, %v6645_v5  ;;  %7223 = vrot.lane.b32.xlu1 %v7173_v46, %s11951_s24 }
 0x7d2   : > { %v11342_v8 = vpop.f32.mrb[29].mxu0  ;;  %6654 = vst [vmem:[#allocation3 + $0x60] sm:$0xf] %v6653_v36  ;;  %6647 = vst [vmem:[#allocation3 + $0x54] sm:$0xf] %v6646_v31  ;;  %v6413_v23 = vrot.slane %v6411_v17, 7  ;;  %v6142_v54 = vadd.f32 %v8326_v18, %v11256_v37  ;;  %v6140_v30 = vadd.f32 %v11256_v37, %v6056_v52  ;;  %v6145_v31 = vadd.f32 %v11334_v24, %v11256_v37 }
 0x7d3   : > { %v6396_v49 = vrot.slane %v6394_v58, 7  ;;  %v7168_v21 = vrot.slane %v11328_v29, 1  ;;  %v7169_v33 = vrot.slane %v11330_v14, 1  ;;  %v11347_v2 = vpop.f32.mrb[30].mxu0  ;;  %v6173_v26 = vmax.f32 %v6141_v0, 0.0 }
 0x7d4   : > { %v11352_v60 = vpop.f32.mrb[31].mxu0  ;;  %v6416_v47 = vor.u32 %v6414_v13, %v6413_v23  ;;  %v6418_v12 = vrot.slane %v6413_v23, 4  ;;  %v6171_v10 = vmax.f32 %v6139_v45, 0.0  ;;  %v6174_v38 = vmax.f32 %v6142_v54, 0.0  ;;  %v6659_v13 = vld [vmem:[#allocation3 + $0x6c] sm:$0xf] }
 0x7d5   : > { %v6399_v62 = vor.u32 %v6397_v25, %v6396_v49  ;;  %v6401_v61 = vrot.slane %v6396_v49, 4  ;;  %v8057_v41 = vpack.c.bf16 %v6173_v26, %v6173_v26  ;;  %v7170_v3 = vsel %vm3056_vm0, %v7168_v21, %v7169_v33  ;;  %v6670_v21 = vld [vmem:[#allocation3 + $0x80] sm:$0x1] }
 0x7d6   : > { %v6417_v44 = vsel %vm9245_vm15, %v6409_v34, %v6416_v47  ;;  %v6657_v18 = vsel %vm9939_vm5, %v6418_v12, %v6656_v4  ;;  %7221 = vrot.lane.b32.xlu1 %v7170_v3, %s11951_s24  ;;  %v8055_v6 = vpack.c.bf16 %v6171_v10, %v6171_v10  ;;  %v8058_v43 = vpack.c.bf16 %v6174_v38, %v6174_v38  ;;  %v11394_v3 = vld [vmem:[#allocation3 + $0x2c] ss:$0 sps:$4 sm:$0x11]   ;;  %v6663_v10 = vld [vmem:[#allocation3 + $0x74] sm:$0x1] }
 0x7d7   : > { %v6400_v32 = vsel %vm9245_vm15, %v6392_v28, %v6399_v62  ;;  %v6650_v59 = vsel %vm9939_vm5, %v6401_v61, %v6649_v55  ;;  %6655 = vst.msk [vmem:[#allocation3 + $0x64] sm:$0xf] %vm528_vm14, %v6417_v44  ;;  %6658 = vst [vmem:[#allocation3 + $0x68] sm:$0x1] %v6657_v18  ;;  %v6437_v51 = vshrl.u32 %v8057_v41, 16  ;;  %v6440_v52 = vshll.u32 %v8057_v41, 16 }
 0x7d8   : > { %6648 = vst.msk [vmem:[#allocation3 + $0x58] sm:$0xf] %vm528_vm14, %v6400_v32  ;;  %6651 = vst [vmem:[#allocation3 + $0x5c] sm:$0x1] %v6650_v59  ;;  %v6172_v57 = vmax.f32 %v6140_v30, 0.0  ;;  %v6938_v20 = vshrl.u32 %v11312_v19, 16  ;;  %v6143_v18 = vadd.f32 %v11256_v37, %v11342_v8  ;;  %v6144_v8 = vadd.f32 %v11256_v37, %v11352_v60 }
 0x7d9   : > { %v6940_v22 = vshll.u32 %v11312_v19, 16  ;;  %v6945_v39 = vshll.u32 %v11314_v42, 16  ;;  %v11369_v1 = vpop.f32.mrb[32].mxu0  ;;  %v6439_v40 = vrot.slane %v6437_v51, 7  ;;  %v6420_v53 = vshrl.u32 %v8055_v6, 16  ;;  %v11382_v30 = vld [vmem:[#allocation3 + $0x24] sm:$0xff]  }
 0x7da   : > { %v6423_v27 = vshll.u32 %v8055_v6, 16  ;;  %v6445_v56 = vshrl.u32 %v8058_v43, 16  ;;  %v11371_v63 = vpop.f32.mrb[33].mxu0  ;;  %v6448_v50 = vshll.u32 %v8058_v43, 16  ;;  %v8056_v15 = vpack.c.bf16 %v6172_v57, %v6172_v57  ;;  %v6666_v42 = vld [vmem:[#allocation3 + $0x78] sm:$0xf] }
 0x7db   : > { %v6942_v9 = vrot.slane %v6940_v22, 1  ;;  %v6947_v11 = vrot.slane %v6945_v39, 1  ;;  %v11373_v34 = vpop.f32.mrb[34].mxu0  ;;  %v6442_v35 = vor.u32 %v6440_v52, %v6439_v40  ;;  %v6443_v28 = vrot.slane %v6439_v40, 4  ;;  %v11410_v39 = vld [vmem:[#allocation3 + $0x30] sm:$0xff]  }
 0x7dc   : > { %v6422_v5 = vrot.slane %v6420_v53, 7  ;;  %v6447_v19 = vrot.slane %v6445_v56, 7  ;;  %v11375_v17 = vpop.f32.mrb[35].mxu0  ;;  %v6428_v58 = vshrl.u32 %v8056_v15, 16  ;;  %v6431_v25 = vshll.u32 %v8056_v15, 16 }
 0x7dd   : > { %v6943_v36 = vor.u32 %v6942_v9, %v6938_v20  ;;  %v6667_v46 = vsel %vm10315_vm7, %v6442_v35, %v6666_v42  ;;  %v6177_v54 = vmax.f32 %v6145_v31, 0.0  ;;  %v6926_v12 = vshrl.u32 %v11328_v29, 16 }
 0x7de   : > { %v6425_v0 = vor.u32 %v6423_v27, %v6422_v5  ;;  %v6426_v23 = vrot.slane %v6422_v5, 4  ;;  %v6450_v49 = vor.u32 %v6448_v50, %v6447_v19  ;;  %6668 = vst [vmem:[#allocation3 + $0x78] sm:$0xf] %v6667_v46  ;;  %v6452_v33 = vrot.slane %v6447_v19, 4 }
 0x7df   : > { %v6430_v26 = vrot.slane %v6428_v58, 7  ;;  %v6948_v45 = vsel %vm2803_vm13, %v6943_v36, %v6947_v11  ;;  %v6928_v62 = vshll.u32 %v11328_v29, 16  ;;  %v8061_v41 = vpack.c.bf16 %v6177_v54, %v6177_v54  ;;  %v11415_v50 = vld [vmem:[#allocation3 + $0x38] ss:$0 sps:$4 sm:$0x11]  }
 0x7e0   : > { %v6660_v47 = vsel %vm10315_vm7, %v6425_v0, %v6659_v13  ;;  %v6451_v24 = vsel %vm9245_vm15, %v6443_v28, %v6450_v49  ;;  %7133 = vrot.lane.b32.xlu1 %v6948_v45, %s8709_s12  ;;  %v6671_v61 = vsel %vm9939_vm5, %v6452_v33, %v6670_v21  ;;  %v6933_v44 = vshll.u32 %v11330_v14, 16  ;;  %v6680_v11 = vld [vmem:[#allocation3 + $0x90] sm:$0xf] }
 0x7e1   : > { %6661 = vst [vmem:[#allocation3 + $0x6c] sm:$0xf] %v6660_v47  ;;  %6669 = vst.msk [vmem:[#allocation3 + $0x7c] sm:$0xf] %vm528_vm14, %v6451_v24  ;;  %v6433_v4 = vor.u32 %v6431_v25, %v6430_v26  ;;  %v6435_v55 = vrot.slane %v6430_v26, 4  ;;  %v6930_v38 = vrot.slane %v6928_v62, 1  ;;  %v6146_v29 = vadd.f32 %v11347_v2, %v11256_v37 }
 0x7e2   : > { %6672 = vst [vmem:[#allocation3 + $0x80] sm:$0x1] %v6671_v61  ;;  %v6471_v51 = vshrl.u32 %v8061_v41, 16  ;;  %v6474_v52 = vshll.u32 %v8061_v41, 16  ;;  %v6935_v43 = vrot.slane %v6933_v44, 1  ;;  %v6175_v14 = vmax.f32 %v6143_v18, 0.0 }
 0x7e3   : > { %v6434_v32 = vsel %vm9245_vm15, %v6426_v23, %v6433_v4  ;;  %v6664_v59 = vsel %vm9939_vm5, %v6435_v55, %v6663_v10  ;;  %v6931_v6 = vor.u32 %v6930_v38, %v6926_v12  ;;  %v6178_v57 = vmax.f32 %v6146_v29, 0.0  ;;  %v6673_v23 = vld [vmem:[#allocation3 + $0x84] sm:$0xf]  ;;  %v6684_v12 = vld [vmem:[#allocation3 + $0x98] sm:$0x1] }
 0x7e4   : > { %6662 = vst.msk [vmem:[#allocation3 + $0x70] sm:$0xf] %vm528_vm14, %v6434_v32  ;;  %6665 = vst [vmem:[#allocation3 + $0x74] sm:$0x1] %v6664_v59  ;;  %v6473_v20 = vrot.slane %v6471_v51, 7  ;;  %v7174_v2 = vrot.slane %v11382_v30, 1  ;;  %v8059_v53 = vpack.c.bf16 %v6175_v14, %v6175_v14  ;;  %v6149_v56 = vadd.f32 %v11369_v1, %v11256_v37 }
 0x7e5   : > { %v7175_v22 = vrot.slane %v11394_v3, 1  ;;  %v6936_v40 = vsel %vm2803_vm13, %v6931_v6, %v6935_v43  ;;  %v8062_v27 = vpack.c.bf16 %v6178_v57, %v6178_v57  ;;  %v6176_v60 = vmax.f32 %v6144_v8, 0.0  ;;  %v6677_v59 = vld [vmem:[#allocation3 + $0x8c] sm:$0x1] }
 0x7e6   : > { %v6476_v15 = vor.u32 %v6474_v52, %v6473_v20  ;;  %v6477_v9 = vrot.slane %v6473_v20, 4  ;;  %7131 = vrot.lane.b32.xlu1 %v6936_v40, %s8709_s12  ;;  %v6454_v28 = vshrl.u32 %v8059_v53, 16  ;;  %v6457_v5 = vshll.u32 %v8059_v53, 16 }
 0x7e7   : > { %v7176_v35 = vsel %vm3056_vm0, %v7174_v2, %v7175_v22  ;;  %v6479_v19 = vshrl.u32 %v8062_v27, 16  ;;  %v6482_v42 = vshll.u32 %v8062_v27, 16  ;;  %v8060_v58 = vpack.c.bf16 %v6176_v60, %v6176_v60  ;;  %v11447_v2 = vld [vmem:[#allocation3 + $0x3c] sm:$0xff]  }
 0x7e8   : > { %v6681_v13 = vsel %vm10315_vm7, %v6476_v15, %v6680_v11  ;;  %v6181_v25 = vmax.f32 %v6149_v56, 0.0  ;;  %v6962_v1 = vshrl.u32 %v11410_v39, 16  ;;  %v6456_v36 = vrot.slane %v6454_v28, 7  ;;  %v11457_v28 = vld [vmem:[#allocation3 + $0x44] ss:$0 sps:$4 sm:$0x11]  }
 0x7e9   : > { %6682 = vst [vmem:[#allocation3 + $0x90] sm:$0xf] %v6681_v13  ;;  %v6481_v31 = vrot.slane %v6479_v19, 7  ;;  %v6964_v46 = vshll.u32 %v11410_v39, 16  ;;  %v6969_v0 = vshll.u32 %v11415_v50, 16  ;;  %v6462_v49 = vshrl.u32 %v8060_v58, 16 }
 0x7ea   : > { %v6465_v21 = vshll.u32 %v8060_v58, 16  ;;  %7225 = vrot.lane.b32.xlu1 %v7176_v35, %s11951_s24  ;;  %v8065_v33 = vpack.c.bf16 %v6181_v25, %v6181_v25  ;;  %v6147_v26 = vadd.f32 %v11256_v37, %v11371_v63  ;;  %v6459_v45 = vor.u32 %v6457_v5, %v6456_v36  ;;  %v11461_v58 = vld [vmem:[#allocation3 + $0x78] sm:$0xff]   ;;  %v11463_v25 = vld [vmem:[#allocation3 + $0x80] ss:$0 sps:$4 sm:$0x11]  }
 0x7eb   : > { %v6460_v54 = vrot.slane %v6456_v36, 4  ;;  %v6484_v47 = vor.u32 %v6482_v42, %v6481_v31  ;;  %v6486_v24 = vrot.slane %v6481_v31, 4  ;;  %v6464_v62 = vrot.slane %v6462_v49, 7 }
 0x7ec   : > { %v6505_v61 = vshrl.u32 %v8065_v33, 16  ;;  %v6508_v4 = vshll.u32 %v8065_v33, 16  ;;  %v6966_v55 = vrot.slane %v6964_v46, 1  ;;  %v6674_v41 = vsel %vm10315_vm7, %v6459_v45, %v6673_v23  ;;  %v6687_v33 = vld [vmem:[#allocation3 + $0x9c] sm:$0xf] }
 0x7ed   : > { %v6485_v10 = vsel %vm9245_vm15, %v6477_v9, %v6484_v47  ;;  %v6685_v38 = vsel %vm9939_vm5, %v6486_v24, %v6684_v12  ;;  %v6971_v44 = vrot.slane %v6969_v0, 1  ;;  %6675 = vst [vmem:[#allocation3 + $0x84] sm:$0xf] %v6674_v41  ;;  %v6467_v63 = vor.u32 %v6465_v21, %v6464_v62 }
 0x7ee   : > { %6683 = vst.msk [vmem:[#allocation3 + $0x94] sm:$0xf] %vm528_vm14, %v6485_v10  ;;  %6686 = vst [vmem:[#allocation3 + $0x98] sm:$0x1] %v6685_v38  ;;  %v6469_v18 = vrot.slane %v6464_v62, 4  ;;  %v11434_v29 = vrot.slane %v6505_v61, 7  ;;  %v6967_v32 = vor.u32 %v6966_v55, %v6962_v1  ;;  %v6150_v52 = vadd.f32 %v11373_v34, %v11256_v37 }
 0x7ef   : > { %v6179_v51 = vmax.f32 %v6147_v26, 0.0  ;;  %v6148_v6 = vadd.f32 %v11256_v37, %v11375_v17  ;;  %v6950_v43 = vshrl.u32 %v11382_v30, 16  ;;  %v6468_v14 = vsel %vm9245_vm15, %v6460_v54, %v6467_v63  ;;  %v6694_v34 = vld [vmem:[#allocation3 + $0xa8] sm:$0xf]  ;;  %v11471_v62 = vld [vmem:[#allocation3 + $0x6c] sm:$0xff]  }
 0x7f0   : > { %v6678_v57 = vsel %vm9939_vm5, %v6469_v18, %v6677_v59  ;;  %v6510_v20 = vor.u32 %v6508_v4, %v11434_v29  ;;  %v6511_v8 = vrot.slane %v11434_v29, 4  ;;  %6676 = vst.msk [vmem:[#allocation3 + $0x88] sm:$0xf] %vm528_vm14, %v6468_v14  ;;  %v6972_v37 = vsel %vm2803_vm13, %v6967_v32, %v6971_v44  ;;  %v8580_v10 = vld [vmem:[#allocation3 + $0x74] ss:$0 sps:$4 sm:$0x11]  }
 0x7f1   : > { %6679 = vst [vmem:[#allocation3 + $0x8c] sm:$0x1] %v6678_v57  ;;  %v8063_v17 = vpack.c.bf16 %v6179_v51, %v6179_v51  ;;  %v6182_v22 = vmax.f32 %v6150_v52, 0.0  ;;  %v6180_v40 = vmax.f32 %v6148_v6, 0.0  ;;  %7137 = vrot.lane.b32.xlu1 %v6972_v37, %s8709_s12  ;;  %v6952_v27 = vshll.u32 %v11382_v30, 16 }
 0x7f2   : > { %v6695_v53 = vsel %vm10315_vm7, %v6510_v20, %v6694_v34  ;;  %v6957_v56 = vshll.u32 %v11394_v3, 16  ;;  %v7177_v15 = vrot.slane %v11410_v39, 1  ;;  %v7178_v42 = vrot.slane %v11415_v50, 1  ;;  %v11466_v50 = vld [vmem:[#allocation3 + $0x48] sm:$0xff]   ;;  %v6698_v38 = vld [vmem:[#allocation3 + $0xb0] sm:$0x1] }
 0x7f3   : > { %6696 = vst [vmem:[#allocation3 + $0xa8] sm:$0xf] %v6695_v53  ;;  %v6488_v9 = vshrl.u32 %v8063_v17, 16  ;;  %v6491_v11 = vshll.u32 %v8063_v17, 16  ;;  %v8066_v60 = vpack.c.bf16 %v6182_v22, %v6182_v22  ;;  %v8064_v35 = vpack.c.bf16 %v6180_v40, %v6180_v40  ;;  %v6691_v59 = vld [vmem:[#allocation3 + $0xa4] sm:$0x1] }
 0x7f4   : > { %v6954_v5 = vrot.slane %v6952_v27, 1  ;;  %v6959_v19 = vrot.slane %v6957_v56, 1  ;;  %v6974_v13 = vshrl.u32 %v11447_v2, 16  ;;  %v6976_v23 = vshll.u32 %v11447_v2, 16  ;;  %v11497_v27 = vld [vmem:[#allocation3 + $0x54] sm:$0xff]  }
 0x7f5   : > { %v6490_v3 = vrot.slane %v6488_v9, 7  ;;  %v6513_v1 = vshrl.u32 %v8066_v60, 16  ;;  %v6516_v36 = vshll.u32 %v8066_v60, 16  ;;  %v6496_v31 = vshrl.u32 %v8064_v35, 16 }
 0x7f6   : > { %v6499_v46 = vshll.u32 %v8064_v35, 16  ;;  %v6955_v0 = vor.u32 %v6954_v5, %v6950_v43  ;;  %v6978_v47 = vrot.slane %v6976_v23, 1  ;;  %v6981_v24 = vshll.u32 %v11457_v28, 16  ;;  %v8582_v14 = vld [vmem:[#allocation3 + $0x50] ss:$0 sps:$4 sm:$0x11]  }
 0x7f7   : > { %v6493_v49 = vor.u32 %v6491_v11, %v6490_v3  ;;  %v6494_v21 = vrot.slane %v6490_v3, 4  ;;  %v6515_v26 = vrot.slane %v6513_v1, 7  ;;  %v6498_v45 = vrot.slane %v6496_v31, 7  ;;  %v11512_v23 = vld [vmem:[#allocation3 + $0x84] sm:$0xff]  }
 0x7f8   : > { %v6960_v54 = vsel %vm2803_vm13, %v6955_v0, %v6959_v19  ;;  %v7195_v12 = vrot.slane %v11461_v58, 1  ;;  %v7196_v63 = vrot.slane %v11463_v25, 1  ;;  %v6979_v51 = vor.u32 %v6978_v47, %v6974_v13  ;;  %v8584_v0 = vld [vmem:[#allocation3 + $0x5c] ss:$0 sps:$4 sm:$0x11]  }
 0x7f9   : > { %v6688_v61 = vsel %vm10315_vm7, %v6493_v49, %v6687_v33  ;;  %v6518_v4 = vor.u32 %v6516_v36, %v6515_v26  ;;  %v6520_v55 = vrot.slane %v6515_v26, 4  ;;  %v6501_v41 = vor.u32 %v6499_v46, %v6498_v45  ;;  %7135 = vrot.lane.b32.xlu1 %v6960_v54, %s8709_s12  ;;  %v8586_v49 = vld [vmem:[#allocation3 + $0x8c] ss:$0 sps:$4 sm:$0x11]  }
 0x7fa   : > { %6689 = vst [vmem:[#allocation3 + $0x9c] sm:$0xf] %v6688_v61  ;;  %v6503_v44 = vrot.slane %v6498_v45, 4  ;;  %v7179_v6 = vsel %vm3056_vm0, %v7177_v15, %v7178_v42  ;;  %v7197_v43 = vsel %vm3056_vm0, %v7195_v12, %v7196_v63  ;;  %v6983_v57 = vrot.slane %v6981_v24, 1 }
 0x7fb   : > { %v6519_v18 = vsel %vm9245_vm15, %v6511_v8, %v6518_v4  ;;  %v6699_v29 = vsel %vm9939_vm5, %v6520_v55, %v6698_v38  ;;  %v6502_v32 = vsel %vm9245_vm15, %v6494_v21, %v6501_v41  ;;  %7239 = vrot.lane.b32.xlu0 %v7197_v43, %s11951_s24  ;;  %v7192_v20 = vrot.slane %v11471_v62, 1  ;;  %v11516_v26 = vld [vmem:[#allocation3 + $0x98] ss:$0 sps:$4 sm:$0x11]   ;;  %v11523_v38 = vld [vmem:[#allocation3 + $0x60] sm:$0xff]  }
 0x7fc   : > { %6697 = vst.msk [vmem:[#allocation3 + $0xac] sm:$0xf] %vm528_vm14, %v6519_v18  ;;  %6700 = vst [vmem:[#allocation3 + $0xb0] sm:$0x1] %v6699_v29  ;;  %v6692_v52 = vsel %vm9939_vm5, %v6503_v44, %v6691_v59  ;;  %v7193_v8 = vrot.slane %v8580_v10, 1  ;;  %v6988_v34 = vshll.u32 %v11466_v50, 16  ;;  %v6984_v17 = vsel %vm2803_vm13, %v6979_v51, %v6983_v57 }
 0x7fd   : > { %6690 = vst.msk [vmem:[#allocation3 + $0xa0] sm:$0xf] %vm528_vm14, %v6502_v32  ;;  %6693 = vst [vmem:[#allocation3 + $0xa4] sm:$0x1] %v6692_v52  ;;  %7227 = vrot.lane.b32.xlu1 %v7179_v6, %s11951_s24  ;;  %v7036_v37 = vshll.u32 %v11461_v58, 16  ;;  %v7180_v22 = vrot.slane %v11447_v2, 1 }
 0x7fe   : > { %v6990_v40 = vrot.slane %v6988_v34, 1  ;;  %v7041_v53 = vshll.u32 %v11463_v25, 16  ;;  %v7181_v56 = vrot.slane %v11457_v28, 1  ;;  %v7194_v15 = vsel %vm3056_vm0, %v7192_v20, %v7193_v8  ;;  %v11506_v25 = vld [vmem:[#allocation3 + $0x90] sm:$0xff]  }
 0x7ff   : > { %v7034_v9 = vshrl.u32 %v11461_v58, 16  ;;  %v7038_v11 = vrot.slane %v7036_v37, 1  ;;  %7237 = vrot.lane.b32.xlu0 %v7194_v15, %s11951_s24  ;;  %v6986_v60 = vshrl.u32 %v11466_v50, 16  ;;  %v6993_v35 = vshll.u32 %v8582_v14, 16 }
 0x800   : > { %v7024_v5 = vshll.u32 %v11471_v62, 16  ;;  %v7043_v42 = vrot.slane %v7041_v53, 1  ;;  %v7029_v13 = vshll.u32 %v8580_v10, 16  ;;  %v7022_v3 = vshrl.u32 %v11471_v62, 16 }
 0x801   : > { %7139 = vrot.lane.b32.xlu1 %v6984_v17, %s8709_s12  ;;  %v7039_v19 = vor.u32 %v7038_v11, %v7034_v9  ;;  %v6991_v28 = vor.u32 %v6990_v40, %v6986_v60  ;;  %v7000_v36 = vshll.u32 %v11497_v27, 16  ;;  %v7182_v31 = vsel %vm3056_vm0, %v7180_v22, %v7181_v56  ;;  %v8590_v57 = vld [vmem:[#allocation3 + $0x68] ss:$0 sps:$4 sm:$0x11]   ;;  %v11537_v17 = vld [vmem:[#allocation3 + $0xcc] sm:$0xff]  }
 0x802   : > { %v7026_v1 = vrot.slane %v7024_v5, 1  ;;  %v6995_v21 = vrot.slane %v6993_v35, 1  ;;  %v7031_v45 = vrot.slane %v7029_v13, 1  ;;  %v7060_v54 = vshll.u32 %v11506_v25, 16 }
 0x803   : > { %v7044_v46 = vsel %vm2803_vm13, %v7039_v19, %v7043_v42  ;;  %v7183_v24 = vrot.slane %v11466_v50, 1  ;;  %v7184_v12 = vrot.slane %v8582_v14, 1  ;;  %v7002_v61 = vrot.slane %v7000_v36, 1  ;;  %v11542_v11 = vld [vmem:[#allocation3 + $0xa8] sm:$0xff]  }
 0x804   : > { %7149 = vrot.lane.b32.xlu0 %v7044_v46, %s8709_s12  ;;  %v7027_v33 = vor.u32 %v7026_v1, %v7022_v3  ;;  %v6996_v47 = vsel %vm2803_vm13, %v6991_v28, %v6995_v21  ;;  %v7198_v55 = vrot.slane %v11512_v23, 1  ;;  %v7199_v41 = vrot.slane %v8586_v49, 1  ;;  %v8596_v60 = vld [vmem:[#allocation3 + $0xd4] ss:$0 sps:$4 sm:$0x11]   ;;  %v11550_v3 = vld [vmem:[#allocation3 + $0x9c] sm:$0xff]  }
 0x805   : > { %7229 = vrot.lane.b32.xlu1 %v7182_v31, %s11951_s24  ;;  %v7062_v10 = vrot.slane %v7060_v54, 1  ;;  %v6998_v44 = vshrl.u32 %v11497_v27, 16  ;;  %v7048_v63 = vshll.u32 %v11512_v23, 16  ;;  %v7005_v18 = vshll.u32 %v8584_v0, 16 }
 0x806   : > { %v7032_v4 = vsel %vm2803_vm13, %v7027_v33, %v7031_v45  ;;  %v7058_v29 = vshrl.u32 %v11506_v25, 16  ;;  %v7065_v32 = vshll.u32 %v11516_v26, 16  ;;  %v7185_v59 = vsel %vm3056_vm0, %v7183_v24, %v7184_v12  ;;  %v8592_v1 = vld [vmem:[#allocation3 + $0xa4] ss:$0 sps:$4 sm:$0x11]  }
 0x807   : > { %v7003_v51 = vor.u32 %v7002_v61, %v6998_v44  ;;  %v7200_v52 = vsel %vm3056_vm0, %v7198_v55, %v7199_v41  ;;  %v7012_v43 = vshll.u32 %v11523_v38, 16  ;;  %v7050_v14 = vrot.slane %v7048_v63, 1 }
 0x808   : > { %7147 = vrot.lane.b32.xlu0 %v7032_v4, %s8709_s12  ;;  %v7063_v6 = vor.u32 %v7062_v10, %v7058_v29  ;;  %v7007_v20 = vrot.slane %v7005_v18, 1  ;;  %v7067_v8 = vrot.slane %v7065_v32, 1  ;;  %v7046_v34 = vshrl.u32 %v11512_v23, 16 }
 0x809   : > { %7141 = vrot.lane.b32.xlu1 %v6996_v47, %s8709_s12  ;;  %v7053_v37 = vshll.u32 %v8586_v49, 16  ;;  %v7186_v22 = vrot.slane %v11497_v27, 1  ;;  %v7187_v40 = vrot.slane %v8584_v0, 1  ;;  %v7014_v15 = vrot.slane %v7012_v43, 1 }
 0x80a   : > { %v7008_v53 = vsel %vm2803_vm13, %v7003_v51, %v7007_v20  ;;  %v7068_v56 = vsel %vm2803_vm13, %v7063_v6, %v7067_v8  ;;  %v7051_v9 = vor.u32 %v7050_v14, %v7046_v34  ;;  %v7010_v35 = vshrl.u32 %v11523_v38, 16  ;;  %v8594_v49 = vld [vmem:[#allocation3 + $0xb0] ss:$0 sps:$4 sm:$0x11]  }
 0x80b   : > { %v7017_v5 = vshll.u32 %v8590_v57, 16  ;;  %v7055_v19 = vrot.slane %v7053_v37, 1  ;;  %v7120_v42 = vshll.u32 %v11537_v17, 16  ;;  %v7188_v13 = vsel %vm3056_vm0, %v7186_v22, %v7187_v40 }
 0x80c   : > { %7241 = vrot.lane.b32.xlu0 %v7200_v52, %s11951_s24  ;;  %v7201_v28 = vrot.slane %v11506_v25, 1  ;;  %v7015_v36 = vor.u32 %v7014_v15, %v7010_v35  ;;  %v7202_v46 = vrot.slane %v11516_v26, 1  ;;  %v7084_v0 = vshll.u32 %v11542_v11, 16 }
 0x80d   : > { %7231 = vrot.lane.b32.xlu1 %v7185_v59, %s11951_s24  ;;  %v7056_v31 = vsel %vm2803_vm13, %v7051_v9, %v7055_v19  ;;  %v7019_v21 = vrot.slane %v7017_v5, 1  ;;  %v7118_v33 = vshrl.u32 %v11537_v17, 16  ;;  %v7122_v45 = vrot.slane %v7120_v42, 1  ;;  %v8622_v9 = vld [vmem:[%s11895_s8] ss:$0 sm:$0xff] }
 0x80e   : > { %v7125_v54 = vshll.u32 %v8596_v60, 16  ;;  %v7189_v47 = vrot.slane %v11523_v38, 1  ;;  %v7190_v24 = vrot.slane %v8590_v57, 1  ;;  %v7204_v12 = vrot.slane %v11550_v3, 1 }
 0x80f   : > { %v7205_v61 = vrot.slane %v8592_v1, 1  ;;  %v7020_v26 = vsel %vm2803_vm13, %v7015_v36, %v7019_v21  ;;  %v7203_v4 = vsel %vm3056_vm0, %v7201_v28, %v7202_v46  ;;  %v7086_v55 = vrot.slane %v7084_v0, 1 }
 0x810   : > { %7153 = vrot.lane.b32.xlu0 %v7068_v56, %s8709_s12  ;;  %v7072_v41 = vshll.u32 %v11550_v3, 16  ;;  %v7089_v10 = vshll.u32 %v8594_v49, 16  ;;  %v7082_v44 = vshrl.u32 %v11542_v11, 16  ;;  %v7123_v63 = vor.u32 %v7122_v45, %v7118_v33 }
 0x811   : > { %7143 = vrot.lane.b32.xlu1 %v7008_v53, %s8709_s12  ;;  %v7127_v18 = vrot.slane %v7125_v54, 1  ;;  %v7191_v29 = vsel %vm3056_vm0, %v7189_v47, %v7190_v24  ;;  %v7206_v32 = vsel %vm3056_vm0, %v7204_v12, %v7205_v61  ;;  %v7070_v6 = vshrl.u32 %v11550_v3, 16 }
 0x812   : > { %v7087_v59 = vor.u32 %v7086_v55, %v7082_v44  ;;  %v7074_v51 = vrot.slane %v7072_v41, 1  ;;  %v7091_v52 = vrot.slane %v7089_v10, 1  ;;  %v7077_v43 = vshll.u32 %v8592_v1, 16 }
 0x813   : > { %v7128_v14 = vsel %vm2803_vm13, %v7123_v63, %v7127_v18  ;;  %v7216_v57 = vrot.slane %v11537_v17, 1  ;;  %v7217_v20 = vrot.slane %v8596_v60, 1  ;;  %v7207_v53 = vrot.slane %v11542_v11, 1  ;;  %v6708_v63 = vld [vmem:[#allocation3 + $0xc0] sm:$0xf] }
 0x814   : > { %7151 = vrot.lane.b32.xlu0 %v7056_v31, %s8709_s12  ;;  %v7092_v8 = vsel %vm2803_vm13, %v7087_v59, %v7091_v52  ;;  %v7075_v34 = vor.u32 %v7074_v51, %v7070_v6  ;;  %v7079_v37 = vrot.slane %v7077_v43, 1  ;;  %v7208_v56 = vrot.slane %v8594_v49, 1  ;;  %v6701_v52 = vld [vmem:[#allocation3 + $0xb4] sm:$0xf] }
 0x815   : > { %7233 = vrot.lane.b32.xlu1 %v7188_v13, %s11951_s24  ;;  %v7218_v22 = vsel %vm3056_vm0, %v7216_v57, %v7217_v20  ;;  %v6712_v20 = vld [vmem:[#allocation3 + $0xc8] sm:$0x1] }
 0x816   : > { %v7080_v40 = vsel %vm2803_vm13, %v7075_v34, %v7079_v37  ;;  %v7209_v1 = vsel %vm3056_vm0, %v7207_v53, %v7208_v56 }
 0x818   : > { %7243 = vrot.lane.b32.xlu0 %v7203_v4, %s11951_s24 }
 0x819   : > { %7145 = vrot.lane.b32.xlu1 %v7020_v26, %s8709_s12 }
 0x81c   : > { %7245 = vrot.lane.b32.xlu0 %v7206_v32, %s11951_s24 }
 0x81d   : > { %7235 = vrot.lane.b32.xlu1 %v7191_v29, %s11951_s24 }
 0x820   : > { %7157 = vrot.lane.b32.xlu0 %v7092_v8, %s8709_s12 }
 0x821   : > { %7163 = vrot.lane.b32.xlu1 %v7128_v14, %s8709_s12 }
 0x824   : > { %v8337_v15 = vpop.f32.mrb[36].mxu0  ;;  %7155 = vrot.lane.b32.xlu0 %v7080_v40, %s8709_s12  ;;  %v6705_v40 = vld [vmem:[#allocation3 + $0xbc] sm:$0x1] }
 0x825   : > { %v6153_v60 = vadd.f32 %v8622_v9, %v8337_v15  ;;  %v6101_v35 = vpop.f32.mrb[37].mxu0  ;;  %7253 = vrot.lane.b32.xlu1 %v7218_v22, %s11951_s24 }
 0x826   : > { %v6151_v5 = vadd.f32 %v8622_v9, %v6101_v35  ;;  %v8338_v19 = vpop.f32.mrb[38].mxu0 }
 0x827   : > { %v6185_v42 = vmax.f32 %v6153_v60, 0.0  ;;  %v6154_v13 = vadd.f32 %v8622_v9, %v8338_v19  ;;  %v6104_v28 = vpop.f32.mrb[39].mxu0 }
 0x828   : > { %v6183_v36 = vmax.f32 %v6151_v5, 0.0  ;;  %v6152_v31 = vadd.f32 %v8622_v9, %v6104_v28  ;;  %7247 = vrot.lane.b32.xlu0 %v7209_v1, %s11951_s24 }
 0x829   : > { %v8069_v46 = vpack.c.bf16 %v6185_v42, %v6185_v42  ;;  %v6186_v0 = vmax.f32 %v6154_v13, 0.0  ;;  %v11607_v13 = vld [vmem:[#allocation3] sm:$0xff]  }
 0x82a   : > { %v8067_v49 = vpack.c.bf16 %v6183_v36, %v6183_v36  ;;  %v6184_v21 = vmax.f32 %v6152_v31, 0.0 }
 0x82b   : > { %v6539_v33 = vshrl.u32 %v8069_v46, 16  ;;  %v8070_v45 = vpack.c.bf16 %v6186_v0, %v6186_v0  ;;  %v6542_v12 = vshll.u32 %v8069_v46, 16 }
 0x82c   : > { %v6522_v54 = vshrl.u32 %v8067_v49, 16  ;;  %v8068_v47 = vpack.c.bf16 %v6184_v21, %v6184_v21  ;;  %v6525_v4 = vshll.u32 %v8067_v49, 16  ;;  %v8602_v21 = vld [vmem:[#allocation3 + $0x8] ss:$0 sps:$4 sm:$0x11]  }
 0x82d   : > { %v6541_v24 = vrot.slane %v6539_v33, 7  ;;  %v6547_v61 = vshrl.u32 %v8070_v45, 16  ;;  %v6550_v44 = vshll.u32 %v8070_v45, 16  ;;  %v6916_v33 = vshll.u32 %v11607_v13, 16 }
 0x82e   : > { %v6524_v26 = vrot.slane %v6522_v54, 7  ;;  %v6530_v55 = vshrl.u32 %v8068_v47, 16  ;;  %v6533_v32 = vshll.u32 %v8068_v47, 16 }
 0x82f   : > { %v6544_v41 = vor.u32 %v6542_v12, %v6541_v24  ;;  %v6549_v10 = vrot.slane %v6547_v61, 7  ;;  %v6545_v59 = vrot.slane %v6541_v24, 4  ;;  %v6914_v12 = vshrl.u32 %v11607_v13, 16 }
 0x830   : > { %v6527_v18 = vor.u32 %v6525_v4, %v6524_v26  ;;  %v6532_v29 = vrot.slane %v6530_v55, 7  ;;  %v6528_v14 = vrot.slane %v6524_v26, 4  ;;  %v6918_v61 = vrot.slane %v6916_v33, 1 }
 0x831   : > { %v6709_v51 = vsel %vm10315_vm7, %v6544_v41, %v6708_v63  ;;  %v6552_v6 = vor.u32 %v6550_v44, %v6549_v10  ;;  %v6554_v43 = vrot.slane %v6549_v10, 4  ;;  %v6921_v26 = vshll.u32 %v8602_v21, 16 }
 0x832   : > { %6710 = vst [vmem:[#allocation3 + $0xc0] sm:$0xf] %v6709_v51  ;;  %v6702_v57 = vsel %vm10315_vm7, %v6527_v18, %v6701_v52  ;;  %v6535_v8 = vor.u32 %v6533_v32, %v6532_v29  ;;  %v6537_v34 = vrot.slane %v6532_v29, 4  ;;  %v6919_v10 = vor.u32 %v6918_v61, %v6914_v12 }
 0x833   : > { %6703 = vst [vmem:[#allocation3 + $0xb4] sm:$0xf] %v6702_v57  ;;  %v6553_v37 = vsel %vm9245_vm15, %v6545_v59, %v6552_v6  ;;  %v6713_v22 = vsel %vm9939_vm5, %v6554_v43, %v6712_v20  ;;  %v6923_v44 = vrot.slane %v6921_v26, 1  ;;  %v7165_v32 = vrot.slane %v11607_v13, 1  ;;  %v8623_v43 = vld [vmem:[#allocation3 + $0xc] sm:$0xff]   ;;  %v8624_v20 = vld [vmem:[#allocation3 + $0x18] sm:$0xff]  }
 0x834   : > { %6711 = vst.msk [vmem:[#allocation3 + $0xc4] sm:$0xf] %vm528_vm14, %v6553_v37  ;;  %6714 = vst [vmem:[#allocation3 + $0xc8] sm:$0x1] %v6713_v22  ;;  %v6536_v53 = vsel %vm9245_vm15, %v6528_v14, %v6535_v8  ;;  %v6706_v7 = vsel %vm9939_vm5, %v6537_v34, %v6705_v40  ;;  %v7166_v59 = vrot.slane %v8602_v21, 1 }
 0x835   : > { %6704 = vst.msk [vmem:[#allocation3 + $0xb8] sm:$0xf] %vm528_vm14, %v6536_v53  ;;  %6707 = vst [vmem:[#allocation3 + $0xbc] sm:$0x1] %v6706_v7  ;;  %v6924_v29 = vsel %vm2803_vm13, %v6919_v10, %v6923_v44 }
 0x836   : > { %v7167_v52 = vsel %vm3056_vm0, %v7165_v32, %v7166_v59 }
 0x83b   : > { %v11600_v56 = vld [vmem:[#allocation3 + $0xc0] sm:$0xff]   ;;  %v8600_v60 = vld [vmem:[#allocation3 + $0xc8] ss:$0 sps:$4 sm:$0x11]  }
 0x83c   : > { %v11602_v15 = vld [vmem:[#allocation3 + $0xb4] sm:$0xff]   ;;  %v8598_v9 = vld [vmem:[#allocation3 + $0xbc] ss:$0 sps:$4 sm:$0x11]   ;;  %v7108_v5 = vshll.u32 %v11600_v56, 16  ;;  %v7113_v42 = vshll.u32 %v8600_v60, 16 }
 0x83d   : > { %v7210_v35 = vrot.slane %v11602_v15, 1  ;;  %v7211_v19 = vrot.slane %v8598_v9, 1  ;;  %v7096_v48 = vshll.u32 %v11602_v15, 16  ;;  %v7106_v16 = vshrl.u32 %v11600_v56, 16 }
 0x83e   : > { %v7110_v28 = vrot.slane %v7108_v5, 1  ;;  %v7115_v46 = vrot.slane %v7113_v42, 1  ;;  %v7094_v0 = vshrl.u32 %v11602_v15, 16  ;;  %v7101_v49 = vshll.u32 %v8598_v9, 16 }
 0x83f   : > { %v7212_v1 = vsel %vm3056_vm0, %v7210_v35, %v7211_v19  ;;  %v7098_v36 = vrot.slane %v7096_v48, 1  ;;  %v7213_v55 = vrot.slane %v11600_v56, 1  ;;  %v7214_v41 = vrot.slane %v8600_v60, 1 }
 0x840   : > { %7249 = vrot.lane.b32.xlu0 %v7212_v1, %s11951_s24  ;;  %v7111_v31 = vor.u32 %v7110_v28, %v7106_v16  ;;  %v7103_v24 = vrot.slane %v7101_v49, 1 }
 0x841   : > { %v7099_v54 = vor.u32 %v7098_v36, %v7094_v0  ;;  %v7215_v18 = vsel %vm3056_vm0, %v7213_v55, %v7214_v41 }
 0x842   : > { %v7116_v45 = vsel %vm2803_vm13, %v7111_v31, %v7115_v46 }
 0x843   : > { %v7224_v47 = vpop.permute.xlu1 %7223  ;;  %v7104_v4 = vsel %vm2803_vm13, %v7099_v54, %v7103_v24 }
 0x844   : > { %7161 = vrot.lane.b32.xlu0 %v7116_v45, %s8709_s12 }
 0x848   : > { %7159 = vrot.lane.b32.xlu0 %v7104_v4, %s8709_s12  ;;  %v7222_v63 = vpop.permute.xlu1 %7221 }
 0x84c   : > { %7251 = vrot.lane.b32.xlu0 %v7215_v18, %s11951_s24 }
 0x850   : > { %7129 = vrot.lane.b32.xlu0 %v6924_v29, %s8709_s12 }
 0x852   : > { %v7134_v51 = vpop.permute.xlu1 %7133 }
 0x853   : > { %v7260_v8 = vsel %vm4706_vm3, %v8624_v20, %v7134_v51 }
 0x854   : > { %7219 = vrot.lane.b32.xlu0 %v7167_v52, %s11951_s24  ;;  %v11635_v34 = vsel %vm663_vm2, %v7260_v8, %v7224_v47  ;;  %s8631_s24 = scalar_lea.vmem %s8630_s15, 256 }
 0x858   : > { %v7132_v6 = vpop.permute.xlu1 %7131 }
 0x859   : > { %v7258_v14 = vsel %vm4706_vm3, %v8623_v43, %v7132_v6  ;;  %v11757_v43 = vld [vmem:[%s11896_s9] sm:$0x3] }
 0x85a   : > { %v11629_v57 = vsel %vm663_vm2, %v7258_v14, %v7222_v63  ;;  %8165 = vmatprep.mubr.msk.bf16.mxu1 %vm5707_vm9, %v11757_v43 }
 0x85b   : > { %7343 = vrot.lane.b32.xlu1 %v11629_v57, %s8710_s25 }
 0x85c   : > { %v7226_v37 = vpop.permute.xlu1 %7225 }
 0x85f   : > { %7376 = vrot.lane.b32.xlu1 %v11635_v34, %s11948_s30 }
 0x863   : > { %7345 = vrot.lane.b32.xlu1 %v11635_v34, %s8710_s25  ;;  %v7138_v22 = vpop.permute.xlu1 %7137 }
 0x864   : > { %v7264_v19 = vsel %vm4706_vm3, %v11410_v39, %v7138_v22 }
 0x86b   : > { %v7136_v40 = vpop.permute.xlu1 %7135 }
 0x86c   : > { %v7262_v53 = vsel %vm4706_vm3, %v11382_v30, %v7136_v40 }
 0x86d   : > { %v11644_v7 = vsel %vm663_vm2, %v7262_v53, %v7226_v37  ;;  %v7240_v60 = vpop.permute.xlu0 %7239  ;;  %v7473_v37 = vld [vmem:[%s11897_s10] sm:$0xf] }
 0x86e   : > { %7378 = vrot.lane.b32.xlu1 %v11644_v7, %s11948_s30 }
 0x86f   : > { %v7228_v9 = vpop.permute.xlu1 %7227 }
 0x870   : > { %v11653_v42 = vsel %vm663_vm2, %v7264_v19, %v7228_v9 }
 0x871   : > { %v7238_v5 = vpop.permute.xlu0 %7237 }
 0x872   : > { %7347 = vrot.lane.b32.xlu1 %v11644_v7, %s8710_s25 }
 0x873   : > { %v7140_v35 = vpop.permute.xlu1 %7139 }
 0x874   : > { %v7266_v1 = vsel %vm4706_vm3, %v11447_v2, %v7140_v35 }
 0x876   : > { %7380 = vrot.lane.b32.xlu1 %v11653_v42, %s11948_s30  ;;  %v7150_v48 = vpop.permute.xlu0 %7149 }
 0x877   : > { %v7230_v30 = vpop.permute.xlu1 %7229  ;;  %v7276_v46 = vsel %vm4706_vm3, %v11461_v58, %v7150_v48 }
 0x878   : > { %v11664_v39 = vsel %vm663_vm2, %v7266_v1, %v7230_v30  ;;  %v11676_v49 = vsel %vm663_vm2, %v7276_v46, %v7240_v60 }
 0x87a   : > { %7349 = vrot.lane.b32.xlu1 %v11653_v42, %s8710_s25  ;;  %v7148_v28 = vpop.permute.xlu0 %7147 }
 0x87b   : > { %v7142_v16 = vpop.permute.xlu1 %7141  ;;  %v7274_v36 = vsel %vm4706_vm3, %v11471_v62, %v7148_v28 }
 0x87c   : > { %v11667_v31 = vsel %vm663_vm2, %v7274_v36, %v7238_v5  ;;  %v7268_v58 = vsel %vm4706_vm3, %v11466_v50, %v7142_v16 }
 0x87d   : > { %7359 = vrot.lane.b32.xlu0 %v11667_v31, %s8710_s25 }
 0x87e   : > { %7382 = vrot.lane.b32.xlu1 %v11664_v39, %s11948_s30  ;;  %v7242_v2 = vpop.permute.xlu0 %7241 }
 0x87f   : > { %v7232_v0 = vpop.permute.xlu1 %7231 }
 0x880   : > { %v11685_v33 = vsel %vm663_vm2, %v7268_v58, %v7232_v0 }
 0x881   : > { %7392 = vrot.lane.b32.xlu0 %v11676_v49, %s11948_s30 }
 0x882   : > { %7351 = vrot.lane.b32.xlu1 %v11664_v39, %s8710_s25  ;;  %v7154_v21 = vpop.permute.xlu0 %7153 }
 0x883   : > { %v7144_v62 = vpop.permute.xlu1 %7143  ;;  %v7280_v4 = vsel %vm4706_vm3, %v11506_v25, %v7154_v21 }
 0x884   : > { %v7270_v12 = vsel %vm4706_vm3, %v11497_v27, %v7144_v62 }
 0x885   : > { %7361 = vrot.lane.b32.xlu0 %v11676_v49, %s8710_s25 }
 0x886   : > { %7384 = vrot.lane.b32.xlu1 %v11685_v33, %s11948_s30  ;;  %v7152_v54 = vpop.permute.xlu0 %7151 }
 0x887   : > { %v7234_v45 = vpop.permute.xlu1 %7233  ;;  %v7278_v47 = vsel %vm4706_vm3, %v11512_v23, %v7152_v54 }
 0x888   : > { %v11694_v24 = vsel %vm663_vm2, %v7278_v47, %v7242_v2  ;;  %v11703_v26 = vsel %vm663_vm2, %v7270_v12, %v7234_v45 }
 0x889   : > { %7394 = vrot.lane.b32.xlu0 %v11694_v24, %s11948_s30 }
 0x88a   : > { %7353 = vrot.lane.b32.xlu1 %v11685_v33, %s8710_s25  ;;  %v7244_v50 = vpop.permute.xlu0 %7243 }
 0x88b   : > { %v7146_v61 = vpop.permute.xlu1 %7145  ;;  %v11712_v55 = vsel %vm663_vm2, %v7280_v4, %v7244_v50 }
 0x88c   : > { %v7272_v10 = vsel %vm4706_vm3, %v11523_v38, %v7146_v61 }
 0x88d   : > { %7363 = vrot.lane.b32.xlu0 %v11694_v24, %s8710_s25 }
 0x88e   : > { %7386 = vrot.lane.b32.xlu1 %v11703_v26, %s11948_s30  ;;  %v7246_v23 = vpop.permute.xlu0 %7245 }
 0x88f   : > { %v7236_v41 = vpop.permute.xlu1 %7235 }
 0x890   : > { %v7308_v44 = vsel %vm663_vm2, %v7272_v10, %v7236_v41 }
 0x891   : > { %7396 = vrot.lane.b32.xlu0 %v11712_v55, %s11948_s30 }
 0x892   : > { %7355 = vrot.lane.b32.xlu1 %v11703_v26, %s8710_s25  ;;  %v7158_v27 = vpop.permute.xlu0 %7157 }
 0x893   : > { %v7284_v29 = vsel %vm4706_vm3, %v11542_v11, %v7158_v27  ;;  %v7164_v20 = vpop.permute.xlu1 %7163 }
 0x894   : > { %v7290_v8 = vsel %vm4706_vm3, %v11537_v17, %v7164_v20 }
 0x895   : > { %7365 = vrot.lane.b32.xlu0 %v11712_v55, %s8710_s25 }
 0x896   : > { %7388 = vrot.lane.b32.xlu1 %v7308_v44, %s11948_s30  ;;  %v7156_v25 = vpop.permute.xlu0 %7155 }
 0x897   : > { %v7282_v63 = vsel %vm4706_vm3, %v11550_v3, %v7156_v25  ;;  %v7254_v22 = vpop.permute.xlu1 %7253 }
 0x898   : > { %v11727_v18 = vsel %vm663_vm2, %v7282_v63, %v7246_v23 }
 0x899   : > { %7398 = vrot.lane.b32.xlu0 %v11727_v18, %s11948_s30 }
 0x89a   : > { %7357 = vrot.lane.b32.xlu1 %v7308_v44, %s8710_s25  ;;  %v7248_v38 = vpop.permute.xlu0 %7247 }
 0x89b   : > { %v11739_v3 = vsel %vm663_vm2, %v7284_v29, %v7248_v38 }
 0x89d   : > { %7367 = vrot.lane.b32.xlu0 %v11727_v18, %s8710_s25 }
 0x89e   : > { %7390 = vrot.lane.b32.xlu1 %v11667_v31, %s11948_s30 }
 0x8a1   : > { %7400 = vrot.lane.b32.xlu0 %v11739_v3, %s11948_s30 }
 0x8a2   : > { %7476 = vperm.xlu1 %8444, %v7473_v37  }
 0x8a5   : > { %7369 = vrot.lane.b32.xlu0 %v11739_v3, %s8710_s25 }
 0x8b2   : > { %v7250_v32 = vpop.permute.xlu0 %7249 }
 0x8b6   : > { %v7162_v59 = vpop.permute.xlu0 %7161 }
 0x8b7   : > { %v7288_v14 = vsel %vm4706_vm3, %v11600_v56, %v7162_v59  ;;  %v7326_v56 = vsel %vm663_vm2, %v7290_v8, %v7254_v22 }
 0x8ba   : > { %v7160_v51 = vpop.permute.xlu0 %7159 }
 0x8bb   : > { %v7286_v52 = vsel %vm4706_vm3, %v11602_v15, %v7160_v51 }
 0x8bc   : > { %v11748_v6 = vsel %vm663_vm2, %v7286_v52, %v7250_v32 }
 0x8bd   : > { %7402 = vrot.lane.b32.xlu0 %v11748_v6, %s11948_s30 }
 0x8be   : > { %v7252_v11 = vpop.permute.xlu0 %7251 }
 0x8bf   : > { %v7324_v15 = vsel %vm663_vm2, %v7288_v14, %v7252_v11 }
 0x8c1   : > { %7371 = vrot.lane.b32.xlu0 %v11748_v6, %s8710_s25 }
 0x8c2   : > { %v7130_v9 = vpop.permute.xlu0 %7129 }
 0x8c3   : > { %v7256_v35 = vsel %vm4706_vm3, %v11607_v13, %v7130_v9 }
 0x8c5   : > { %7404 = vrot.lane.b32.xlu0 %v7324_v15, %s11948_s30 }
 0x8c6   : > { %v7220_v17 = vpop.permute.xlu0 %7219 }
 0x8c7   : > { %v7292_v19 = vsel %vm663_vm2, %v7256_v35, %v7220_v17 }
 0x8c9   : > { %7373 = vrot.lane.b32.xlu0 %v7324_v15, %s8710_s25 }
 0x8cd   : > { %7406 = vrot.lane.b32.xlu0 %v7326_v56, %s11948_s30  ;;  %v7344_v40 = vpop.permute.xlu1 %7343  ;;  %s392_s30 = sand.u32 1, %s8679_s18  }
 0x8ce   : > { %v7409_v30 = vsel %vm4860_vm8, %v7292_v19, %v7344_v40  ;;  %s7652_s25 = sshll.u32 %s392_s30, 3  ;;  %s7563_s14 = scalar_lea.sflag [#allocation5], %s392_s30 }
 0x8cf   : > { %s394_s2 = scalar_lea.vmem [#allocation4], %s7652_s25 }
 0x8d0   : > { %s7577_s3 = sshll.u32 %s394_s2, 4  ;;  %s11847_s3 = int_to_ptr.vmem [resolvable:$true] %s7577_s3 }
 0x8d1   : > { %v7377_v53 = vpop.permute.xlu1 %7376  ;;  %s8625_s16 = scalar_lea.vmem %s11847_s3, 128  ;;  %p8632_p0 = scmp.lt.s32.totalorder %s11847_s3, %s8630_s15 }
 0x8d2   : > { %v7441_v28 = vsel %vm1355_vm4, %v7409_v30, %v7377_v53  ;;  %p8626_p11 = scmp.ne.s32.totalorder %s11847_s3, %s8625_s16  ;;  %p8633_p1 = scmp.lt.s32.totalorder %s8631_s24, %s8625_s16 }
 0x8d3   : > { %v7482_v0 = vsel %vm5707_vm9, %v7441_v28, 0 }
 0x8d4   : > { %p8627_p12 = pnand %p8626_p11, %p8810_p5  ;;  %p8634_p2 = por %p8633_p1, %p8632_p0 }
 0x8d5   : > { %v7346_v60 = vpop.permute.xlu1 %7345 }
 0x8d6   : > { %v7411_v62 = vsel %vm4860_vm8, %v11629_v57, %v7346_v60  ;;  %p8628_p13 = pneg %p8627_p12 }
 0x8d8   : > { %p8635_p3 = pnand %p8634_p2, %p8628_p13 }
 0x8e0   : > { %v7379_v5 = vpop.permute.xlu1 %7378 }
 0x8e1   : > { %v7443_v21 = vsel %vm1355_vm4, %v7411_v62, %v7379_v5 }
 0x8e2   : > { %v7484_v47 = vsel %vm5707_vm9, %v7443_v21, 0 }
 0x8e4   : > { %v7348_v16 = vpop.permute.xlu1 %7347 }
 0x8e5   : > { %v7413_v61 = vsel %vm4860_vm8, %v11635_v34, %v7348_v16 }
 0x8e8   : > { %v7381_v13 = vpop.permute.xlu1 %7380 }
 0x8e9   : > { %v7445_v57 = vsel %vm1355_vm4, %v7413_v61, %v7381_v13 }
 0x8ea   : > { %v7486_v27 = vsel %vm5707_vm9, %v7445_v57, 0 }
 0x8ec   : > { %v7350_v50 = vpop.permute.xlu1 %7349 }
 0x8ef   : > { %v7360_v48 = vpop.permute.xlu0 %7359 }
 0x8f0   : > { %v7425_v1 = vsel %vm4860_vm8, %v7308_v44, %v7360_v48  ;;  %v7383_v23 = vpop.permute.xlu1 %7382  ;;  %v7415_v44 = vsel %vm4860_vm8, %v11644_v7, %v7350_v50 }
 0x8f1   : > { %v7447_v34 = vsel %vm1355_vm4, %v7415_v44, %v7383_v23 }
 0x8f2   : > { %v7488_v29 = vsel %vm5707_vm9, %v7447_v34, 0 }
 0x8f3   : > { %v7393_v36 = vpop.permute.xlu0 %7392 }
 0x8f4   : > { %v7457_v46 = vsel %vm1355_vm4, %v7425_v1, %v7393_v36  ;;  %v7352_v25 = vpop.permute.xlu1 %7351 }
 0x8f5   : > { %8374 = vmatprep.subr.msk.bf16.mxu1 %vm5707_vm9, %v7457_v46  ;;  %v7417_v51 = vsel %vm4860_vm8, %v11653_v42, %v7352_v25 }
 0x8f6   : > { %8150 = vmatpush3.bf16.xpose.msra.mxu1 %v7482_v0 }
 0x8f7   : > { %v7362_v2 = vpop.permute.xlu0 %7361 }
 0x8f8   : > { %v7427_v58 = vsel %vm4860_vm8, %v11667_v31, %v7362_v2  ;;  %v7385_v32 = vpop.permute.xlu1 %7384 }
 0x8f9   : > { %v7449_v7 = vsel %vm1355_vm4, %v7417_v51, %v7385_v32 }
 0x8fa   : > { %v7490_v14 = vsel %vm5707_vm9, %v7449_v7, 0 }
 0x8fb   : > { %v7395_v45 = vpop.permute.xlu0 %7394 }
 0x8fc   : > { %v7459_v54 = vsel %vm1355_vm4, %v7427_v58, %v7395_v45  ;;  %v7354_v15 = vpop.permute.xlu1 %7353 }
 0x8fd   : > { %8375 = vmatprep.subr.msk.bf16.mxu1 %vm5707_vm9, %v7459_v54  ;;  %v7419_v42 = vsel %vm4860_vm8, %v11664_v39, %v7354_v15 }
 0x8fe   : > { %8152 = vmatpush3.bf16.xpose.msra.mxu1 %v7484_v47 }
 0x8ff   : > { %v7364_v12 = vpop.permute.xlu0 %7363 }
 0x900   : > { %v7429_v4 = vsel %vm4860_vm8, %v11676_v49, %v7364_v12  ;;  %v7387_v20 = vpop.permute.xlu1 %7386 }
 0x901   : > { %v7451_v22 = vsel %vm1355_vm4, %v7419_v42, %v7387_v20 }
 0x902   : > { %v7492_v9 = vsel %vm5707_vm9, %v7451_v22, 0 }
 0x903   : > { %v7397_v31 = vpop.permute.xlu0 %7396 }
 0x904   : > { %v7461_v41 = vsel %vm1355_vm4, %v7429_v4, %v7397_v31  ;;  %v7356_v8 = vpop.permute.xlu1 %7355 }
 0x905   : > { %8376 = vmatprep.subr.msk.bf16.mxu1 %vm5707_vm9, %v7461_v41  ;;  %v7421_v35 = vsel %vm4860_vm8, %v11685_v33, %v7356_v8 }
 0x906   : > { %8154 = vmatpush3.bf16.xpose.msra.mxu1 %v7486_v27 }
 0x907   : > { %v7366_v10 = vpop.permute.xlu0 %7365 }
 0x908   : > { %v7431_v63 = vsel %vm4860_vm8, %v11694_v24, %v7366_v10  ;;  %v7389_v56 = vpop.permute.xlu1 %7388 }
 0x909   : > { %v7453_v39 = vsel %vm1355_vm4, %v7421_v35, %v7389_v56 }
 0x90a   : > { %v7494_v30 = vsel %vm5707_vm9, %v7453_v39, 0 }
 0x90b   : > { %v7399_v38 = vpop.permute.xlu0 %7398 }
 0x90c   : > { %v7463_v49 = vsel %vm1355_vm4, %v7431_v63, %v7399_v38  ;;  %v7358_v17 = vpop.permute.xlu1 %7357 }
 0x90d   : > { %8377 = vmatprep.subr.msk.bf16.mxu1 %vm5707_vm9, %v7463_v49  ;;  %v7423_v33 = vsel %vm4860_vm8, %v11703_v26, %v7358_v17 }
 0x90e   : > { %8156 = vmatpush3.bf16.xpose.msra.mxu1 %v7488_v29 }
 0x90f   : > { %v7368_v59 = vpop.permute.xlu0 %7367 }
 0x910   : > { %v7433_v52 = vsel %vm4860_vm8, %v11712_v55, %v7368_v59  ;;  %v7391_v48 = vpop.permute.xlu1 %7390 }
 0x911   : > { %v7455_v28 = vsel %vm1355_vm4, %v7423_v33, %v7391_v48 }
 0x912   : > { %v7496_v46 = vsel %vm5707_vm9, %v7455_v28, 0 }
 0x913   : > { %v7401_v11 = vpop.permute.xlu0 %7400 }
 0x914   : > { %v7465_v24 = vsel %vm1355_vm4, %v7433_v52, %v7401_v11 }
 0x915   : > { %8378 = vmatprep.subr.msk.bf16.mxu1 %vm5707_vm9, %v7465_v24 }
 0x916   : > { %8158 = vmatpush3.bf16.xpose.msra.mxu1 %v7490_v14 }
 0x917   : > { %v7370_v37 = vpop.permute.xlu0 %7369 }
 0x918   : > { %v7435_v55 = vsel %vm4860_vm8, %v11727_v18, %v7370_v37 }
 0x921   : > { %v7477_v26 = vpop.permute.xlu1 %7476 }
 0x92f   : > { %v7403_v40 = vpop.permute.xlu0 %7402 }
 0x930   : > { %v7467_v53 = vsel %vm1355_vm4, %v7435_v55, %v7403_v40 }
 0x931   : > { %8379 = vmatprep.subr.msk.bf16.mxu1 %vm5707_vm9, %v7467_v53 }
 0x932   : > { %8160 = vmatpush3.bf16.xpose.msra.mxu1 %v7492_v9 }
 0x933   : > { %v7372_v60 = vpop.permute.xlu0 %7371 }
 0x934   : > { %v7437_v5 = vsel %vm4860_vm8, %v11739_v3, %v7372_v60 }
 0x937   : > { %v7405_v19 = vpop.permute.xlu0 %7404 }
 0x938   : > { %v7469_v18 = vsel %vm1355_vm4, %v7437_v5, %v7405_v19 }
 0x939   : > { %8380 = vmatprep.subr.msk.bf16.mxu1 %vm5707_vm9, %v7469_v18 }
 0x93a   : > { %8162 = vmatpush3.bf16.xpose.msra.mxu1 %v7494_v30 }
 0x93b   : > { %v7374_v16 = vpop.permute.xlu0 %7373 }
 0x93c   : > { %v7439_v1 = vsel %vm4860_vm8, %v11748_v6, %v7374_v16 }
 0x93f   : > { %v7407_v3 = vpop.permute.xlu0 %7406 }
 0x940   : > { %v7471_v36 = vsel %vm1355_vm4, %v7439_v1, %v7407_v3 }
 0x941   : > { %8381 = vmatprep.subr.msk.bf16.mxu1 %vm5707_vm9, %v7471_v36 }
 0x942   : > { %8164 = vmatpush3.bf16.xpose.msra.mxu1 %v7496_v46 }
 0x949   : > { %8166 = vmatmul.mubr.msk.bf16.vlgmr.msra.gmra.mrb[60].mxu1 %vm5707_vm9, %v11757_v43 }
 0xa1c   : > { %v7548_v0 = vpop.f32.mrb[60].mxu1 }
 0xa1d   : > { %v7550_v13 = vpop.f32.mrb[61].mxu1  ;;  %v7549_v2 = vadd.f32 %v7548_v0, %v7477_v26 }
 0xa1e   : > { %v7552_v6 = vpop.f32.mrb[62].mxu1  ;;  %v7551_v62 = vadd.f32 %v7550_v13, %v7477_v26 }
 0xa1f   : > { %v7553_v21 = vpop.f32.mrb[63].mxu1  ;;  %v7555_v58 = vmax.f32 %v7549_v2, 0.0 }
 0xa20   : > { %v7556_v45 = vmax.f32 %v7551_v62, 0.0 }
 0xa22   : > { %v7559_v54 = vcombine.low %v7555_v58, %v7556_v45 }
 0xa24   : > { %7561 = vst [vmem:[%s394_s2] sm:$0xff] %v7559_v54 }
 0xa25   : > { %8638 = shalt.err (!%p8635_p3)
}
 0xa26   : > { %s8639_s12 = scalar_lea.hbm %s11845_s29, 128  ;;  %s8643_s30 = scalar_lea.hbm %s11898_s11, 256 }
 0xa27   : > { %p8640_p4 = scmp.ne.s32.totalorder %s11845_s29, %s8639_s12  ;;  %p8644_p9 = scmp.lt.u32.totalorder %s11845_s29, %s11898_s11 }
 0xa28   : > { %p8645_p10 = scmp.lt.u32.totalorder %s8643_s30, %s8639_s12  ;;  %p8647_p12 = scmp.lt.u32.totalorder %s8639_s12, %s11845_s29 }
 0xa29   : > { %p8641_p7 = pnand %p8640_p4, %p8810_p5 }
 0xa2a   : > { %p8646_p11 = por %p8645_p10, %p8644_p9 }
 0xa2b   : > { %p8642_p8 = pneg %p8641_p7 }
 0xa2c   : > { %p8648_p13 = por %p8647_p12, %p8646_p11 }
 0xa2e   : > { %p8649_p0 = pnand %p8648_p13, %p8642_p8 }
 0xa30   : > { %8652 = shalt.err (!%p8649_p0)
}
 0xa31   : > { %8383 = dma.vmem_to_hbm [thread:$0]  (%p8810_p5), %s11847_s3, 128, %s11845_s29, %s7563_s14  }
 0xa32 PF: > { %p8389_p1 = scmp.ge.s32.totalorder %s8687_s20, 2  ;;  %s7589_s2 = sand.u32 1, %s8675_s17  }
 0xa33   : > { %s7590_s26 = scalar_lea.sflag [#allocation5], %s7589_s2 }
 0xa34   : > { %p8386_p2 = pnand %p8389_p1, %p8814_p6 }
 0xa36   : > { %8670 = dma.done.wait (!%p8386_p2), %s7590_s26, 128  }
 0xa37   : > { %8672 = vsyncadd (!%p8386_p2), %s7590_s26, 4294967168  ;;  %s11980_s13 = sld [smem:[#allocation7_spill]]  ;;  %p21_p3 = scmp.ge.s32.totalorder %s8797_s23, 4  }
 0xa38   : > { %s11981_s17 = smov %s8679_s18  ;;  %s11982_s18 = smov %s8683_s19 }
 0xa39   : > { %s11984_s20 = smov %s8797_s23  ;;  %23 = sbr.rel (!%p21_p3) target bundleno = 8 (0x8), region = 106 }
 0xa3d   : > { %s11983_s19 = smov %s11980_s13 }
 0xa40   :  { %7595 = vsyncpa [#allocation5], 1 }
 0xa41   :  { %7597 = vsyncpa [#allocation5 + $0x1], 1 }

</bundles_post_ra>
